<compile_context>
chip_gen: v7x
topology: tpu7x:2x2x1
jax: 0.10.0
libtpu: 0.0.40
codegen_flags: <defaults>
</compile_context>

<pallas_src>
import functools

import jax
import jax.numpy as jnp
from jax import lax
from jax.experimental import pallas as pl
from jax.experimental.pallas import tpu as pltpu

_EPS = 1e-5


def _rep(shape):
    """BlockSpec for a grid-invariant (replicated) operand; fetched once."""
    zeros = (0,) * len(shape)
    return pl.BlockSpec(shape, lambda b, _z=zeros: _z)


def _layernorm(x, g, b, eps=_EPS):
    mu = jnp.mean(x, axis=-1, keepdims=True)
    var = jnp.mean(jnp.square(x - mu), axis=-1, keepdims=True)
    return (x - mu) * lax.rsqrt(var + eps) * g + b


def _transformer_layers(x, refs, depth, heads, dim_head):
    """Runs `depth` pre-norm transformer layers with weights stacked on a
    leading layer axis (all resident in VMEM). Static unroll over layers/heads."""
    (ln1_g, ln1_b, w_qkv, w_out, b_out, ln2_g, ln2_b,
     w_mlp1, b_mlp1, w_mlp2, b_mlp2) = refs
    inner = heads * dim_head
    scale = float(dim_head) ** -0.5
    for l in range(depth):
        # ---- attention block (LN1 + QKV + per-head softmax-attn + out proj) ----
        h = _layernorm(x, ln1_g[l], ln1_b[l])
        qkv = jnp.dot(h, w_qkv[l], preferred_element_type=jnp.float32)   # (N, 3*inner)
        wo_l = w_out[l]                                                  # (inner, D)
        out = jnp.zeros(x.shape, jnp.float32)
        for hd in range(heads):
            lo = hd * dim_head
            q = qkv[:, lo:lo + dim_head] * scale            # fold softmax scale into q
            k = qkv[:, inner + lo:inner + lo + dim_head]
            v = qkv[:, 2 * inner + lo:2 * inner + lo + dim_head]
            # q @ k^T without materializing a transpose (NT matmul)
            s = lax.dot_general(q, k, (((1,), (1,)), ((), ())),
                                preferred_element_type=jnp.float32)      # (N, N)
            s = s - jnp.max(s, axis=-1, keepdims=True)
            p = jnp.exp(s)
            p = p / jnp.sum(p, axis=-1, keepdims=True)
            a = jnp.dot(p, v, preferred_element_type=jnp.float32)        # (N, dh)
            # accumulate head directly into the output projection (no concat)
            out = out + jnp.dot(a, wo_l[lo:lo + dim_head, :],
                                preferred_element_type=jnp.float32)
        x = x + out + b_out[l]                                            # residual
        # ---- MLP block (LN2 + FC1 + GELU + FC2) ----
        h = _layernorm(x, ln2_g[l], ln2_b[l])
        h = jnp.dot(h, w_mlp1[l], preferred_element_type=jnp.float32) + b_mlp1[l]
        # TODO(synk): torch nn.GELU() is exact-erf; tanh approximation is used
        # for a guaranteed Mosaic lowering (numerical difference is negligible).
        h = jax.nn.gelu(h, approximate=True)
        x = x + jnp.dot(h, w_mlp2[l], preferred_element_type=jnp.float32) + b_mlp2[l]
    return x


# ----------------------------- Pallas kernels -----------------------------

def _encoder_kernel(idx_ref, patches_ref, pos_ref, w_pe_ref, b_pe_ref,
                    ln1_g, ln1_b, w_qkv, w_out, b_out, ln2_g, ln2_b,
                    w_mlp1, b_mlp1, w_mlp2, b_mlp2,
                    fg_ref, fb_ref, w_ed_ref, b_ed_ref,
                    dec_ref, pool_ref,
                    *, depth, heads, dim_head, n_unmasked, num_patches):
    # --- fused gather of unmasked patches via one-hot matmul on the MXU ---
    idx = idx_ref[...]                                                  # (n_um, 1) int32
    iota = lax.broadcasted_iota(jnp.int32, (n_unmasked, num_patches), 1)
    onehot = (iota == idx).astype(jnp.float32)                          # (n_um, num_patches)
    xp = jnp.dot(onehot, patches_ref[...], preferred_element_type=jnp.float32)  # (n_um, ppp)
    pos = jnp.dot(onehot, pos_ref[...], preferred_element_type=jnp.float32)     # (n_um, D)
    # --- patch -> embedding + positional embedding of the original slot ---
    x = jnp.dot(xp, w_pe_ref[...], preferred_element_type=jnp.float32) + b_pe_ref[...] + pos
    # --- full encoder transformer stack (weights resident, no HBM round-trip) ---
    x = _transformer_layers(
        x, (ln1_g, ln1_b, w_qkv, w_out, b_out, ln2_g, ln2_b,
            w_mlp1, b_mlp1, w_mlp2, b_mlp2), depth, heads, dim_head)
    # --- final LN + enc_to_dec linear + mean pool, fused ---
    h = _layernorm(x, fg_ref[...], fb_ref[...])
    dec_ref[...] = jnp.dot(h, w_ed_ref[...], preferred_element_type=jnp.float32) + b_ed_ref[...]
    pool_ref[...] = jnp.mean(h, axis=0, keepdims=True)                  # (1, enc_dim)


def _decoder_kernel(x_ref,
                    ln1_g, ln1_b, w_qkv, w_out, b_out, ln2_g, ln2_b,
                    w_mlp1, b_mlp1, w_mlp2, b_mlp2,
                    fg_ref, fb_ref, w_pix_ref, b_pix_ref, tgt_ref,
                    pred_ref, sse_ref,
                    *, depth, heads, dim_head, num_masked):
    x = x_ref[...]                                                      # (N_dec, dec_dim)
    x = _transformer_layers(
        x, (ln1_g, ln1_b, w_qkv, w_out, b_out, ln2_g, ln2_b,
            w_mlp1, b_mlp1, w_mlp2, b_mlp2), depth, heads, dim_head)
    # mask tokens are the FIRST num_masked rows (tile-aligned slice at row 0)
    xm = x[:num_masked, :]
    h = _layernorm(xm, fg_ref[...], fb_ref[...])
    pred = jnp.dot(h, w_pix_ref[...], preferred_element_type=jnp.float32) + b_pix_ref[...]
    pred_ref[...] = pred
    d = pred - tgt_ref[...]
    sse_ref[...] = jnp.sum(d * d, keepdims=True)                        # (1, 1)


# ----------------------------- kernel wrappers -----------------------------

_COMPILER_PARAMS = pltpu.CompilerParams(
    dimension_semantics=("parallel",),          # batch axis -> both TCs on v7x
    vmem_limit_bytes=32 * 1024 * 1024)          # explicit budget (weights << 1 MiB)


def pallas_encoder(patches, unmasked_indices, pos_emb, params):
    B, num_patches, ppp = patches.shape
    n_um = unmasked_indices.shape[1]
    D = params["enc_dim"]
    dec_dim = params["dec_dim"]
    enc = params["enc_layers"]
    depth, heads, dh = enc["depth"], enc["heads"], enc["dim_head"]
    inner = heads * dh
    Dh = enc["w_mlp1"].shape[-1]

    idx = unmasked_indices.astype(jnp.int32).reshape(B, n_um, 1)

    in_specs = [
        pl.BlockSpec((None, n_um, 1), lambda b: (b, 0, 0)),             # indices
        pl.BlockSpec((None, num_patches, ppp), lambda b: (b, 0, 0)),    # patches
        _rep((num_patches, D)),                                          # pos emb
        _rep((ppp, D)), _rep((1, D)),                                    # patch_to_emb
        _rep((depth, 1, D)), _rep((depth, 1, D)),                        # ln1
        _rep((depth, D, 3 * inner)),                                     # w_qkv (bias=False)
        _rep((depth, inner, D)), _rep((depth, 1, D)),                    # out proj
        _rep((depth, 1, D)), _rep((depth, 1, D)),                        # ln2
        _rep((depth, D, Dh)), _rep((depth, 1, Dh)),                      # mlp fc1
        _rep((depth, Dh, D)), _rep((depth, 1, D)),                       # mlp fc2
        _rep((1, D)), _rep((1, D)),                                      # final ln
        _rep((D, dec_dim)), _rep((1, dec_dim)),                          # enc_to_dec
    ]
    out_specs = (pl.BlockSpec((None, n_um, dec_dim), lambda b: (b, 0, 0)),
                 pl.BlockSpec((None, 1, D), lambda b: (b, 0, 0)))

    dec_um, pooled = pl.pallas_call(
        functools.partial(_encoder_kernel, depth=depth, heads=heads, dim_head=dh,
                          n_unmasked=n_um, num_patches=num_patches),
        out_shape=(jax.ShapeDtypeStruct((B, n_um, dec_dim), jnp.float32),
                   jax.ShapeDtypeStruct((B, 1, D), jnp.float32)),
        grid=(B,), in_specs=in_specs, out_specs=out_specs,
        compiler_params=_COMPILER_PARAMS,
    )(idx, patches, pos_emb,
      params["patch_to_emb_w"], params["patch_to_emb_b"].reshape(1, D),
      enc["ln1_g"], enc["ln1_b"], enc["w_qkv"], enc["w_out"], enc["b_out"],
      enc["ln2_g"], enc["ln2_b"], enc["w_mlp1"], enc["b_mlp1"],
      enc["w_mlp2"], enc["b_mlp2"],
      params["enc_final_ln"]["g"], params["enc_final_ln"]["b"],
      params["enc_to_dec_w"], params["enc_to_dec_b"].reshape(1, dec_dim))
    return dec_um, pooled


def pallas_decoder(decoder_tokens, masked_patches, params):
    B, N, D = decoder_tokens.shape
    dec = params["dec_layers"]
    depth, heads, dh = dec["depth"], dec["heads"], dec["dim_head"]
    inner = heads * dh
    Dh = dec["w_mlp1"].shape[-1]
    num_masked, ppp = masked_patches.shape[1], masked_patches.shape[2]

    tok_spec = pl.BlockSpec((None, N, D), lambda b: (b, 0, 0))
    in_specs = [tok_spec,
                _rep((depth, 1, D)), _rep((depth, 1, D)),
                _rep((depth, D, 3 * inner)),
                _rep((depth, inner, D)), _rep((depth, 1, D)),
                _rep((depth, 1, D)), _rep((depth, 1, D)),
                _rep((depth, D, Dh)), _rep((depth, 1, Dh)),
                _rep((depth, Dh, D)), _rep((depth, 1, D)),
                _rep((1, D)), _rep((1, D)),                               # final ln
                _rep((D, ppp)), _rep((1, ppp)),                           # to_pixels
                pl.BlockSpec((None, num_masked, ppp), lambda b: (b, 0, 0))]  # targets
    out_specs = (pl.BlockSpec((None, num_masked, ppp), lambda b: (b, 0, 0)),
                 pl.BlockSpec((None, 1, 1), lambda b: (b, 0, 0)))

    pred, sse = pl.pallas_call(
        functools.partial(_decoder_kernel, depth=depth, heads=heads, dim_head=dh,
                          num_masked=num_masked),
        out_shape=(jax.ShapeDtypeStruct((B, num_masked, ppp), jnp.float32),
                   jax.ShapeDtypeStruct((B, 1, 1), jnp.float32)),
        grid=(B,), in_specs=in_specs, out_specs=out_specs,
        compiler_params=_COMPILER_PARAMS,
    )(decoder_tokens,
      dec["ln1_g"], dec["ln1_b"], dec["w_qkv"], dec["w_out"], dec["b_out"],
      dec["ln2_g"], dec["ln2_b"], dec["w_mlp1"], dec["b_mlp1"],
      dec["w_mlp2"], dec["b_mlp2"],
      params["dec_final_ln"]["g"], params["dec_final_ln"]["b"],
      params["to_pixels_w"], params["to_pixels_b"].reshape(1, ppp),
      masked_patches)
    return pred, sse


# ----------------------------- params -----------------------------

def _dense(key, din, dout, scale=0.02):
    return scale * jax.random.normal(key, (din, dout), jnp.float32)


def init_transformer_params(key, dim, depth, heads, dim_head, mlp_dim):
    """Per-layer weights stacked on a leading layer axis (for single fused kernel)."""
    inner = heads * dim_head
    ks = jax.random.split(key, 4 * depth)
    stack = dict(
        depth=depth, heads=heads, dim_head=dim_head,
        ln1_g=jnp.ones((depth, 1, dim), jnp.float32),
        ln1_b=jnp.zeros((depth, 1, dim), jnp.float32),
        # vit-pytorch to_qkv has bias=False -> no b_qkv at all
        w_qkv=jnp.stack([_dense(ks[4 * i + 0], dim, 3 * inner) for i in range(depth)]),
        w_out=jnp.stack([_dense(ks[4 * i + 1], inner, dim) for i in range(depth)]),
        b_out=jnp.zeros((depth, 1, dim), jnp.float32),
        ln2_g=jnp.ones((depth, 1, dim), jnp.float32),
        ln2_b=jnp.zeros((depth, 1, dim), jnp.float32),
        w_mlp1=jnp.stack([_dense(ks[4 * i + 2], dim, mlp_dim) for i in range(depth)]),
        b_mlp1=jnp.zeros((depth, 1, mlp_dim), jnp.float32),
        w_mlp2=jnp.stack([_dense(ks[4 * i + 3], mlp_dim, dim) for i in range(depth)]),
        b_mlp2=jnp.zeros((depth, 1, dim), jnp.float32),
    )
    final = dict(g=jnp.ones((1, dim), jnp.float32), b=jnp.zeros((1, dim), jnp.float32))
    return stack, final


def init_mae_params(key, *, image_size=32, channels=3, patch=8,
                    enc_dim=32, enc_depth=2, enc_heads=4, enc_dim_head=8, enc_mlp=64,
                    dec_dim=48, dec_depth=1, dec_heads=4, dec_dim_head=16,
                    masking_ratio=0.75):
    num_patches = (image_size // patch) ** 2
    ppp = patch * patch * channels                 # pixel_values_per_patch
    ks = jax.random.split(key, 10)
    enc_layers, enc_final = init_transformer_params(ks[0], enc_dim, enc_depth,
                                                    enc_heads, enc_dim_head, enc_mlp)
    dec_layers, dec_final = init_transformer_params(ks[1], dec_dim, dec_depth,
                                                    dec_heads, dec_dim_head, dec_dim * 4)
    return dict(
        patch_h=patch, patch_w=patch, masking_ratio=masking_ratio,
        enc_dim=enc_dim, dec_dim=dec_dim,
        patch_to_emb_w=_dense(ks[2], ppp, enc_dim),
        patch_to_emb_b=jnp.zeros((enc_dim,), jnp.float32),
        # encoder.pos_embedding is (1, num_patches+1, enc_dim) (CLS slot included)
        pos_embedding=0.02 * jax.random.normal(ks[3], (1, num_patches + 1, enc_dim), jnp.float32),
        enc_layers=enc_layers, enc_final_ln=enc_final,
        enc_to_dec_w=_dense(ks[4], enc_dim, dec_dim),
        enc_to_dec_b=jnp.zeros((dec_dim,), jnp.float32),
        mask_token=0.02 * jax.random.normal(ks[5], (dec_dim,), jnp.float32),
        A_style=jax.random.normal(ks[6], (1, num_patches, dec_dim), jnp.float32),  # unused: style=False
        B_style=jax.random.normal(ks[7], (1, num_patches, dec_dim), jnp.float32),  # unused: style=False
        decoder_pos_emb=0.02 * jax.random.normal(ks[8], (num_patches, dec_dim), jnp.float32),
        dec_layers=dec_layers, dec_final_ln=dec_final,
        to_pixels_w=_dense(ks[9], dec_dim, ppp),
        to_pixels_b=jnp.zeros((ppp,), jnp.float32),
    )


# ----------------------------- model glue -----------------------------

def _reconstruct_img(img_shape, rand_indices, num_masked, pred_pixel_values, patches, ph, pw):
    B, num_patches, _ = patches.shape
    unmasked_indices = rand_indices[:, num_masked:]
    batch_range = jnp.arange(B)[:, None]
    unmasked_patches = patches[batch_range, unmasked_indices]
    recon = jnp.concatenate([pred_pixel_values, unmasked_patches], axis=1)
    un_shuffle = jnp.zeros_like(recon).at[batch_range, rand_indices].set(recon)
    C = img_shape[1]
    h = img_shape[-1] // pw
    w = num_patches // h
    img_out = un_shuffle.reshape(B, h, w, ph, pw, C)
    img_out = jnp.transpose(img_out, (0, 5, 1, 3, 2, 4)).reshape(B, C, h * ph, w * pw)
    return img_out


def mae_forward(params, img, rng):
    B, C, H, W = img.shape
    ph, pw = params["patch_h"], params["patch_w"]

    # TODO(synk): img_grid / img_ungrid (grid=8, patch=8 pixel-shuffle helpers) are not
    # defined in the provided source, so they are treated as identity here.

    # patchify: 'b c (h p1) (w p2) -> b (h w) (p1 p2 c)'
    h, w = H // ph, W // pw
    patches = img.reshape(B, C, h, ph, w, pw)
    patches = jnp.transpose(patches, (0, 2, 4, 3, 5, 1)).reshape(B, h * w, ph * pw * C)
    num_patches = h * w
    ppp = ph * pw * C

    num_masked = int(params["masking_ratio"] * num_patches)
    rand = jax.random.uniform(rng, (B, num_patches))
    rand_indices = jnp.argsort(rand, axis=-1)
    masked_indices = rand_indices[:, :num_masked]
    unmasked_indices = rand_indices[:, num_masked:]
    batch_range = jnp.arange(B)[:, None]

    # one fused kernel: unmasked gather + patch embed + pos emb + full encoder
    # stack + final LN + enc_to_dec + mean pool
    pos = params["pos_embedding"][0, 1:num_patches + 1]           # (num_patches, enc_dim)
    dec_um, pooled = pallas_encoder(patches, unmasked_indices, pos, params)

    # decoder input; mask tokens placed FIRST so the in-kernel mask-slot slice
    # is tile-aligned (attention is permutation-equivariant -> same results as
    # torch's cat((decoder_tokens, mask_tokens), dim=1)).
    mask_tokens = params["mask_token"][None, None, :] + params["decoder_pos_emb"][masked_indices]
    decoder_tokens = jnp.concatenate([mask_tokens, dec_um], axis=1)
    # style=False in the reference forward -> A_style / B_style are not added.

    # one fused kernel: full decoder stack + final LN (mask slots) + to_pixels + SSE
    masked_patches = patches[batch_range, masked_indices]          # (B, num_masked, ppp)
    pred_pixel_values, sse = pallas_decoder(decoder_tokens, masked_patches, params)
    recon_loss = jnp.sum(sse) / float(B * num_masked * ppp)        # mean MSE

    unshuffle = _reconstruct_img(img.shape, rand_indices, num_masked,
                                 pred_pixel_values, patches, ph, pw)
    encoded_pool = pooled[:, 0, :]                                 # pool == 'mean'
    return recon_loss, encoded_pool, unshuffle


if __name__ == "__main__":
    key = jax.random.PRNGKey(0)
    pkey, ikey, mkey = jax.random.split(key, 3)
    params = init_mae_params(pkey)
    img = jax.random.normal(ikey, (2, 3, 32, 32), jnp.float32)   # NCHW, 8x8 patches -> 16 patches

    fwd = jax.jit(functools.partial(mae_forward, params))
    recon_loss, encoded_pool, unshuffle = fwd(img, mkey)
    jax.block_until_ready((recon_loss, encoded_pool, unshuffle))

    assert recon_loss.shape == ()
    assert encoded_pool.shape == (2, 32)
    assert unshuffle.shape == (2, 3, 32, 32)
    assert bool(jnp.isfinite(recon_loss))
    print("KERNEL_OK")
</pallas_src>

<mosaic_0001>
module attributes {stable_mosaic.version = 11 : i64} {
  func.func @_encoder_kernel(%arg0: i32, %arg1: memref<1x4x1xi32, #tpu.memory_space<vmem>>, %arg2: memref<1x16x192xf32, #tpu.memory_space<vmem>>, %arg3: memref<16x32xf32, #tpu.memory_space<vmem>>, %arg4: memref<192x32xf32, #tpu.memory_space<vmem>>, %arg5: memref<1x32xf32, #tpu.memory_space<vmem>>, %arg6: memref<2x1x32xf32, #tpu.memory_space<vmem>>, %arg7: memref<2x1x32xf32, #tpu.memory_space<vmem>>, %arg8: memref<2x32x96xf32, #tpu.memory_space<vmem>>, %arg9: memref<2x32x32xf32, #tpu.memory_space<vmem>>, %arg10: memref<2x1x32xf32, #tpu.memory_space<vmem>>, %arg11: memref<2x1x32xf32, #tpu.memory_space<vmem>>, %arg12: memref<2x1x32xf32, #tpu.memory_space<vmem>>, %arg13: memref<2x32x64xf32, #tpu.memory_space<vmem>>, %arg14: memref<2x1x64xf32, #tpu.memory_space<vmem>>, %arg15: memref<2x64x32xf32, #tpu.memory_space<vmem>>, %arg16: memref<2x1x32xf32, #tpu.memory_space<vmem>>, %arg17: memref<1x32xf32, #tpu.memory_space<vmem>>, %arg18: memref<1x32xf32, #tpu.memory_space<vmem>>, %arg19: memref<32x48xf32, #tpu.memory_space<vmem>>, %arg20: memref<1x48xf32, #tpu.memory_space<vmem>>, %arg21: memref<1x4x48xf32, #tpu.memory_space<vmem>>, %arg22: memref<1x1x32xf32, #tpu.memory_space<vmem>>) attributes {dimension_semantics = [#tpu.dimension_semantics<parallel>], iteration_bounds = array<i64: 2>, scalar_prefetch = 0 : i64, scratch_operands = 0 : i64, tpu.core_type = #tpu.core_type<tc>, window_params = [{transform_indices = @transform_0, window_bounds = array<i64: 1, 4, 1>}, {transform_indices = @transform_1, window_bounds = array<i64: 1, 16, 192>}, {pipeline_mode = #tpu.pipeline_mode<synchronous>, transform_indices = @transform_2, window_bounds = array<i64: 16, 32>}, {pipeline_mode = #tpu.pipeline_mode<synchronous>, transform_indices = @transform_3, window_bounds = array<i64: 192, 32>}, {pipeline_mode = #tpu.pipeline_mode<synchronous>, transform_indices = @transform_4, window_bounds = array<i64: 1, 32>}, {pipeline_mode = #tpu.pipeline_mode<synchronous>, transform_indices = @transform_5, window_bounds = array<i64: 2, 1, 32>}, {pipeline_mode = #tpu.pipeline_mode<synchronous>, transform_indices = @transform_6, window_bounds = array<i64: 2, 1, 32>}, {pipeline_mode = #tpu.pipeline_mode<synchronous>, transform_indices = @transform_7, window_bounds = array<i64: 2, 32, 96>}, {pipeline_mode = #tpu.pipeline_mode<synchronous>, transform_indices = @transform_8, window_bounds = array<i64: 2, 32, 32>}, {pipeline_mode = #tpu.pipeline_mode<synchronous>, transform_indices = @transform_9, window_bounds = array<i64: 2, 1, 32>}, {pipeline_mode = #tpu.pipeline_mode<synchronous>, transform_indices = @transform_10, window_bounds = array<i64: 2, 1, 32>}, {pipeline_mode = #tpu.pipeline_mode<synchronous>, transform_indices = @transform_11, window_bounds = array<i64: 2, 1, 32>}, {pipeline_mode = #tpu.pipeline_mode<synchronous>, transform_indices = @transform_12, window_bounds = array<i64: 2, 32, 64>}, {pipeline_mode = #tpu.pipeline_mode<synchronous>, transform_indices = @transform_13, window_bounds = array<i64: 2, 1, 64>}, {pipeline_mode = #tpu.pipeline_mode<synchronous>, transform_indices = @transform_14, window_bounds = array<i64: 2, 64, 32>}, {pipeline_mode = #tpu.pipeline_mode<synchronous>, transform_indices = @transform_15, window_bounds = array<i64: 2, 1, 32>}, {pipeline_mode = #tpu.pipeline_mode<synchronous>, transform_indices = @transform_16, window_bounds = array<i64: 1, 32>}, {pipeline_mode = #tpu.pipeline_mode<synchronous>, transform_indices = @transform_17, window_bounds = array<i64: 1, 32>}, {pipeline_mode = #tpu.pipeline_mode<synchronous>, transform_indices = @transform_18, window_bounds = array<i64: 32, 48>}, {pipeline_mode = #tpu.pipeline_mode<synchronous>, transform_indices = @transform_19, window_bounds = array<i64: 1, 48>}, {transform_indices = @transform_20, window_bounds = array<i64: 1, 4, 48>}, {transform_indices = @transform_21, window_bounds = array<i64: 1, 1, 32>}]} {
    %c0 = arith.constant 0 : index
    %c0_0 = arith.constant 0 : index
    %c0_1 = arith.constant 0 : index
    %0 = vector.load %arg1[%c0, %c0_0, %c0_1] : memref<1x4x1xi32, #tpu.memory_space<vmem>>, vector<1x4x1xi32>
    %1 = vector.shape_cast %0 : vector<1x4x1xi32> to vector<4x1xi32>
    %2 = tpu.iota {dimensions = array<i32: 1>} : vector<4x16xi32>
    %3 = vector.broadcast %1 : vector<4x1xi32> to vector<4x16xi32>
    %4 = arith.cmpi eq, %2, %3 : vector<4x16xi32>
    %5 = arith.extui %4 : vector<4x16xi1> to vector<4x16xi32>
    %6 = arith.sitofp %5 : vector<4x16xi32> to vector<4x16xf32>
    %c0_2 = arith.constant 0 : index
    %c0_3 = arith.constant 0 : index
    %c0_4 = arith.constant 0 : index
    %7 = vector.load %arg2[%c0_2, %c0_3, %c0_4] : memref<1x16x192xf32, #tpu.memory_space<vmem>>, vector<1x16x192xf32>
    %8 = vector.shape_cast %7 : vector<1x16x192xf32> to vector<16x192xf32>
    %cst = arith.constant dense<0.000000e+00> : vector<4x192xf32>
    %9 = tpu.matmul %6, %8, %cst {dimension_numbers = #tpu.dot_dimension_numbers<[1], [0], [0], [1], [0, 0, 1, 1], [], []>} : vector<4x16xf32>, vector<16x192xf32>, vector<4x192xf32> -> vector<4x192xf32>
    %c0_5 = arith.constant 0 : index
    %c0_6 = arith.constant 0 : index
    %10 = vector.load %arg3[%c0_5, %c0_6] : memref<16x32xf32, #tpu.memory_space<vmem>>, vector<16x32xf32>
    %cst_7 = arith.constant dense<0.000000e+00> : vector<4x32xf32>
    %11 = tpu.matmul %6, %10, %cst_7 {dimension_numbers = #tpu.dot_dimension_numbers<[1], [0], [0], [1], [0, 0, 1, 1], [], []>} : vector<4x16xf32>, vector<16x32xf32>, vector<4x32xf32> -> vector<4x32xf32>
    %c0_8 = arith.constant 0 : index
    %c0_9 = arith.constant 0 : index
    %12 = vector.load %arg4[%c0_8, %c0_9] : memref<192x32xf32, #tpu.memory_space<vmem>>, vector<192x32xf32>
    %cst_10 = arith.constant dense<0.000000e+00> : vector<4x32xf32>
    %13 = tpu.matmul %9, %12, %cst_10 {dimension_numbers = #tpu.dot_dimension_numbers<[1], [0], [0], [1], [0, 0, 1, 1], [], []>} : vector<4x192xf32>, vector<192x32xf32>, vector<4x32xf32> -> vector<4x32xf32>
    %c0_11 = arith.constant 0 : index
    %c0_12 = arith.constant 0 : index
    %14 = vector.load %arg5[%c0_11, %c0_12] : memref<1x32xf32, #tpu.memory_space<vmem>>, vector<1x32xf32>
    %15 = vector.broadcast %14 : vector<1x32xf32> to vector<4x32xf32>
    %16 = arith.addf %13, %15 : vector<4x32xf32>
    %17 = arith.addf %16, %11 : vector<4x32xf32>
    %c0_13 = arith.constant 0 : index
    %c0_14 = arith.constant 0 : index
    %c0_15 = arith.constant 0 : index
    %18 = vector.load %arg6[%c0_13, %c0_14, %c0_15] : memref<2x1x32xf32, #tpu.memory_space<vmem>>, vector<1x1x32xf32>
    %19 = vector.shape_cast %18 : vector<1x1x32xf32> to vector<1x32xf32>
    %c0_16 = arith.constant 0 : index
    %c0_17 = arith.constant 0 : index
    %c0_18 = arith.constant 0 : index
    %20 = vector.load %arg7[%c0_16, %c0_17, %c0_18] : memref<2x1x32xf32, #tpu.memory_space<vmem>>, vector<1x1x32xf32>
    %21 = vector.shape_cast %20 : vector<1x1x32xf32> to vector<1x32xf32>
    %cst_19 = arith.constant dense<0.000000e+00> : vector<4xf32>
    %22 = vector.multi_reduction <add>, %17, %cst_19 [1] : vector<4x32xf32> to vector<4xf32>
    %23 = vector.shape_cast %22 : vector<4xf32> to vector<4x1xf32>
    %cst_20 = arith.constant 3.200000e+01 : f32
    %24 = vector.broadcast %cst_20 : f32 to vector<4x1xf32>
    %25 = arith.divf %23, %24 : vector<4x1xf32>
    %26 = vector.broadcast %25 : vector<4x1xf32> to vector<4x32xf32>
    %27 = arith.subf %17, %26 : vector<4x32xf32>
    %28 = arith.mulf %27, %27 : vector<4x32xf32>
    %cst_21 = arith.constant dense<0.000000e+00> : vector<4xf32>
    %29 = vector.multi_reduction <add>, %28, %cst_21 [1] : vector<4x32xf32> to vector<4xf32>
    %30 = vector.shape_cast %29 : vector<4xf32> to vector<4x1xf32>
    %cst_22 = arith.constant 3.200000e+01 : f32
    %31 = vector.broadcast %cst_22 : f32 to vector<4x1xf32>
    %32 = arith.divf %30, %31 : vector<4x1xf32>
    %33 = vector.broadcast %25 : vector<4x1xf32> to vector<4x32xf32>
    %34 = arith.subf %17, %33 : vector<4x32xf32>
    %cst_23 = arith.constant 9.99999974E-6 : f32
    %35 = vector.broadcast %cst_23 : f32 to vector<4x1xf32>
    %36 = arith.addf %32, %35 : vector<4x1xf32>
    %37 = math.rsqrt %36 : vector<4x1xf32>
    %38 = vector.broadcast %37 : vector<4x1xf32> to vector<4x32xf32>
    %39 = arith.mulf %34, %38 : vector<4x32xf32>
    %40 = vector.broadcast %19 : vector<1x32xf32> to vector<4x32xf32>
    %41 = arith.mulf %39, %40 : vector<4x32xf32>
    %42 = vector.broadcast %21 : vector<1x32xf32> to vector<4x32xf32>
    %43 = arith.addf %41, %42 : vector<4x32xf32>
    %c0_24 = arith.constant 0 : index
    %c0_25 = arith.constant 0 : index
    %c0_26 = arith.constant 0 : index
    %44 = vector.load %arg8[%c0_24, %c0_25, %c0_26] : memref<2x32x96xf32, #tpu.memory_space<vmem>>, vector<1x32x96xf32>
    %45 = vector.shape_cast %44 : vector<1x32x96xf32> to vector<32x96xf32>
    %cst_27 = arith.constant dense<0.000000e+00> : vector<4x96xf32>
    %46 = tpu.matmul %43, %45, %cst_27 {dimension_numbers = #tpu.dot_dimension_numbers<[1], [0], [0], [1], [0, 0, 1, 1], [], []>} : vector<4x32xf32>, vector<32x96xf32>, vector<4x96xf32> -> vector<4x96xf32>
    %c0_28 = arith.constant 0 : index
    %c0_29 = arith.constant 0 : index
    %c0_30 = arith.constant 0 : index
    %47 = vector.load %arg9[%c0_28, %c0_29, %c0_30] : memref<2x32x32xf32, #tpu.memory_space<vmem>>, vector<1x32x32xf32>
    %48 = vector.shape_cast %47 : vector<1x32x32xf32> to vector<32x32xf32>
    %cst_31 = arith.constant 0.000000e+00 : f32
    %49 = vector.broadcast %cst_31 : f32 to vector<4x32xf32>
    %50 = vector.extract_strided_slice %46 {offsets = [0, 0], sizes = [4, 8], strides = [1, 1]} : vector<4x96xf32> to vector<4x8xf32>
    %cst_32 = arith.constant 0.353553385 : f32
    %51 = vector.broadcast %cst_32 : f32 to vector<4x8xf32>
    %52 = arith.mulf %50, %51 : vector<4x8xf32>
    %53 = vector.extract_strided_slice %46 {offsets = [0, 32], sizes = [4, 8], strides = [1, 1]} : vector<4x96xf32> to vector<4x8xf32>
    %54 = vector.extract_strided_slice %46 {offsets = [0, 64], sizes = [4, 8], strides = [1, 1]} : vector<4x96xf32> to vector<4x8xf32>
    %cst_33 = arith.constant dense<0.000000e+00> : vector<4x4xf32>
    %55 = tpu.matmul %52, %53, %cst_33 {dimension_numbers = #tpu.dot_dimension_numbers<[1], [1], [0], [0], [0, 0, 1, 0], [], []>} : vector<4x8xf32>, vector<4x8xf32>, vector<4x4xf32> -> vector<4x4xf32>
    %cst_34 = arith.constant dense<0xFF800000> : vector<4xf32>
    %56 = vector.multi_reduction <maximumf>, %55, %cst_34 [1] : vector<4x4xf32> to vector<4xf32>
    %57 = vector.shape_cast %56 : vector<4xf32> to vector<4x1xf32>
    %58 = vector.broadcast %57 : vector<4x1xf32> to vector<4x4xf32>
    %59 = arith.subf %55, %58 : vector<4x4xf32>
    %60 = math.exp %59 : vector<4x4xf32>
    %cst_35 = arith.constant dense<0.000000e+00> : vector<4xf32>
    %61 = vector.multi_reduction <add>, %60, %cst_35 [1] : vector<4x4xf32> to vector<4xf32>
    %62 = vector.shape_cast %61 : vector<4xf32> to vector<4x1xf32>
    %63 = vector.broadcast %62 : vector<4x1xf32> to vector<4x4xf32>
    %64 = arith.divf %60, %63 : vector<4x4xf32>
    %cst_36 = arith.constant dense<0.000000e+00> : vector<4x8xf32>
    %65 = tpu.matmul %64, %54, %cst_36 {dimension_numbers = #tpu.dot_dimension_numbers<[1], [0], [0], [1], [0, 0, 1, 1], [], []>} : vector<4x4xf32>, vector<4x8xf32>, vector<4x8xf32> -> vector<4x8xf32>
    %66 = vector.extract_strided_slice %48 {offsets = [0, 0], sizes = [8, 32], strides = [1, 1]} : vector<32x32xf32> to vector<8x32xf32>
    %cst_37 = arith.constant dense<0.000000e+00> : vector<4x32xf32>
    %67 = tpu.matmul %65, %66, %cst_37 {dimension_numbers = #tpu.dot_dimension_numbers<[1], [0], [0], [1], [0, 0, 1, 1], [], []>} : vector<4x8xf32>, vector<8x32xf32>, vector<4x32xf32> -> vector<4x32xf32>
    %68 = arith.addf %49, %67 : vector<4x32xf32>
    %69 = vector.extract_strided_slice %46 {offsets = [0, 8], sizes = [4, 8], strides = [1, 1]} : vector<4x96xf32> to vector<4x8xf32>
    %cst_38 = arith.constant 0.353553385 : f32
    %70 = vector.broadcast %cst_38 : f32 to vector<4x8xf32>
    %71 = arith.mulf %69, %70 : vector<4x8xf32>
    %72 = vector.extract_strided_slice %46 {offsets = [0, 40], sizes = [4, 8], strides = [1, 1]} : vector<4x96xf32> to vector<4x8xf32>
    %73 = vector.extract_strided_slice %46 {offsets = [0, 72], sizes = [4, 8], strides = [1, 1]} : vector<4x96xf32> to vector<4x8xf32>
    %cst_39 = arith.constant dense<0.000000e+00> : vector<4x4xf32>
    %74 = tpu.matmul %71, %72, %cst_39 {dimension_numbers = #tpu.dot_dimension_numbers<[1], [1], [0], [0], [0, 0, 1, 0], [], []>} : vector<4x8xf32>, vector<4x8xf32>, vector<4x4xf32> -> vector<4x4xf32>
    %cst_40 = arith.constant dense<0xFF800000> : vector<4xf32>
    %75 = vector.multi_reduction <maximumf>, %74, %cst_40 [1] : vector<4x4xf32> to vector<4xf32>
    %76 = vector.shape_cast %75 : vector<4xf32> to vector<4x1xf32>
    %77 = vector.broadcast %76 : vector<4x1xf32> to vector<4x4xf32>
    %78 = arith.subf %74, %77 : vector<4x4xf32>
    %79 = math.exp %78 : vector<4x4xf32>
    %cst_41 = arith.constant dense<0.000000e+00> : vector<4xf32>
    %80 = vector.multi_reduction <add>, %79, %cst_41 [1] : vector<4x4xf32> to vector<4xf32>
    %81 = vector.shape_cast %80 : vector<4xf32> to vector<4x1xf32>
    %82 = vector.broadcast %81 : vector<4x1xf32> to vector<4x4xf32>
    %83 = arith.divf %79, %82 : vector<4x4xf32>
    %cst_42 = arith.constant dense<0.000000e+00> : vector<4x8xf32>
    %84 = tpu.matmul %83, %73, %cst_42 {dimension_numbers = #tpu.dot_dimension_numbers<[1], [0], [0], [1], [0, 0, 1, 1], [], []>} : vector<4x4xf32>, vector<4x8xf32>, vector<4x8xf32> -> vector<4x8xf32>
    %85 = vector.extract_strided_slice %48 {offsets = [8, 0], sizes = [8, 32], strides = [1, 1]} : vector<32x32xf32> to vector<8x32xf32>
    %cst_43 = arith.constant dense<0.000000e+00> : vector<4x32xf32>
    %86 = tpu.matmul %84, %85, %cst_43 {dimension_numbers = #tpu.dot_dimension_numbers<[1], [0], [0], [1], [0, 0, 1, 1], [], []>} : vector<4x8xf32>, vector<8x32xf32>, vector<4x32xf32> -> vector<4x32xf32>
    %87 = arith.addf %68, %86 : vector<4x32xf32>
    %88 = vector.extract_strided_slice %46 {offsets = [0, 16], sizes = [4, 8], strides = [1, 1]} : vector<4x96xf32> to vector<4x8xf32>
    %cst_44 = arith.constant 0.353553385 : f32
    %89 = vector.broadcast %cst_44 : f32 to vector<4x8xf32>
    %90 = arith.mulf %88, %89 : vector<4x8xf32>
    %91 = vector.extract_strided_slice %46 {offsets = [0, 48], sizes = [4, 8], strides = [1, 1]} : vector<4x96xf32> to vector<4x8xf32>
    %92 = vector.extract_strided_slice %46 {offsets = [0, 80], sizes = [4, 8], strides = [1, 1]} : vector<4x96xf32> to vector<4x8xf32>
    %cst_45 = arith.constant dense<0.000000e+00> : vector<4x4xf32>
    %93 = tpu.matmul %90, %91, %cst_45 {dimension_numbers = #tpu.dot_dimension_numbers<[1], [1], [0], [0], [0, 0, 1, 0], [], []>} : vector<4x8xf32>, vector<4x8xf32>, vector<4x4xf32> -> vector<4x4xf32>
    %cst_46 = arith.constant dense<0xFF800000> : vector<4xf32>
    %94 = vector.multi_reduction <maximumf>, %93, %cst_46 [1] : vector<4x4xf32> to vector<4xf32>
    %95 = vector.shape_cast %94 : vector<4xf32> to vector<4x1xf32>
    %96 = vector.broadcast %95 : vector<4x1xf32> to vector<4x4xf32>
    %97 = arith.subf %93, %96 : vector<4x4xf32>
    %98 = math.exp %97 : vector<4x4xf32>
    %cst_47 = arith.constant dense<0.000000e+00> : vector<4xf32>
    %99 = vector.multi_reduction <add>, %98, %cst_47 [1] : vector<4x4xf32> to vector<4xf32>
    %100 = vector.shape_cast %99 : vector<4xf32> to vector<4x1xf32>
    %101 = vector.broadcast %100 : vector<4x1xf32> to vector<4x4xf32>
    %102 = arith.divf %98, %101 : vector<4x4xf32>
    %cst_48 = arith.constant dense<0.000000e+00> : vector<4x8xf32>
    %103 = tpu.matmul %102, %92, %cst_48 {dimension_numbers = #tpu.dot_dimension_numbers<[1], [0], [0], [1], [0, 0, 1, 1], [], []>} : vector<4x4xf32>, vector<4x8xf32>, vector<4x8xf32> -> vector<4x8xf32>
    %104 = vector.extract_strided_slice %48 {offsets = [16, 0], sizes = [8, 32], strides = [1, 1]} : vector<32x32xf32> to vector<8x32xf32>
    %cst_49 = arith.constant dense<0.000000e+00> : vector<4x32xf32>
    %105 = tpu.matmul %103, %104, %cst_49 {dimension_numbers = #tpu.dot_dimension_numbers<[1], [0], [0], [1], [0, 0, 1, 1], [], []>} : vector<4x8xf32>, vector<8x32xf32>, vector<4x32xf32> -> vector<4x32xf32>
    %106 = arith.addf %87, %105 : vector<4x32xf32>
    %107 = vector.extract_strided_slice %46 {offsets = [0, 24], sizes = [4, 8], strides = [1, 1]} : vector<4x96xf32> to vector<4x8xf32>
    %cst_50 = arith.constant 0.353553385 : f32
    %108 = vector.broadcast %cst_50 : f32 to vector<4x8xf32>
    %109 = arith.mulf %107, %108 : vector<4x8xf32>
    %110 = vector.extract_strided_slice %46 {offsets = [0, 56], sizes = [4, 8], strides = [1, 1]} : vector<4x96xf32> to vector<4x8xf32>
    %111 = vector.extract_strided_slice %46 {offsets = [0, 88], sizes = [4, 8], strides = [1, 1]} : vector<4x96xf32> to vector<4x8xf32>
    %cst_51 = arith.constant dense<0.000000e+00> : vector<4x4xf32>
    %112 = tpu.matmul %109, %110, %cst_51 {dimension_numbers = #tpu.dot_dimension_numbers<[1], [1], [0], [0], [0, 0, 1, 0], [], []>} : vector<4x8xf32>, vector<4x8xf32>, vector<4x4xf32> -> vector<4x4xf32>
    %cst_52 = arith.constant dense<0xFF800000> : vector<4xf32>
    %113 = vector.multi_reduction <maximumf>, %112, %cst_52 [1] : vector<4x4xf32> to vector<4xf32>
    %114 = vector.shape_cast %113 : vector<4xf32> to vector<4x1xf32>
    %115 = vector.broadcast %114 : vector<4x1xf32> to vector<4x4xf32>
    %116 = arith.subf %112, %115 : vector<4x4xf32>
    %117 = math.exp %116 : vector<4x4xf32>
    %cst_53 = arith.constant dense<0.000000e+00> : vector<4xf32>
    %118 = vector.multi_reduction <add>, %117, %cst_53 [1] : vector<4x4xf32> to vector<4xf32>
    %119 = vector.shape_cast %118 : vector<4xf32> to vector<4x1xf32>
    %120 = vector.broadcast %119 : vector<4x1xf32> to vector<4x4xf32>
    %121 = arith.divf %117, %120 : vector<4x4xf32>
    %cst_54 = arith.constant dense<0.000000e+00> : vector<4x8xf32>
    %122 = tpu.matmul %121, %111, %cst_54 {dimension_numbers = #tpu.dot_dimension_numbers<[1], [0], [0], [1], [0, 0, 1, 1], [], []>} : vector<4x4xf32>, vector<4x8xf32>, vector<4x8xf32> -> vector<4x8xf32>
    %123 = vector.extract_strided_slice %48 {offsets = [24, 0], sizes = [8, 32], strides = [1, 1]} : vector<32x32xf32> to vector<8x32xf32>
    %cst_55 = arith.constant dense<0.000000e+00> : vector<4x32xf32>
    %124 = tpu.matmul %122, %123, %cst_55 {dimension_numbers = #tpu.dot_dimension_numbers<[1], [0], [0], [1], [0, 0, 1, 1], [], []>} : vector<4x8xf32>, vector<8x32xf32>, vector<4x32xf32> -> vector<4x32xf32>
    %125 = arith.addf %106, %124 : vector<4x32xf32>
    %126 = arith.addf %17, %125 : vector<4x32xf32>
    %c0_56 = arith.constant 0 : index
    %c0_57 = arith.constant 0 : index
    %c0_58 = arith.constant 0 : index
    %127 = vector.load %arg10[%c0_56, %c0_57, %c0_58] : memref<2x1x32xf32, #tpu.memory_space<vmem>>, vector<1x1x32xf32>
    %128 = vector.shape_cast %127 : vector<1x1x32xf32> to vector<1x32xf32>
    %129 = vector.broadcast %128 : vector<1x32xf32> to vector<4x32xf32>
    %130 = arith.addf %126, %129 : vector<4x32xf32>
    %c0_59 = arith.constant 0 : index
    %c0_60 = arith.constant 0 : index
    %c0_61 = arith.constant 0 : index
    %131 = vector.load %arg11[%c0_59, %c0_60, %c0_61] : memref<2x1x32xf32, #tpu.memory_space<vmem>>, vector<1x1x32xf32>
    %132 = vector.shape_cast %131 : vector<1x1x32xf32> to vector<1x32xf32>
    %c0_62 = arith.constant 0 : index
    %c0_63 = arith.constant 0 : index
    %c0_64 = arith.constant 0 : index
    %133 = vector.load %arg12[%c0_62, %c0_63, %c0_64] : memref<2x1x32xf32, #tpu.memory_space<vmem>>, vector<1x1x32xf32>
    %134 = vector.shape_cast %133 : vector<1x1x32xf32> to vector<1x32xf32>
    %cst_65 = arith.constant dense<0.000000e+00> : vector<4xf32>
    %135 = vector.multi_reduction <add>, %130, %cst_65 [1] : vector<4x32xf32> to vector<4xf32>
    %136 = vector.shape_cast %135 : vector<4xf32> to vector<4x1xf32>
    %cst_66 = arith.constant 3.200000e+01 : f32
    %137 = vector.broadcast %cst_66 : f32 to vector<4x1xf32>
    %138 = arith.divf %136, %137 : vector<4x1xf32>
    %139 = vector.broadcast %138 : vector<4x1xf32> to vector<4x32xf32>
    %140 = arith.subf %130, %139 : vector<4x32xf32>
    %141 = arith.mulf %140, %140 : vector<4x32xf32>
    %cst_67 = arith.constant dense<0.000000e+00> : vector<4xf32>
    %142 = vector.multi_reduction <add>, %141, %cst_67 [1] : vector<4x32xf32> to vector<4xf32>
    %143 = vector.shape_cast %142 : vector<4xf32> to vector<4x1xf32>
    %cst_68 = arith.constant 3.200000e+01 : f32
    %144 = vector.broadcast %cst_68 : f32 to vector<4x1xf32>
    %145 = arith.divf %143, %144 : vector<4x1xf32>
    %146 = vector.broadcast %138 : vector<4x1xf32> to vector<4x32xf32>
    %147 = arith.subf %130, %146 : vector<4x32xf32>
    %cst_69 = arith.constant 9.99999974E-6 : f32
    %148 = vector.broadcast %cst_69 : f32 to vector<4x1xf32>
    %149 = arith.addf %145, %148 : vector<4x1xf32>
    %150 = math.rsqrt %149 : vector<4x1xf32>
    %151 = vector.broadcast %150 : vector<4x1xf32> to vector<4x32xf32>
    %152 = arith.mulf %147, %151 : vector<4x32xf32>
    %153 = vector.broadcast %132 : vector<1x32xf32> to vector<4x32xf32>
    %154 = arith.mulf %152, %153 : vector<4x32xf32>
    %155 = vector.broadcast %134 : vector<1x32xf32> to vector<4x32xf32>
    %156 = arith.addf %154, %155 : vector<4x32xf32>
    %c0_70 = arith.constant 0 : index
    %c0_71 = arith.constant 0 : index
    %c0_72 = arith.constant 0 : index
    %157 = vector.load %arg13[%c0_70, %c0_71, %c0_72] : memref<2x32x64xf32, #tpu.memory_space<vmem>>, vector<1x32x64xf32>
    %158 = vector.shape_cast %157 : vector<1x32x64xf32> to vector<32x64xf32>
    %cst_73 = arith.constant dense<0.000000e+00> : vector<4x64xf32>
    %159 = tpu.matmul %156, %158, %cst_73 {dimension_numbers = #tpu.dot_dimension_numbers<[1], [0], [0], [1], [0, 0, 1, 1], [], []>} : vector<4x32xf32>, vector<32x64xf32>, vector<4x64xf32> -> vector<4x64xf32>
    %c0_74 = arith.constant 0 : index
    %c0_75 = arith.constant 0 : index
    %c0_76 = arith.constant 0 : index
    %160 = vector.load %arg14[%c0_74, %c0_75, %c0_76] : memref<2x1x64xf32, #tpu.memory_space<vmem>>, vector<1x1x64xf32>
    %161 = vector.shape_cast %160 : vector<1x1x64xf32> to vector<1x64xf32>
    %162 = vector.broadcast %161 : vector<1x64xf32> to vector<4x64xf32>
    %163 = arith.addf %159, %162 : vector<4x64xf32>
    %164 = arith.mulf %163, %163 : vector<4x64xf32>
    %165 = arith.mulf %163, %164 : vector<4x64xf32>
    %cst_77 = arith.constant 4.471500e-02 : f32
    %166 = vector.broadcast %cst_77 : f32 to vector<4x64xf32>
    %167 = arith.mulf %166, %165 : vector<4x64xf32>
    %168 = arith.addf %163, %167 : vector<4x64xf32>
    %cst_78 = arith.constant 0.797884583 : f32
    %169 = vector.broadcast %cst_78 : f32 to vector<4x64xf32>
    %170 = arith.mulf %169, %168 : vector<4x64xf32>
    %171 = math.tanh %170 : vector<4x64xf32>
    %cst_79 = arith.constant 1.000000e+00 : f32
    %172 = vector.broadcast %cst_79 : f32 to vector<4x64xf32>
    %173 = arith.addf %172, %171 : vector<4x64xf32>
    %cst_80 = arith.constant 5.000000e-01 : f32
    %174 = vector.broadcast %cst_80 : f32 to vector<4x64xf32>
    %175 = arith.mulf %174, %173 : vector<4x64xf32>
    %176 = arith.mulf %163, %175 : vector<4x64xf32>
    %c0_81 = arith.constant 0 : index
    %c0_82 = arith.constant 0 : index
    %c0_83 = arith.constant 0 : index
    %177 = vector.load %arg15[%c0_81, %c0_82, %c0_83] : memref<2x64x32xf32, #tpu.memory_space<vmem>>, vector<1x64x32xf32>
    %178 = vector.shape_cast %177 : vector<1x64x32xf32> to vector<64x32xf32>
    %cst_84 = arith.constant dense<0.000000e+00> : vector<4x32xf32>
    %179 = tpu.matmul %176, %178, %cst_84 {dimension_numbers = #tpu.dot_dimension_numbers<[1], [0], [0], [1], [0, 0, 1, 1], [], []>} : vector<4x64xf32>, vector<64x32xf32>, vector<4x32xf32> -> vector<4x32xf32>
    %180 = arith.addf %130, %179 : vector<4x32xf32>
    %c0_85 = arith.constant 0 : index
    %c0_86 = arith.constant 0 : index
    %c0_87 = arith.constant 0 : index
    %181 = vector.load %arg16[%c0_85, %c0_86, %c0_87] : memref<2x1x32xf32, #tpu.memory_space<vmem>>, vector<1x1x32xf32>
    %182 = vector.shape_cast %181 : vector<1x1x32xf32> to vector<1x32xf32>
    %183 = vector.broadcast %182 : vector<1x32xf32> to vector<4x32xf32>
    %184 = arith.addf %180, %183 : vector<4x32xf32>
    %c1 = arith.constant 1 : index
    %c0_88 = arith.constant 0 : index
    %c0_89 = arith.constant 0 : index
    %185 = vector.load %arg6[%c1, %c0_88, %c0_89] : memref<2x1x32xf32, #tpu.memory_space<vmem>>, vector<1x1x32xf32>
    %186 = vector.shape_cast %185 : vector<1x1x32xf32> to vector<1x32xf32>
    %c1_90 = arith.constant 1 : index
    %c0_91 = arith.constant 0 : index
    %c0_92 = arith.constant 0 : index
    %187 = vector.load %arg7[%c1_90, %c0_91, %c0_92] : memref<2x1x32xf32, #tpu.memory_space<vmem>>, vector<1x1x32xf32>
    %188 = vector.shape_cast %187 : vector<1x1x32xf32> to vector<1x32xf32>
    %cst_93 = arith.constant dense<0.000000e+00> : vector<4xf32>
    %189 = vector.multi_reduction <add>, %184, %cst_93 [1] : vector<4x32xf32> to vector<4xf32>
    %190 = vector.shape_cast %189 : vector<4xf32> to vector<4x1xf32>
    %cst_94 = arith.constant 3.200000e+01 : f32
    %191 = vector.broadcast %cst_94 : f32 to vector<4x1xf32>
    %192 = arith.divf %190, %191 : vector<4x1xf32>
    %193 = vector.broadcast %192 : vector<4x1xf32> to vector<4x32xf32>
    %194 = arith.subf %184, %193 : vector<4x32xf32>
    %195 = arith.mulf %194, %194 : vector<4x32xf32>
    %cst_95 = arith.constant dense<0.000000e+00> : vector<4xf32>
    %196 = vector.multi_reduction <add>, %195, %cst_95 [1] : vector<4x32xf32> to vector<4xf32>
    %197 = vector.shape_cast %196 : vector<4xf32> to vector<4x1xf32>
    %cst_96 = arith.constant 3.200000e+01 : f32
    %198 = vector.broadcast %cst_96 : f32 to vector<4x1xf32>
    %199 = arith.divf %197, %198 : vector<4x1xf32>
    %200 = vector.broadcast %192 : vector<4x1xf32> to vector<4x32xf32>
    %201 = arith.subf %184, %200 : vector<4x32xf32>
    %cst_97 = arith.constant 9.99999974E-6 : f32
    %202 = vector.broadcast %cst_97 : f32 to vector<4x1xf32>
    %203 = arith.addf %199, %202 : vector<4x1xf32>
    %204 = math.rsqrt %203 : vector<4x1xf32>
    %205 = vector.broadcast %204 : vector<4x1xf32> to vector<4x32xf32>
    %206 = arith.mulf %201, %205 : vector<4x32xf32>
    %207 = vector.broadcast %186 : vector<1x32xf32> to vector<4x32xf32>
    %208 = arith.mulf %206, %207 : vector<4x32xf32>
    %209 = vector.broadcast %188 : vector<1x32xf32> to vector<4x32xf32>
    %210 = arith.addf %208, %209 : vector<4x32xf32>
    %c1_98 = arith.constant 1 : index
    %c0_99 = arith.constant 0 : index
    %c0_100 = arith.constant 0 : index
    %211 = vector.load %arg8[%c1_98, %c0_99, %c0_100] : memref<2x32x96xf32, #tpu.memory_space<vmem>>, vector<1x32x96xf32>
    %212 = vector.shape_cast %211 : vector<1x32x96xf32> to vector<32x96xf32>
    %cst_101 = arith.constant dense<0.000000e+00> : vector<4x96xf32>
    %213 = tpu.matmul %210, %212, %cst_101 {dimension_numbers = #tpu.dot_dimension_numbers<[1], [0], [0], [1], [0, 0, 1, 1], [], []>} : vector<4x32xf32>, vector<32x96xf32>, vector<4x96xf32> -> vector<4x96xf32>
    %c1_102 = arith.constant 1 : index
    %c0_103 = arith.constant 0 : index
    %c0_104 = arith.constant 0 : index
    %214 = vector.load %arg9[%c1_102, %c0_103, %c0_104] : memref<2x32x32xf32, #tpu.memory_space<vmem>>, vector<1x32x32xf32>
    %215 = vector.shape_cast %214 : vector<1x32x32xf32> to vector<32x32xf32>
    %cst_105 = arith.constant 0.000000e+00 : f32
    %216 = vector.broadcast %cst_105 : f32 to vector<4x32xf32>
    %217 = vector.extract_strided_slice %213 {offsets = [0, 0], sizes = [4, 8], strides = [1, 1]} : vector<4x96xf32> to vector<4x8xf32>
    %cst_106 = arith.constant 0.353553385 : f32
    %218 = vector.broadcast %cst_106 : f32 to vector<4x8xf32>
    %219 = arith.mulf %217, %218 : vector<4x8xf32>
    %220 = vector.extract_strided_slice %213 {offsets = [0, 32], sizes = [4, 8], strides = [1, 1]} : vector<4x96xf32> to vector<4x8xf32>
    %221 = vector.extract_strided_slice %213 {offsets = [0, 64], sizes = [4, 8], strides = [1, 1]} : vector<4x96xf32> to vector<4x8xf32>
    %cst_107 = arith.constant dense<0.000000e+00> : vector<4x4xf32>
    %222 = tpu.matmul %219, %220, %cst_107 {dimension_numbers = #tpu.dot_dimension_numbers<[1], [1], [0], [0], [0, 0, 1, 0], [], []>} : vector<4x8xf32>, vector<4x8xf32>, vector<4x4xf32> -> vector<4x4xf32>
    %cst_108 = arith.constant dense<0xFF800000> : vector<4xf32>
    %223 = vector.multi_reduction <maximumf>, %222, %cst_108 [1] : vector<4x4xf32> to vector<4xf32>
    %224 = vector.shape_cast %223 : vector<4xf32> to vector<4x1xf32>
    %225 = vector.broadcast %224 : vector<4x1xf32> to vector<4x4xf32>
    %226 = arith.subf %222, %225 : vector<4x4xf32>
    %227 = math.exp %226 : vector<4x4xf32>
    %cst_109 = arith.constant dense<0.000000e+00> : vector<4xf32>
    %228 = vector.multi_reduction <add>, %227, %cst_109 [1] : vector<4x4xf32> to vector<4xf32>
    %229 = vector.shape_cast %228 : vector<4xf32> to vector<4x1xf32>
    %230 = vector.broadcast %229 : vector<4x1xf32> to vector<4x4xf32>
    %231 = arith.divf %227, %230 : vector<4x4xf32>
    %cst_110 = arith.constant dense<0.000000e+00> : vector<4x8xf32>
    %232 = tpu.matmul %231, %221, %cst_110 {dimension_numbers = #tpu.dot_dimension_numbers<[1], [0], [0], [1], [0, 0, 1, 1], [], []>} : vector<4x4xf32>, vector<4x8xf32>, vector<4x8xf32> -> vector<4x8xf32>
    %233 = vector.extract_strided_slice %215 {offsets = [0, 0], sizes = [8, 32], strides = [1, 1]} : vector<32x32xf32> to vector<8x32xf32>
    %cst_111 = arith.constant dense<0.000000e+00> : vector<4x32xf32>
    %234 = tpu.matmul %232, %233, %cst_111 {dimension_numbers = #tpu.dot_dimension_numbers<[1], [0], [0], [1], [0, 0, 1, 1], [], []>} : vector<4x8xf32>, vector<8x32xf32>, vector<4x32xf32> -> vector<4x32xf32>
    %235 = arith.addf %216, %234 : vector<4x32xf32>
    %236 = vector.extract_strided_slice %213 {offsets = [0, 8], sizes = [4, 8], strides = [1, 1]} : vector<4x96xf32> to vector<4x8xf32>
    %cst_112 = arith.constant 0.353553385 : f32
    %237 = vector.broadcast %cst_112 : f32 to vector<4x8xf32>
    %238 = arith.mulf %236, %237 : vector<4x8xf32>
    %239 = vector.extract_strided_slice %213 {offsets = [0, 40], sizes = [4, 8], strides = [1, 1]} : vector<4x96xf32> to vector<4x8xf32>
    %240 = vector.extract_strided_slice %213 {offsets = [0, 72], sizes = [4, 8], strides = [1, 1]} : vector<4x96xf32> to vector<4x8xf32>
    %cst_113 = arith.constant dense<0.000000e+00> : vector<4x4xf32>
    %241 = tpu.matmul %238, %239, %cst_113 {dimension_numbers = #tpu.dot_dimension_numbers<[1], [1], [0], [0], [0, 0, 1, 0], [], []>} : vector<4x8xf32>, vector<4x8xf32>, vector<4x4xf32> -> vector<4x4xf32>
    %cst_114 = arith.constant dense<0xFF800000> : vector<4xf32>
    %242 = vector.multi_reduction <maximumf>, %241, %cst_114 [1] : vector<4x4xf32> to vector<4xf32>
    %243 = vector.shape_cast %242 : vector<4xf32> to vector<4x1xf32>
    %244 = vector.broadcast %243 : vector<4x1xf32> to vector<4x4xf32>
    %245 = arith.subf %241, %244 : vector<4x4xf32>
    %246 = math.exp %245 : vector<4x4xf32>
    %cst_115 = arith.constant dense<0.000000e+00> : vector<4xf32>
    %247 = vector.multi_reduction <add>, %246, %cst_115 [1] : vector<4x4xf32> to vector<4xf32>
    %248 = vector.shape_cast %247 : vector<4xf32> to vector<4x1xf32>
    %249 = vector.broadcast %248 : vector<4x1xf32> to vector<4x4xf32>
    %250 = arith.divf %246, %249 : vector<4x4xf32>
    %cst_116 = arith.constant dense<0.000000e+00> : vector<4x8xf32>
    %251 = tpu.matmul %250, %240, %cst_116 {dimension_numbers = #tpu.dot_dimension_numbers<[1], [0], [0], [1], [0, 0, 1, 1], [], []>} : vector<4x4xf32>, vector<4x8xf32>, vector<4x8xf32> -> vector<4x8xf32>
    %252 = vector.extract_strided_slice %215 {offsets = [8, 0], sizes = [8, 32], strides = [1, 1]} : vector<32x32xf32> to vector<8x32xf32>
    %cst_117 = arith.constant dense<0.000000e+00> : vector<4x32xf32>
    %253 = tpu.matmul %251, %252, %cst_117 {dimension_numbers = #tpu.dot_dimension_numbers<[1], [0], [0], [1], [0, 0, 1, 1], [], []>} : vector<4x8xf32>, vector<8x32xf32>, vector<4x32xf32> -> vector<4x32xf32>
    %254 = arith.addf %235, %253 : vector<4x32xf32>
    %255 = vector.extract_strided_slice %213 {offsets = [0, 16], sizes = [4, 8], strides = [1, 1]} : vector<4x96xf32> to vector<4x8xf32>
    %cst_118 = arith.constant 0.353553385 : f32
    %256 = vector.broadcast %cst_118 : f32 to vector<4x8xf32>
    %257 = arith.mulf %255, %256 : vector<4x8xf32>
    %258 = vector.extract_strided_slice %213 {offsets = [0, 48], sizes = [4, 8], strides = [1, 1]} : vector<4x96xf32> to vector<4x8xf32>
    %259 = vector.extract_strided_slice %213 {offsets = [0, 80], sizes = [4, 8], strides = [1, 1]} : vector<4x96xf32> to vector<4x8xf32>
    %cst_119 = arith.constant dense<0.000000e+00> : vector<4x4xf32>
    %260 = tpu.matmul %257, %258, %cst_119 {dimension_numbers = #tpu.dot_dimension_numbers<[1], [1], [0], [0], [0, 0, 1, 0], [], []>} : vector<4x8xf32>, vector<4x8xf32>, vector<4x4xf32> -> vector<4x4xf32>
    %cst_120 = arith.constant dense<0xFF800000> : vector<4xf32>
    %261 = vector.multi_reduction <maximumf>, %260, %cst_120 [1] : vector<4x4xf32> to vector<4xf32>
    %262 = vector.shape_cast %261 : vector<4xf32> to vector<4x1xf32>
    %263 = vector.broadcast %262 : vector<4x1xf32> to vector<4x4xf32>
    %264 = arith.subf %260, %263 : vector<4x4xf32>
    %265 = math.exp %264 : vector<4x4xf32>
    %cst_121 = arith.constant dense<0.000000e+00> : vector<4xf32>
    %266 = vector.multi_reduction <add>, %265, %cst_121 [1] : vector<4x4xf32> to vector<4xf32>
    %267 = vector.shape_cast %266 : vector<4xf32> to vector<4x1xf32>
    %268 = vector.broadcast %267 : vector<4x1xf32> to vector<4x4xf32>
    %269 = arith.divf %265, %268 : vector<4x4xf32>
    %cst_122 = arith.constant dense<0.000000e+00> : vector<4x8xf32>
    %270 = tpu.matmul %269, %259, %cst_122 {dimension_numbers = #tpu.dot_dimension_numbers<[1], [0], [0], [1], [0, 0, 1, 1], [], []>} : vector<4x4xf32>, vector<4x8xf32>, vector<4x8xf32> -> vector<4x8xf32>
    %271 = vector.extract_strided_slice %215 {offsets = [16, 0], sizes = [8, 32], strides = [1, 1]} : vector<32x32xf32> to vector<8x32xf32>
    %cst_123 = arith.constant dense<0.000000e+00> : vector<4x32xf32>
    %272 = tpu.matmul %270, %271, %cst_123 {dimension_numbers = #tpu.dot_dimension_numbers<[1], [0], [0], [1], [0, 0, 1, 1], [], []>} : vector<4x8xf32>, vector<8x32xf32>, vector<4x32xf32> -> vector<4x32xf32>
    %273 = arith.addf %254, %272 : vector<4x32xf32>
    %274 = vector.extract_strided_slice %213 {offsets = [0, 24], sizes = [4, 8], strides = [1, 1]} : vector<4x96xf32> to vector<4x8xf32>
    %cst_124 = arith.constant 0.353553385 : f32
    %275 = vector.broadcast %cst_124 : f32 to vector<4x8xf32>
    %276 = arith.mulf %274, %275 : vector<4x8xf32>
    %277 = vector.extract_strided_slice %213 {offsets = [0, 56], sizes = [4, 8], strides = [1, 1]} : vector<4x96xf32> to vector<4x8xf32>
    %278 = vector.extract_strided_slice %213 {offsets = [0, 88], sizes = [4, 8], strides = [1, 1]} : vector<4x96xf32> to vector<4x8xf32>
    %cst_125 = arith.constant dense<0.000000e+00> : vector<4x4xf32>
    %279 = tpu.matmul %276, %277, %cst_125 {dimension_numbers = #tpu.dot_dimension_numbers<[1], [1], [0], [0], [0, 0, 1, 0], [], []>} : vector<4x8xf32>, vector<4x8xf32>, vector<4x4xf32> -> vector<4x4xf32>
    %cst_126 = arith.constant dense<0xFF800000> : vector<4xf32>
    %280 = vector.multi_reduction <maximumf>, %279, %cst_126 [1] : vector<4x4xf32> to vector<4xf32>
    %281 = vector.shape_cast %280 : vector<4xf32> to vector<4x1xf32>
    %282 = vector.broadcast %281 : vector<4x1xf32> to vector<4x4xf32>
    %283 = arith.subf %279, %282 : vector<4x4xf32>
    %284 = math.exp %283 : vector<4x4xf32>
    %cst_127 = arith.constant dense<0.000000e+00> : vector<4xf32>
    %285 = vector.multi_reduction <add>, %284, %cst_127 [1] : vector<4x4xf32> to vector<4xf32>
    %286 = vector.shape_cast %285 : vector<4xf32> to vector<4x1xf32>
    %287 = vector.broadcast %286 : vector<4x1xf32> to vector<4x4xf32>
    %288 = arith.divf %284, %287 : vector<4x4xf32>
    %cst_128 = arith.constant dense<0.000000e+00> : vector<4x8xf32>
    %289 = tpu.matmul %288, %278, %cst_128 {dimension_numbers = #tpu.dot_dimension_numbers<[1], [0], [0], [1], [0, 0, 1, 1], [], []>} : vector<4x4xf32>, vector<4x8xf32>, vector<4x8xf32> -> vector<4x8xf32>
    %290 = vector.extract_strided_slice %215 {offsets = [24, 0], sizes = [8, 32], strides = [1, 1]} : vector<32x32xf32> to vector<8x32xf32>
    %cst_129 = arith.constant dense<0.000000e+00> : vector<4x32xf32>
    %291 = tpu.matmul %289, %290, %cst_129 {dimension_numbers = #tpu.dot_dimension_numbers<[1], [0], [0], [1], [0, 0, 1, 1], [], []>} : vector<4x8xf32>, vector<8x32xf32>, vector<4x32xf32> -> vector<4x32xf32>
    %292 = arith.addf %273, %291 : vector<4x32xf32>
    %293 = arith.addf %184, %292 : vector<4x32xf32>
    %c1_130 = arith.constant 1 : index
    %c0_131 = arith.constant 0 : index
    %c0_132 = arith.constant 0 : index
    %294 = vector.load %arg10[%c1_130, %c0_131, %c0_132] : memref<2x1x32xf32, #tpu.memory_space<vmem>>, vector<1x1x32xf32>
    %295 = vector.shape_cast %294 : vector<1x1x32xf32> to vector<1x32xf32>
    %296 = vector.broadcast %295 : vector<1x32xf32> to vector<4x32xf32>
    %297 = arith.addf %293, %296 : vector<4x32xf32>
    %c1_133 = arith.constant 1 : index
    %c0_134 = arith.constant 0 : index
    %c0_135 = arith.constant 0 : index
    %298 = vector.load %arg11[%c1_133, %c0_134, %c0_135] : memref<2x1x32xf32, #tpu.memory_space<vmem>>, vector<1x1x32xf32>
    %299 = vector.shape_cast %298 : vector<1x1x32xf32> to vector<1x32xf32>
    %c1_136 = arith.constant 1 : index
    %c0_137 = arith.constant 0 : index
    %c0_138 = arith.constant 0 : index
    %300 = vector.load %arg12[%c1_136, %c0_137, %c0_138] : memref<2x1x32xf32, #tpu.memory_space<vmem>>, vector<1x1x32xf32>
    %301 = vector.shape_cast %300 : vector<1x1x32xf32> to vector<1x32xf32>
    %cst_139 = arith.constant dense<0.000000e+00> : vector<4xf32>
    %302 = vector.multi_reduction <add>, %297, %cst_139 [1] : vector<4x32xf32> to vector<4xf32>
    %303 = vector.shape_cast %302 : vector<4xf32> to vector<4x1xf32>
    %cst_140 = arith.constant 3.200000e+01 : f32
    %304 = vector.broadcast %cst_140 : f32 to vector<4x1xf32>
    %305 = arith.divf %303, %304 : vector<4x1xf32>
    %306 = vector.broadcast %305 : vector<4x1xf32> to vector<4x32xf32>
    %307 = arith.subf %297, %306 : vector<4x32xf32>
    %308 = arith.mulf %307, %307 : vector<4x32xf32>
    %cst_141 = arith.constant dense<0.000000e+00> : vector<4xf32>
    %309 = vector.multi_reduction <add>, %308, %cst_141 [1] : vector<4x32xf32> to vector<4xf32>
    %310 = vector.shape_cast %309 : vector<4xf32> to vector<4x1xf32>
    %cst_142 = arith.constant 3.200000e+01 : f32
    %311 = vector.broadcast %cst_142 : f32 to vector<4x1xf32>
    %312 = arith.divf %310, %311 : vector<4x1xf32>
    %313 = vector.broadcast %305 : vector<4x1xf32> to vector<4x32xf32>
    %314 = arith.subf %297, %313 : vector<4x32xf32>
    %cst_143 = arith.constant 9.99999974E-6 : f32
    %315 = vector.broadcast %cst_143 : f32 to vector<4x1xf32>
    %316 = arith.addf %312, %315 : vector<4x1xf32>
    %317 = math.rsqrt %316 : vector<4x1xf32>
    %318 = vector.broadcast %317 : vector<4x1xf32> to vector<4x32xf32>
    %319 = arith.mulf %314, %318 : vector<4x32xf32>
    %320 = vector.broadcast %299 : vector<1x32xf32> to vector<4x32xf32>
    %321 = arith.mulf %319, %320 : vector<4x32xf32>
    %322 = vector.broadcast %301 : vector<1x32xf32> to vector<4x32xf32>
    %323 = arith.addf %321, %322 : vector<4x32xf32>
    %c1_144 = arith.constant 1 : index
    %c0_145 = arith.constant 0 : index
    %c0_146 = arith.constant 0 : index
    %324 = vector.load %arg13[%c1_144, %c0_145, %c0_146] : memref<2x32x64xf32, #tpu.memory_space<vmem>>, vector<1x32x64xf32>
    %325 = vector.shape_cast %324 : vector<1x32x64xf32> to vector<32x64xf32>
    %cst_147 = arith.constant dense<0.000000e+00> : vector<4x64xf32>
    %326 = tpu.matmul %323, %325, %cst_147 {dimension_numbers = #tpu.dot_dimension_numbers<[1], [0], [0], [1], [0, 0, 1, 1], [], []>} : vector<4x32xf32>, vector<32x64xf32>, vector<4x64xf32> -> vector<4x64xf32>
    %c1_148 = arith.constant 1 : index
    %c0_149 = arith.constant 0 : index
    %c0_150 = arith.constant 0 : index
    %327 = vector.load %arg14[%c1_148, %c0_149, %c0_150] : memref<2x1x64xf32, #tpu.memory_space<vmem>>, vector<1x1x64xf32>
    %328 = vector.shape_cast %327 : vector<1x1x64xf32> to vector<1x64xf32>
    %329 = vector.broadcast %328 : vector<1x64xf32> to vector<4x64xf32>
    %330 = arith.addf %326, %329 : vector<4x64xf32>
    %331 = arith.mulf %330, %330 : vector<4x64xf32>
    %332 = arith.mulf %330, %331 : vector<4x64xf32>
    %cst_151 = arith.constant 4.471500e-02 : f32
    %333 = vector.broadcast %cst_151 : f32 to vector<4x64xf32>
    %334 = arith.mulf %333, %332 : vector<4x64xf32>
    %335 = arith.addf %330, %334 : vector<4x64xf32>
    %cst_152 = arith.constant 0.797884583 : f32
    %336 = vector.broadcast %cst_152 : f32 to vector<4x64xf32>
    %337 = arith.mulf %336, %335 : vector<4x64xf32>
    %338 = math.tanh %337 : vector<4x64xf32>
    %cst_153 = arith.constant 1.000000e+00 : f32
    %339 = vector.broadcast %cst_153 : f32 to vector<4x64xf32>
    %340 = arith.addf %339, %338 : vector<4x64xf32>
    %cst_154 = arith.constant 5.000000e-01 : f32
    %341 = vector.broadcast %cst_154 : f32 to vector<4x64xf32>
    %342 = arith.mulf %341, %340 : vector<4x64xf32>
    %343 = arith.mulf %330, %342 : vector<4x64xf32>
    %c1_155 = arith.constant 1 : index
    %c0_156 = arith.constant 0 : index
    %c0_157 = arith.constant 0 : index
    %344 = vector.load %arg15[%c1_155, %c0_156, %c0_157] : memref<2x64x32xf32, #tpu.memory_space<vmem>>, vector<1x64x32xf32>
    %345 = vector.shape_cast %344 : vector<1x64x32xf32> to vector<64x32xf32>
    %cst_158 = arith.constant dense<0.000000e+00> : vector<4x32xf32>
    %346 = tpu.matmul %343, %345, %cst_158 {dimension_numbers = #tpu.dot_dimension_numbers<[1], [0], [0], [1], [0, 0, 1, 1], [], []>} : vector<4x64xf32>, vector<64x32xf32>, vector<4x32xf32> -> vector<4x32xf32>
    %347 = arith.addf %297, %346 : vector<4x32xf32>
    %c1_159 = arith.constant 1 : index
    %c0_160 = arith.constant 0 : index
    %c0_161 = arith.constant 0 : index
    %348 = vector.load %arg16[%c1_159, %c0_160, %c0_161] : memref<2x1x32xf32, #tpu.memory_space<vmem>>, vector<1x1x32xf32>
    %349 = vector.shape_cast %348 : vector<1x1x32xf32> to vector<1x32xf32>
    %350 = vector.broadcast %349 : vector<1x32xf32> to vector<4x32xf32>
    %351 = arith.addf %347, %350 : vector<4x32xf32>
    %c0_162 = arith.constant 0 : index
    %c0_163 = arith.constant 0 : index
    %352 = vector.load %arg17[%c0_162, %c0_163] : memref<1x32xf32, #tpu.memory_space<vmem>>, vector<1x32xf32>
    %c0_164 = arith.constant 0 : index
    %c0_165 = arith.constant 0 : index
    %353 = vector.load %arg18[%c0_164, %c0_165] : memref<1x32xf32, #tpu.memory_space<vmem>>, vector<1x32xf32>
    %cst_166 = arith.constant dense<0.000000e+00> : vector<4xf32>
    %354 = vector.multi_reduction <add>, %351, %cst_166 [1] : vector<4x32xf32> to vector<4xf32>
    %355 = vector.shape_cast %354 : vector<4xf32> to vector<4x1xf32>
    %cst_167 = arith.constant 3.200000e+01 : f32
    %356 = vector.broadcast %cst_167 : f32 to vector<4x1xf32>
    %357 = arith.divf %355, %356 : vector<4x1xf32>
    %358 = vector.broadcast %357 : vector<4x1xf32> to vector<4x32xf32>
    %359 = arith.subf %351, %358 : vector<4x32xf32>
    %360 = arith.mulf %359, %359 : vector<4x32xf32>
    %cst_168 = arith.constant dense<0.000000e+00> : vector<4xf32>
    %361 = vector.multi_reduction <add>, %360, %cst_168 [1] : vector<4x32xf32> to vector<4xf32>
    %362 = vector.shape_cast %361 : vector<4xf32> to vector<4x1xf32>
    %cst_169 = arith.constant 3.200000e+01 : f32
    %363 = vector.broadcast %cst_169 : f32 to vector<4x1xf32>
    %364 = arith.divf %362, %363 : vector<4x1xf32>
    %365 = vector.broadcast %357 : vector<4x1xf32> to vector<4x32xf32>
    %366 = arith.subf %351, %365 : vector<4x32xf32>
    %cst_170 = arith.constant 9.99999974E-6 : f32
    %367 = vector.broadcast %cst_170 : f32 to vector<4x1xf32>
    %368 = arith.addf %364, %367 : vector<4x1xf32>
    %369 = math.rsqrt %368 : vector<4x1xf32>
    %370 = vector.broadcast %369 : vector<4x1xf32> to vector<4x32xf32>
    %371 = arith.mulf %366, %370 : vector<4x32xf32>
    %372 = vector.broadcast %352 : vector<1x32xf32> to vector<4x32xf32>
    %373 = arith.mulf %371, %372 : vector<4x32xf32>
    %374 = vector.broadcast %353 : vector<1x32xf32> to vector<4x32xf32>
    %375 = arith.addf %373, %374 : vector<4x32xf32>
    %c0_171 = arith.constant 0 : index
    %c0_172 = arith.constant 0 : index
    %376 = vector.load %arg19[%c0_171, %c0_172] : memref<32x48xf32, #tpu.memory_space<vmem>>, vector<32x48xf32>
    %cst_173 = arith.constant dense<0.000000e+00> : vector<4x48xf32>
    %377 = tpu.matmul %375, %376, %cst_173 {dimension_numbers = #tpu.dot_dimension_numbers<[1], [0], [0], [1], [0, 0, 1, 1], [], []>} : vector<4x32xf32>, vector<32x48xf32>, vector<4x48xf32> -> vector<4x48xf32>
    %c0_174 = arith.constant 0 : index
    %c0_175 = arith.constant 0 : index
    %378 = vector.load %arg20[%c0_174, %c0_175] : memref<1x48xf32, #tpu.memory_space<vmem>>, vector<1x48xf32>
    %379 = vector.broadcast %378 : vector<1x48xf32> to vector<4x48xf32>
    %380 = arith.addf %377, %379 : vector<4x48xf32>
    %c0_176 = arith.constant 0 : index
    %c0_177 = arith.constant 0 : index
    %c0_178 = arith.constant 0 : index
    %381 = vector.load %arg21[%c0_176, %c0_177, %c0_178] : memref<1x4x48xf32, #tpu.memory_space<vmem>>, vector<1x4x48xf32>
    %382 = vector.shape_cast %381 : vector<1x4x48xf32> to vector<4x48xf32>
    %383 = vector.shape_cast %380 : vector<4x48xf32> to vector<1x4x48xf32>
    tpu.vector_store %arg21[%c0_176, %c0_177, %c0_178], %383 {strides = array<i32>} : memref<1x4x48xf32, #tpu.memory_space<vmem>>, vector<1x4x48xf32>,
    %cst_179 = arith.constant dense<0.000000e+00> : vector<32xf32>
    %384 = vector.multi_reduction <add>, %375, %cst_179 [0] : vector<4x32xf32> to vector<32xf32>
    %385 = vector.shape_cast %384 : vector<32xf32> to vector<1x32xf32>
    %cst_180 = arith.constant 4.000000e+00 : f32
    %386 = vector.broadcast %cst_180 : f32 to vector<1x32xf32>
    %387 = arith.divf %385, %386 : vector<1x32xf32>
    %c0_181 = arith.constant 0 : index
    %c0_182 = arith.constant 0 : index
    %c0_183 = arith.constant 0 : index
    %388 = vector.load %arg22[%c0_181, %c0_182, %c0_183] : memref<1x1x32xf32, #tpu.memory_space<vmem>>, vector<1x1x32xf32>
    %389 = vector.shape_cast %388 : vector<1x1x32xf32> to vector<1x32xf32>
    %390 = vector.shape_cast %387 : vector<1x32xf32> to vector<1x1x32xf32>
    tpu.vector_store %arg22[%c0_181, %c0_182, %c0_183], %390 {strides = array<i32>} : memref<1x1x32xf32, #tpu.memory_space<vmem>>, vector<1x1x32xf32>,
    return
  }
  func.func @transform_0(%arg0: i32) -> (i32, i32, i32) {
    %c0_i32 = arith.constant 0 : i32
    %c0_i32_0 = arith.constant 0 : i32
    %c0_i32_1 = arith.constant 0 : i32
    return %arg0, %c0_i32, %c0_i32_0 : i32, i32, i32
  }
  func.func @transform_1(%arg0: i32) -> (i32, i32, i32) {
    %c0_i32 = arith.constant 0 : i32
    %c0_i32_0 = arith.constant 0 : i32
    %c0_i32_1 = arith.constant 0 : i32
    return %arg0, %c0_i32, %c0_i32_0 : i32, i32, i32
  }
  func.func @transform_2(%arg0: i32) -> (i32, i32) {
    %c0_i32 = arith.constant 0 : i32
    %c0_i32_0 = arith.constant 0 : i32
    %c0_i32_1 = arith.constant 0 : i32
    return %c0_i32, %c0_i32_0 : i32, i32
  }
  func.func @transform_3(%arg0: i32) -> (i32, i32) {
    %c0_i32 = arith.constant 0 : i32
    %c0_i32_0 = arith.constant 0 : i32
    %c0_i32_1 = arith.constant 0 : i32
    return %c0_i32, %c0_i32_0 : i32, i32
  }
  func.func @transform_4(%arg0: i32) -> (i32, i32) {
    %c0_i32 = arith.constant 0 : i32
    %c0_i32_0 = arith.constant 0 : i32
    %c0_i32_1 = arith.constant 0 : i32
    return %c0_i32, %c0_i32_0 : i32, i32
  }
  func.func @transform_5(%arg0: i32) -> (i32, i32, i32) {
    %c0_i32 = arith.constant 0 : i32
    %c0_i32_0 = arith.constant 0 : i32
    %c0_i32_1 = arith.constant 0 : i32
    %c0_i32_2 = arith.constant 0 : i32
    return %c0_i32, %c0_i32_0, %c0_i32_1 : i32, i32, i32
  }
  func.func @transform_6(%arg0: i32) -> (i32, i32, i32) {
    %c0_i32 = arith.constant 0 : i32
    %c0_i32_0 = arith.constant 0 : i32
    %c0_i32_1 = arith.constant 0 : i32
    %c0_i32_2 = arith.constant 0 : i32
    return %c0_i32, %c0_i32_0, %c0_i32_1 : i32, i32, i32
  }
  func.func @transform_7(%arg0: i32) -> (i32, i32, i32) {
    %c0_i32 = arith.constant 0 : i32
    %c0_i32_0 = arith.constant 0 : i32
    %c0_i32_1 = arith.constant 0 : i32
    %c0_i32_2 = arith.constant 0 : i32
    return %c0_i32, %c0_i32_0, %c0_i32_1 : i32, i32, i32
  }
  func.func @transform_8(%arg0: i32) -> (i32, i32, i32) {
    %c0_i32 = arith.constant 0 : i32
    %c0_i32_0 = arith.constant 0 : i32
    %c0_i32_1 = arith.constant 0 : i32
    %c0_i32_2 = arith.constant 0 : i32
    return %c0_i32, %c0_i32_0, %c0_i32_1 : i32, i32, i32
  }
  func.func @transform_9(%arg0: i32) -> (i32, i32, i32) {
    %c0_i32 = arith.constant 0 : i32
    %c0_i32_0 = arith.constant 0 : i32
    %c0_i32_1 = arith.constant 0 : i32
    %c0_i32_2 = arith.constant 0 : i32
    return %c0_i32, %c0_i32_0, %c0_i32_1 : i32, i32, i32
  }
  func.func @transform_10(%arg0: i32) -> (i32, i32, i32) {
    %c0_i32 = arith.constant 0 : i32
    %c0_i32_0 = arith.constant 0 : i32
    %c0_i32_1 = arith.constant 0 : i32
    %c0_i32_2 = arith.constant 0 : i32
    return %c0_i32, %c0_i32_0, %c0_i32_1 : i32, i32, i32
  }
  func.func @transform_11(%arg0: i32) -> (i32, i32, i32) {
    %c0_i32 = arith.constant 0 : i32
    %c0_i32_0 = arith.constant 0 : i32
    %c0_i32_1 = arith.constant 0 : i32
    %c0_i32_2 = arith.constant 0 : i32
    return %c0_i32, %c0_i32_0, %c0_i32_1 : i32, i32, i32
  }
  func.func @transform_12(%arg0: i32) -> (i32, i32, i32) {
    %c0_i32 = arith.constant 0 : i32
    %c0_i32_0 = arith.constant 0 : i32
    %c0_i32_1 = arith.constant 0 : i32
    %c0_i32_2 = arith.constant 0 : i32
    return %c0_i32, %c0_i32_0, %c0_i32_1 : i32, i32, i32
  }
  func.func @transform_13(%arg0: i32) -> (i32, i32, i32) {
    %c0_i32 = arith.constant 0 : i32
    %c0_i32_0 = arith.constant 0 : i32
    %c0_i32_1 = arith.constant 0 : i32
    %c0_i32_2 = arith.constant 0 : i32
    return %c0_i32, %c0_i32_0, %c0_i32_1 : i32, i32, i32
  }
  func.func @transform_14(%arg0: i32) -> (i32, i32, i32) {
    %c0_i32 = arith.constant 0 : i32
    %c0_i32_0 = arith.constant 0 : i32
    %c0_i32_1 = arith.constant 0 : i32
    %c0_i32_2 = arith.constant 0 : i32
    return %c0_i32, %c0_i32_0, %c0_i32_1 : i32, i32, i32
  }
  func.func @transform_15(%arg0: i32) -> (i32, i32, i32) {
    %c0_i32 = arith.constant 0 : i32
    %c0_i32_0 = arith.constant 0 : i32
    %c0_i32_1 = arith.constant 0 : i32
    %c0_i32_2 = arith.constant 0 : i32
    return %c0_i32, %c0_i32_0, %c0_i32_1 : i32, i32, i32
  }
  func.func @transform_16(%arg0: i32) -> (i32, i32) {
    %c0_i32 = arith.constant 0 : i32
    %c0_i32_0 = arith.constant 0 : i32
    %c0_i32_1 = arith.constant 0 : i32
    return %c0_i32, %c0_i32_0 : i32, i32
  }
  func.func @transform_17(%arg0: i32) -> (i32, i32) {
    %c0_i32 = arith.constant 0 : i32
    %c0_i32_0 = arith.constant 0 : i32
    %c0_i32_1 = arith.constant 0 : i32
    return %c0_i32, %c0_i32_0 : i32, i32
  }
  func.func @transform_18(%arg0: i32) -> (i32, i32) {
    %c0_i32 = arith.constant 0 : i32
    %c0_i32_0 = arith.constant 0 : i32
    %c0_i32_1 = arith.constant 0 : i32
    return %c0_i32, %c0_i32_0 : i32, i32
  }
  func.func @transform_19(%arg0: i32) -> (i32, i32) {
    %c0_i32 = arith.constant 0 : i32
    %c0_i32_0 = arith.constant 0 : i32
    %c0_i32_1 = arith.constant 0 : i32
    return %c0_i32, %c0_i32_0 : i32, i32
  }
  func.func @transform_20(%arg0: i32) -> (i32, i32, i32) {
    %c0_i32 = arith.constant 0 : i32
    %c0_i32_0 = arith.constant 0 : i32
    %c0_i32_1 = arith.constant 0 : i32
    return %arg0, %c0_i32, %c0_i32_0 : i32, i32, i32
  }
  func.func @transform_21(%arg0: i32) -> (i32, i32, i32) {
    %c0_i32 = arith.constant 0 : i32
    %c0_i32_0 = arith.constant 0 : i32
    %c0_i32_1 = arith.constant 0 : i32
    return %arg0, %c0_i32, %c0_i32_0 : i32, i32, i32
  }
}

module attributes {stable_mosaic.version = 11 : i64} {
  func.func @_decoder_kernel(%arg0: i32, %arg1: memref<1x16x48xf32, #tpu.memory_space<vmem>>, %arg2: memref<1x1x48xf32, #tpu.memory_space<vmem>>, %arg3: memref<1x1x48xf32, #tpu.memory_space<vmem>>, %arg4: memref<1x48x192xf32, #tpu.memory_space<vmem>>, %arg5: memref<1x64x48xf32, #tpu.memory_space<vmem>>, %arg6: memref<1x1x48xf32, #tpu.memory_space<vmem>>, %arg7: memref<1x1x48xf32, #tpu.memory_space<vmem>>, %arg8: memref<1x1x48xf32, #tpu.memory_space<vmem>>, %arg9: memref<1x48x192xf32, #tpu.memory_space<vmem>>, %arg10: memref<1x1x192xf32, #tpu.memory_space<vmem>>, %arg11: memref<1x192x48xf32, #tpu.memory_space<vmem>>, %arg12: memref<1x1x48xf32, #tpu.memory_space<vmem>>, %arg13: memref<1x48xf32, #tpu.memory_space<vmem>>, %arg14: memref<1x48xf32, #tpu.memory_space<vmem>>, %arg15: memref<48x192xf32, #tpu.memory_space<vmem>>, %arg16: memref<1x192xf32, #tpu.memory_space<vmem>>, %arg17: memref<1x12x192xf32, #tpu.memory_space<vmem>>, %arg18: memref<1x12x192xf32, #tpu.memory_space<vmem>>, %arg19: memref<1x1x1xf32, #tpu.memory_space<vmem>>) attributes {dimension_semantics = [#tpu.dimension_semantics<parallel>], iteration_bounds = array<i64: 2>, scalar_prefetch = 0 : i64, scratch_operands = 0 : i64, tpu.core_type = #tpu.core_type<tc>, window_params = [{transform_indices = @transform_0, window_bounds = array<i64: 1, 16, 48>}, {pipeline_mode = #tpu.pipeline_mode<synchronous>, transform_indices = @transform_1, window_bounds = array<i64: 1, 1, 48>}, {pipeline_mode = #tpu.pipeline_mode<synchronous>, transform_indices = @transform_2, window_bounds = array<i64: 1, 1, 48>}, {pipeline_mode = #tpu.pipeline_mode<synchronous>, transform_indices = @transform_3, window_bounds = array<i64: 1, 48, 192>}, {pipeline_mode = #tpu.pipeline_mode<synchronous>, transform_indices = @transform_4, window_bounds = array<i64: 1, 64, 48>}, {pipeline_mode = #tpu.pipeline_mode<synchronous>, transform_indices = @transform_5, window_bounds = array<i64: 1, 1, 48>}, {pipeline_mode = #tpu.pipeline_mode<synchronous>, transform_indices = @transform_6, window_bounds = array<i64: 1, 1, 48>}, {pipeline_mode = #tpu.pipeline_mode<synchronous>, transform_indices = @transform_7, window_bounds = array<i64: 1, 1, 48>}, {pipeline_mode = #tpu.pipeline_mode<synchronous>, transform_indices = @transform_8, window_bounds = array<i64: 1, 48, 192>}, {pipeline_mode = #tpu.pipeline_mode<synchronous>, transform_indices = @transform_9, window_bounds = array<i64: 1, 1, 192>}, {pipeline_mode = #tpu.pipeline_mode<synchronous>, transform_indices = @transform_10, window_bounds = array<i64: 1, 192, 48>}, {pipeline_mode = #tpu.pipeline_mode<synchronous>, transform_indices = @transform_11, window_bounds = array<i64: 1, 1, 48>}, {pipeline_mode = #tpu.pipeline_mode<synchronous>, transform_indices = @transform_12, window_bounds = array<i64: 1, 48>}, {pipeline_mode = #tpu.pipeline_mode<synchronous>, transform_indices = @transform_13, window_bounds = array<i64: 1, 48>}, {pipeline_mode = #tpu.pipeline_mode<synchronous>, transform_indices = @transform_14, window_bounds = array<i64: 48, 192>}, {pipeline_mode = #tpu.pipeline_mode<synchronous>, transform_indices = @transform_15, window_bounds = array<i64: 1, 192>}, {transform_indices = @transform_16, window_bounds = array<i64: 1, 12, 192>}, {transform_indices = @transform_17, window_bounds = array<i64: 1, 12, 192>}, {transform_indices = @transform_18, window_bounds = array<i64: 1, 1, 1>}]} {
    %c0 = arith.constant 0 : index
    %c0_0 = arith.constant 0 : index
    %c0_1 = arith.constant 0 : index
    %0 = vector.load %arg1[%c0, %c0_0, %c0_1] : memref<1x16x48xf32, #tpu.memory_space<vmem>>, vector<1x16x48xf32>
    %1 = vector.shape_cast %0 : vector<1x16x48xf32> to vector<16x48xf32>
    %c0_2 = arith.constant 0 : index
    %c0_3 = arith.constant 0 : index
    %c0_4 = arith.constant 0 : index
    %2 = vector.load %arg2[%c0_2, %c0_3, %c0_4] : memref<1x1x48xf32, #tpu.memory_space<vmem>>, vector<1x1x48xf32>
    %3 = vector.shape_cast %2 : vector<1x1x48xf32> to vector<1x48xf32>
    %c0_5 = arith.constant 0 : index
    %c0_6 = arith.constant 0 : index
    %c0_7 = arith.constant 0 : index
    %4 = vector.load %arg3[%c0_5, %c0_6, %c0_7] : memref<1x1x48xf32, #tpu.memory_space<vmem>>, vector<1x1x48xf32>
    %5 = vector.shape_cast %4 : vector<1x1x48xf32> to vector<1x48xf32>
    %cst = arith.constant dense<0.000000e+00> : vector<16xf32>
    %6 = vector.multi_reduction <add>, %1, %cst [1] : vector<16x48xf32> to vector<16xf32>
    %7 = vector.shape_cast %6 : vector<16xf32> to vector<16x1xf32>
    %cst_8 = arith.constant 4.800000e+01 : f32
    %8 = vector.broadcast %cst_8 : f32 to vector<16x1xf32>
    %9 = arith.divf %7, %8 : vector<16x1xf32>
    %10 = vector.broadcast %9 : vector<16x1xf32> to vector<16x48xf32>
    %11 = arith.subf %1, %10 : vector<16x48xf32>
    %12 = arith.mulf %11, %11 : vector<16x48xf32>
    %cst_9 = arith.constant dense<0.000000e+00> : vector<16xf32>
    %13 = vector.multi_reduction <add>, %12, %cst_9 [1] : vector<16x48xf32> to vector<16xf32>
    %14 = vector.shape_cast %13 : vector<16xf32> to vector<16x1xf32>
    %cst_10 = arith.constant 4.800000e+01 : f32
    %15 = vector.broadcast %cst_10 : f32 to vector<16x1xf32>
    %16 = arith.divf %14, %15 : vector<16x1xf32>
    %17 = vector.broadcast %9 : vector<16x1xf32> to vector<16x48xf32>
    %18 = arith.subf %1, %17 : vector<16x48xf32>
    %cst_11 = arith.constant 9.99999974E-6 : f32
    %19 = vector.broadcast %cst_11 : f32 to vector<16x1xf32>
    %20 = arith.addf %16, %19 : vector<16x1xf32>
    %21 = math.rsqrt %20 : vector<16x1xf32>
    %22 = vector.broadcast %21 : vector<16x1xf32> to vector<16x48xf32>
    %23 = arith.mulf %18, %22 : vector<16x48xf32>
    %24 = vector.broadcast %3 : vector<1x48xf32> to vector<16x48xf32>
    %25 = arith.mulf %23, %24 : vector<16x48xf32>
    %26 = vector.broadcast %5 : vector<1x48xf32> to vector<16x48xf32>
    %27 = arith.addf %25, %26 : vector<16x48xf32>
    %c0_12 = arith.constant 0 : index
    %c0_13 = arith.constant 0 : index
    %c0_14 = arith.constant 0 : index
    %28 = vector.load %arg4[%c0_12, %c0_13, %c0_14] : memref<1x48x192xf32, #tpu.memory_space<vmem>>, vector<1x48x192xf32>
    %29 = vector.shape_cast %28 : vector<1x48x192xf32> to vector<48x192xf32>
    %cst_15 = arith.constant dense<0.000000e+00> : vector<16x192xf32>
    %30 = tpu.matmul %27, %29, %cst_15 {dimension_numbers = #tpu.dot_dimension_numbers<[1], [0], [0], [1], [0, 0, 1, 1], [], []>} : vector<16x48xf32>, vector<48x192xf32>, vector<16x192xf32> -> vector<16x192xf32>
    %c0_16 = arith.constant 0 : index
    %c0_17 = arith.constant 0 : index
    %c0_18 = arith.constant 0 : index
    %31 = vector.load %arg5[%c0_16, %c0_17, %c0_18] : memref<1x64x48xf32, #tpu.memory_space<vmem>>, vector<1x64x48xf32>
    %32 = vector.shape_cast %31 : vector<1x64x48xf32> to vector<64x48xf32>
    %cst_19 = arith.constant 0.000000e+00 : f32
    %33 = vector.broadcast %cst_19 : f32 to vector<16x48xf32>
    %34 = vector.extract_strided_slice %30 {offsets = [0, 0], sizes = [16, 16], strides = [1, 1]} : vector<16x192xf32> to vector<16x16xf32>
    %cst_20 = arith.constant 2.500000e-01 : f32
    %35 = vector.broadcast %cst_20 : f32 to vector<16x16xf32>
    %36 = arith.mulf %34, %35 : vector<16x16xf32>
    %37 = vector.extract_strided_slice %30 {offsets = [0, 64], sizes = [16, 16], strides = [1, 1]} : vector<16x192xf32> to vector<16x16xf32>
    %38 = vector.extract_strided_slice %30 {offsets = [0, 128], sizes = [16, 16], strides = [1, 1]} : vector<16x192xf32> to vector<16x16xf32>
    %cst_21 = arith.constant dense<0.000000e+00> : vector<16x16xf32>
    %39 = tpu.matmul %36, %37, %cst_21 {dimension_numbers = #tpu.dot_dimension_numbers<[1], [1], [0], [0], [0, 0, 1, 0], [], []>} : vector<16x16xf32>, vector<16x16xf32>, vector<16x16xf32> -> vector<16x16xf32>
    %cst_22 = arith.constant dense<0xFF800000> : vector<16xf32>
    %40 = vector.multi_reduction <maximumf>, %39, %cst_22 [1] : vector<16x16xf32> to vector<16xf32>
    %41 = vector.shape_cast %40 : vector<16xf32> to vector<16x1xf32>
    %42 = vector.broadcast %41 : vector<16x1xf32> to vector<16x16xf32>
    %43 = arith.subf %39, %42 : vector<16x16xf32>
    %44 = math.exp %43 : vector<16x16xf32>
    %cst_23 = arith.constant dense<0.000000e+00> : vector<16xf32>
    %45 = vector.multi_reduction <add>, %44, %cst_23 [1] : vector<16x16xf32> to vector<16xf32>
    %46 = vector.shape_cast %45 : vector<16xf32> to vector<16x1xf32>
    %47 = vector.broadcast %46 : vector<16x1xf32> to vector<16x16xf32>
    %48 = arith.divf %44, %47 : vector<16x16xf32>
    %cst_24 = arith.constant dense<0.000000e+00> : vector<16x16xf32>
    %49 = tpu.matmul %48, %38, %cst_24 {dimension_numbers = #tpu.dot_dimension_numbers<[1], [0], [0], [1], [0, 0, 1, 1], [], []>} : vector<16x16xf32>, vector<16x16xf32>, vector<16x16xf32> -> vector<16x16xf32>
    %50 = vector.extract_strided_slice %32 {offsets = [0, 0], sizes = [16, 48], strides = [1, 1]} : vector<64x48xf32> to vector<16x48xf32>
    %cst_25 = arith.constant dense<0.000000e+00> : vector<16x48xf32>
    %51 = tpu.matmul %49, %50, %cst_25 {dimension_numbers = #tpu.dot_dimension_numbers<[1], [0], [0], [1], [0, 0, 1, 1], [], []>} : vector<16x16xf32>, vector<16x48xf32>, vector<16x48xf32> -> vector<16x48xf32>
    %52 = arith.addf %33, %51 : vector<16x48xf32>
    %53 = vector.extract_strided_slice %30 {offsets = [0, 16], sizes = [16, 16], strides = [1, 1]} : vector<16x192xf32> to vector<16x16xf32>
    %cst_26 = arith.constant 2.500000e-01 : f32
    %54 = vector.broadcast %cst_26 : f32 to vector<16x16xf32>
    %55 = arith.mulf %53, %54 : vector<16x16xf32>
    %56 = vector.extract_strided_slice %30 {offsets = [0, 80], sizes = [16, 16], strides = [1, 1]} : vector<16x192xf32> to vector<16x16xf32>
    %57 = vector.extract_strided_slice %30 {offsets = [0, 144], sizes = [16, 16], strides = [1, 1]} : vector<16x192xf32> to vector<16x16xf32>
    %cst_27 = arith.constant dense<0.000000e+00> : vector<16x16xf32>
    %58 = tpu.matmul %55, %56, %cst_27 {dimension_numbers = #tpu.dot_dimension_numbers<[1], [1], [0], [0], [0, 0, 1, 0], [], []>} : vector<16x16xf32>, vector<16x16xf32>, vector<16x16xf32> -> vector<16x16xf32>
    %cst_28 = arith.constant dense<0xFF800000> : vector<16xf32>
    %59 = vector.multi_reduction <maximumf>, %58, %cst_28 [1] : vector<16x16xf32> to vector<16xf32>
    %60 = vector.shape_cast %59 : vector<16xf32> to vector<16x1xf32>
    %61 = vector.broadcast %60 : vector<16x1xf32> to vector<16x16xf32>
    %62 = arith.subf %58, %61 : vector<16x16xf32>
    %63 = math.exp %62 : vector<16x16xf32>
    %cst_29 = arith.constant dense<0.000000e+00> : vector<16xf32>
    %64 = vector.multi_reduction <add>, %63, %cst_29 [1] : vector<16x16xf32> to vector<16xf32>
    %65 = vector.shape_cast %64 : vector<16xf32> to vector<16x1xf32>
    %66 = vector.broadcast %65 : vector<16x1xf32> to vector<16x16xf32>
    %67 = arith.divf %63, %66 : vector<16x16xf32>
    %cst_30 = arith.constant dense<0.000000e+00> : vector<16x16xf32>
    %68 = tpu.matmul %67, %57, %cst_30 {dimension_numbers = #tpu.dot_dimension_numbers<[1], [0], [0], [1], [0, 0, 1, 1], [], []>} : vector<16x16xf32>, vector<16x16xf32>, vector<16x16xf32> -> vector<16x16xf32>
    %69 = vector.extract_strided_slice %32 {offsets = [16, 0], sizes = [16, 48], strides = [1, 1]} : vector<64x48xf32> to vector<16x48xf32>
    %cst_31 = arith.constant dense<0.000000e+00> : vector<16x48xf32>
    %70 = tpu.matmul %68, %69, %cst_31 {dimension_numbers = #tpu.dot_dimension_numbers<[1], [0], [0], [1], [0, 0, 1, 1], [], []>} : vector<16x16xf32>, vector<16x48xf32>, vector<16x48xf32> -> vector<16x48xf32>
    %71 = arith.addf %52, %70 : vector<16x48xf32>
    %72 = vector.extract_strided_slice %30 {offsets = [0, 32], sizes = [16, 16], strides = [1, 1]} : vector<16x192xf32> to vector<16x16xf32>
    %cst_32 = arith.constant 2.500000e-01 : f32
    %73 = vector.broadcast %cst_32 : f32 to vector<16x16xf32>
    %74 = arith.mulf %72, %73 : vector<16x16xf32>
    %75 = vector.extract_strided_slice %30 {offsets = [0, 96], sizes = [16, 16], strides = [1, 1]} : vector<16x192xf32> to vector<16x16xf32>
    %76 = vector.extract_strided_slice %30 {offsets = [0, 160], sizes = [16, 16], strides = [1, 1]} : vector<16x192xf32> to vector<16x16xf32>
    %cst_33 = arith.constant dense<0.000000e+00> : vector<16x16xf32>
    %77 = tpu.matmul %74, %75, %cst_33 {dimension_numbers = #tpu.dot_dimension_numbers<[1], [1], [0], [0], [0, 0, 1, 0], [], []>} : vector<16x16xf32>, vector<16x16xf32>, vector<16x16xf32> -> vector<16x16xf32>
    %cst_34 = arith.constant dense<0xFF800000> : vector<16xf32>
    %78 = vector.multi_reduction <maximumf>, %77, %cst_34 [1] : vector<16x16xf32> to vector<16xf32>
    %79 = vector.shape_cast %78 : vector<16xf32> to vector<16x1xf32>
    %80 = vector.broadcast %79 : vector<16x1xf32> to vector<16x16xf32>
    %81 = arith.subf %77, %80 : vector<16x16xf32>
    %82 = math.exp %81 : vector<16x16xf32>
    %cst_35 = arith.constant dense<0.000000e+00> : vector<16xf32>
    %83 = vector.multi_reduction <add>, %82, %cst_35 [1] : vector<16x16xf32> to vector<16xf32>
    %84 = vector.shape_cast %83 : vector<16xf32> to vector<16x1xf32>
    %85 = vector.broadcast %84 : vector<16x1xf32> to vector<16x16xf32>
    %86 = arith.divf %82, %85 : vector<16x16xf32>
    %cst_36 = arith.constant dense<0.000000e+00> : vector<16x16xf32>
    %87 = tpu.matmul %86, %76, %cst_36 {dimension_numbers = #tpu.dot_dimension_numbers<[1], [0], [0], [1], [0, 0, 1, 1], [], []>} : vector<16x16xf32>, vector<16x16xf32>, vector<16x16xf32> -> vector<16x16xf32>
    %88 = vector.extract_strided_slice %32 {offsets = [32, 0], sizes = [16, 48], strides = [1, 1]} : vector<64x48xf32> to vector<16x48xf32>
    %cst_37 = arith.constant dense<0.000000e+00> : vector<16x48xf32>
    %89 = tpu.matmul %87, %88, %cst_37 {dimension_numbers = #tpu.dot_dimension_numbers<[1], [0], [0], [1], [0, 0, 1, 1], [], []>} : vector<16x16xf32>, vector<16x48xf32>, vector<16x48xf32> -> vector<16x48xf32>
    %90 = arith.addf %71, %89 : vector<16x48xf32>
    %91 = vector.extract_strided_slice %30 {offsets = [0, 48], sizes = [16, 16], strides = [1, 1]} : vector<16x192xf32> to vector<16x16xf32>
    %cst_38 = arith.constant 2.500000e-01 : f32
    %92 = vector.broadcast %cst_38 : f32 to vector<16x16xf32>
    %93 = arith.mulf %91, %92 : vector<16x16xf32>
    %94 = vector.extract_strided_slice %30 {offsets = [0, 112], sizes = [16, 16], strides = [1, 1]} : vector<16x192xf32> to vector<16x16xf32>
    %95 = vector.extract_strided_slice %30 {offsets = [0, 176], sizes = [16, 16], strides = [1, 1]} : vector<16x192xf32> to vector<16x16xf32>
    %cst_39 = arith.constant dense<0.000000e+00> : vector<16x16xf32>
    %96 = tpu.matmul %93, %94, %cst_39 {dimension_numbers = #tpu.dot_dimension_numbers<[1], [1], [0], [0], [0, 0, 1, 0], [], []>} : vector<16x16xf32>, vector<16x16xf32>, vector<16x16xf32> -> vector<16x16xf32>
    %cst_40 = arith.constant dense<0xFF800000> : vector<16xf32>
    %97 = vector.multi_reduction <maximumf>, %96, %cst_40 [1] : vector<16x16xf32> to vector<16xf32>
    %98 = vector.shape_cast %97 : vector<16xf32> to vector<16x1xf32>
    %99 = vector.broadcast %98 : vector<16x1xf32> to vector<16x16xf32>
    %100 = arith.subf %96, %99 : vector<16x16xf32>
    %101 = math.exp %100 : vector<16x16xf32>
    %cst_41 = arith.constant dense<0.000000e+00> : vector<16xf32>
    %102 = vector.multi_reduction <add>, %101, %cst_41 [1] : vector<16x16xf32> to vector<16xf32>
    %103 = vector.shape_cast %102 : vector<16xf32> to vector<16x1xf32>
    %104 = vector.broadcast %103 : vector<16x1xf32> to vector<16x16xf32>
    %105 = arith.divf %101, %104 : vector<16x16xf32>
    %cst_42 = arith.constant dense<0.000000e+00> : vector<16x16xf32>
    %106 = tpu.matmul %105, %95, %cst_42 {dimension_numbers = #tpu.dot_dimension_numbers<[1], [0], [0], [1], [0, 0, 1, 1], [], []>} : vector<16x16xf32>, vector<16x16xf32>, vector<16x16xf32> -> vector<16x16xf32>
    %107 = vector.extract_strided_slice %32 {offsets = [48, 0], sizes = [16, 48], strides = [1, 1]} : vector<64x48xf32> to vector<16x48xf32>
    %cst_43 = arith.constant dense<0.000000e+00> : vector<16x48xf32>
    %108 = tpu.matmul %106, %107, %cst_43 {dimension_numbers = #tpu.dot_dimension_numbers<[1], [0], [0], [1], [0, 0, 1, 1], [], []>} : vector<16x16xf32>, vector<16x48xf32>, vector<16x48xf32> -> vector<16x48xf32>
    %109 = arith.addf %90, %108 : vector<16x48xf32>
    %110 = arith.addf %1, %109 : vector<16x48xf32>
    %c0_44 = arith.constant 0 : index
    %c0_45 = arith.constant 0 : index
    %c0_46 = arith.constant 0 : index
    %111 = vector.load %arg6[%c0_44, %c0_45, %c0_46] : memref<1x1x48xf32, #tpu.memory_space<vmem>>, vector<1x1x48xf32>
    %112 = vector.shape_cast %111 : vector<1x1x48xf32> to vector<1x48xf32>
    %113 = vector.broadcast %112 : vector<1x48xf32> to vector<16x48xf32>
    %114 = arith.addf %110, %113 : vector<16x48xf32>
    %c0_47 = arith.constant 0 : index
    %c0_48 = arith.constant 0 : index
    %c0_49 = arith.constant 0 : index
    %115 = vector.load %arg7[%c0_47, %c0_48, %c0_49] : memref<1x1x48xf32, #tpu.memory_space<vmem>>, vector<1x1x48xf32>
    %116 = vector.shape_cast %115 : vector<1x1x48xf32> to vector<1x48xf32>
    %c0_50 = arith.constant 0 : index
    %c0_51 = arith.constant 0 : index
    %c0_52 = arith.constant 0 : index
    %117 = vector.load %arg8[%c0_50, %c0_51, %c0_52] : memref<1x1x48xf32, #tpu.memory_space<vmem>>, vector<1x1x48xf32>
    %118 = vector.shape_cast %117 : vector<1x1x48xf32> to vector<1x48xf32>
    %cst_53 = arith.constant dense<0.000000e+00> : vector<16xf32>
    %119 = vector.multi_reduction <add>, %114, %cst_53 [1] : vector<16x48xf32> to vector<16xf32>
    %120 = vector.shape_cast %119 : vector<16xf32> to vector<16x1xf32>
    %cst_54 = arith.constant 4.800000e+01 : f32
    %121 = vector.broadcast %cst_54 : f32 to vector<16x1xf32>
    %122 = arith.divf %120, %121 : vector<16x1xf32>
    %123 = vector.broadcast %122 : vector<16x1xf32> to vector<16x48xf32>
    %124 = arith.subf %114, %123 : vector<16x48xf32>
    %125 = arith.mulf %124, %124 : vector<16x48xf32>
    %cst_55 = arith.constant dense<0.000000e+00> : vector<16xf32>
    %126 = vector.multi_reduction <add>, %125, %cst_55 [1] : vector<16x48xf32> to vector<16xf32>
    %127 = vector.shape_cast %126 : vector<16xf32> to vector<16x1xf32>
    %cst_56 = arith.constant 4.800000e+01 : f32
    %128 = vector.broadcast %cst_56 : f32 to vector<16x1xf32>
    %129 = arith.divf %127, %128 : vector<16x1xf32>
    %130 = vector.broadcast %122 : vector<16x1xf32> to vector<16x48xf32>
    %131 = arith.subf %114, %130 : vector<16x48xf32>
    %cst_57 = arith.constant 9.99999974E-6 : f32
    %132 = vector.broadcast %cst_57 : f32 to vector<16x1xf32>
    %133 = arith.addf %129, %132 : vector<16x1xf32>
    %134 = math.rsqrt %133 : vector<16x1xf32>
    %135 = vector.broadcast %134 : vector<16x1xf32> to vector<16x48xf32>
    %136 = arith.mulf %131, %135 : vector<16x48xf32>
    %137 = vector.broadcast %116 : vector<1x48xf32> to vector<16x48xf32>
    %138 = arith.mulf %136, %137 : vector<16x48xf32>
    %139 = vector.broadcast %118 : vector<1x48xf32> to vector<16x48xf32>
    %140 = arith.addf %138, %139 : vector<16x48xf32>
    %c0_58 = arith.constant 0 : index
    %c0_59 = arith.constant 0 : index
    %c0_60 = arith.constant 0 : index
    %141 = vector.load %arg9[%c0_58, %c0_59, %c0_60] : memref<1x48x192xf32, #tpu.memory_space<vmem>>, vector<1x48x192xf32>
    %142 = vector.shape_cast %141 : vector<1x48x192xf32> to vector<48x192xf32>
    %cst_61 = arith.constant dense<0.000000e+00> : vector<16x192xf32>
    %143 = tpu.matmul %140, %142, %cst_61 {dimension_numbers = #tpu.dot_dimension_numbers<[1], [0], [0], [1], [0, 0, 1, 1], [], []>} : vector<16x48xf32>, vector<48x192xf32>, vector<16x192xf32> -> vector<16x192xf32>
    %c0_62 = arith.constant 0 : index
    %c0_63 = arith.constant 0 : index
    %c0_64 = arith.constant 0 : index
    %144 = vector.load %arg10[%c0_62, %c0_63, %c0_64] : memref<1x1x192xf32, #tpu.memory_space<vmem>>, vector<1x1x192xf32>
    %145 = vector.shape_cast %144 : vector<1x1x192xf32> to vector<1x192xf32>
    %146 = vector.broadcast %145 : vector<1x192xf32> to vector<16x192xf32>
    %147 = arith.addf %143, %146 : vector<16x192xf32>
    %148 = arith.mulf %147, %147 : vector<16x192xf32>
    %149 = arith.mulf %147, %148 : vector<16x192xf32>
    %cst_65 = arith.constant 4.471500e-02 : f32
    %150 = vector.broadcast %cst_65 : f32 to vector<16x192xf32>
    %151 = arith.mulf %150, %149 : vector<16x192xf32>
    %152 = arith.addf %147, %151 : vector<16x192xf32>
    %cst_66 = arith.constant 0.797884583 : f32
    %153 = vector.broadcast %cst_66 : f32 to vector<16x192xf32>
    %154 = arith.mulf %153, %152 : vector<16x192xf32>
    %155 = math.tanh %154 : vector<16x192xf32>
    %cst_67 = arith.constant 1.000000e+00 : f32
    %156 = vector.broadcast %cst_67 : f32 to vector<16x192xf32>
    %157 = arith.addf %156, %155 : vector<16x192xf32>
    %cst_68 = arith.constant 5.000000e-01 : f32
    %158 = vector.broadcast %cst_68 : f32 to vector<16x192xf32>
    %159 = arith.mulf %158, %157 : vector<16x192xf32>
    %160 = arith.mulf %147, %159 : vector<16x192xf32>
    %c0_69 = arith.constant 0 : index
    %c0_70 = arith.constant 0 : index
    %c0_71 = arith.constant 0 : index
    %161 = vector.load %arg11[%c0_69, %c0_70, %c0_71] : memref<1x192x48xf32, #tpu.memory_space<vmem>>, vector<1x192x48xf32>
    %162 = vector.shape_cast %161 : vector<1x192x48xf32> to vector<192x48xf32>
    %cst_72 = arith.constant dense<0.000000e+00> : vector<16x48xf32>
    %163 = tpu.matmul %160, %162, %cst_72 {dimension_numbers = #tpu.dot_dimension_numbers<[1], [0], [0], [1], [0, 0, 1, 1], [], []>} : vector<16x192xf32>, vector<192x48xf32>, vector<16x48xf32> -> vector<16x48xf32>
    %164 = arith.addf %114, %163 : vector<16x48xf32>
    %c0_73 = arith.constant 0 : index
    %c0_74 = arith.constant 0 : index
    %c0_75 = arith.constant 0 : index
    %165 = vector.load %arg12[%c0_73, %c0_74, %c0_75] : memref<1x1x48xf32, #tpu.memory_space<vmem>>, vector<1x1x48xf32>
    %166 = vector.shape_cast %165 : vector<1x1x48xf32> to vector<1x48xf32>
    %167 = vector.broadcast %166 : vector<1x48xf32> to vector<16x48xf32>
    %168 = arith.addf %164, %167 : vector<16x48xf32>
    %169 = vector.extract_strided_slice %168 {offsets = [0, 0], sizes = [12, 48], strides = [1, 1]} : vector<16x48xf32> to vector<12x48xf32>
    %c0_76 = arith.constant 0 : index
    %c0_77 = arith.constant 0 : index
    %170 = vector.load %arg13[%c0_76, %c0_77] : memref<1x48xf32, #tpu.memory_space<vmem>>, vector<1x48xf32>
    %c0_78 = arith.constant 0 : index
    %c0_79 = arith.constant 0 : index
    %171 = vector.load %arg14[%c0_78, %c0_79] : memref<1x48xf32, #tpu.memory_space<vmem>>, vector<1x48xf32>
    %cst_80 = arith.constant dense<0.000000e+00> : vector<12xf32>
    %172 = vector.multi_reduction <add>, %169, %cst_80 [1] : vector<12x48xf32> to vector<12xf32>
    %173 = vector.shape_cast %172 : vector<12xf32> to vector<12x1xf32>
    %cst_81 = arith.constant 4.800000e+01 : f32
    %174 = vector.broadcast %cst_81 : f32 to vector<12x1xf32>
    %175 = arith.divf %173, %174 : vector<12x1xf32>
    %176 = vector.broadcast %175 : vector<12x1xf32> to vector<12x48xf32>
    %177 = arith.subf %169, %176 : vector<12x48xf32>
    %178 = arith.mulf %177, %177 : vector<12x48xf32>
    %cst_82 = arith.constant dense<0.000000e+00> : vector<12xf32>
    %179 = vector.multi_reduction <add>, %178, %cst_82 [1] : vector<12x48xf32> to vector<12xf32>
    %180 = vector.shape_cast %179 : vector<12xf32> to vector<12x1xf32>
    %cst_83 = arith.constant 4.800000e+01 : f32
    %181 = vector.broadcast %cst_83 : f32 to vector<12x1xf32>
    %182 = arith.divf %180, %181 : vector<12x1xf32>
    %183 = vector.broadcast %175 : vector<12x1xf32> to vector<12x48xf32>
    %184 = arith.subf %169, %183 : vector<12x48xf32>
    %cst_84 = arith.constant 9.99999974E-6 : f32
    %185 = vector.broadcast %cst_84 : f32 to vector<12x1xf32>
    %186 = arith.addf %182, %185 : vector<12x1xf32>
    %187 = math.rsqrt %186 : vector<12x1xf32>
    %188 = vector.broadcast %187 : vector<12x1xf32> to vector<12x48xf32>
    %189 = arith.mulf %184, %188 : vector<12x48xf32>
    %190 = vector.broadcast %170 : vector<1x48xf32> to vector<12x48xf32>
    %191 = arith.mulf %189, %190 : vector<12x48xf32>
    %192 = vector.broadcast %171 : vector<1x48xf32> to vector<12x48xf32>
    %193 = arith.addf %191, %192 : vector<12x48xf32>
    %c0_85 = arith.constant 0 : index
    %c0_86 = arith.constant 0 : index
    %194 = vector.load %arg15[%c0_85, %c0_86] : memref<48x192xf32, #tpu.memory_space<vmem>>, vector<48x192xf32>
    %cst_87 = arith.constant dense<0.000000e+00> : vector<12x192xf32>
    %195 = tpu.matmul %193, %194, %cst_87 {dimension_numbers = #tpu.dot_dimension_numbers<[1], [0], [0], [1], [0, 0, 1, 1], [], []>} : vector<12x48xf32>, vector<48x192xf32>, vector<12x192xf32> -> vector<12x192xf32>
    %c0_88 = arith.constant 0 : index
    %c0_89 = arith.constant 0 : index
    %196 = vector.load %arg16[%c0_88, %c0_89] : memref<1x192xf32, #tpu.memory_space<vmem>>, vector<1x192xf32>
    %197 = vector.broadcast %196 : vector<1x192xf32> to vector<12x192xf32>
    %198 = arith.addf %195, %197 : vector<12x192xf32>
    %c0_90 = arith.constant 0 : index
    %c0_91 = arith.constant 0 : index
    %c0_92 = arith.constant 0 : index
    %199 = vector.load %arg18[%c0_90, %c0_91, %c0_92] : memref<1x12x192xf32, #tpu.memory_space<vmem>>, vector<1x12x192xf32>
    %200 = vector.shape_cast %199 : vector<1x12x192xf32> to vector<12x192xf32>
    %201 = vector.shape_cast %198 : vector<12x192xf32> to vector<1x12x192xf32>
    tpu.vector_store %arg18[%c0_90, %c0_91, %c0_92], %201 {strides = array<i32>} : memref<1x12x192xf32, #tpu.memory_space<vmem>>, vector<1x12x192xf32>,
    %c0_93 = arith.constant 0 : index
    %c0_94 = arith.constant 0 : index
    %c0_95 = arith.constant 0 : index
    %202 = vector.load %arg17[%c0_93, %c0_94, %c0_95] : memref<1x12x192xf32, #tpu.memory_space<vmem>>, vector<1x12x192xf32>
    %203 = vector.shape_cast %202 : vector<1x12x192xf32> to vector<12x192xf32>
    %204 = arith.subf %198, %203 : vector<12x192xf32>
    %205 = arith.mulf %204, %204 : vector<12x192xf32>
    %206 = vector.shape_cast %205 : vector<12x192xf32> to vector<1x12x192xf32>
    %cst_96 = arith.constant dense<0.000000e+00> : vector<1xf32>
    %207 = vector.multi_reduction <add>, %206, %cst_96 [1, 2] : vector<1x12x192xf32> to vector<1xf32>
    %208 = vector.shape_cast %207 : vector<1xf32> to vector<1x1x1xf32>
    %209 = vector.extract %208[0, 0, 0] : f32 from vector<1x1x1xf32>
    %210 = vector.broadcast %209 : f32 to vector<1x1xf32>
    %c0_97 = arith.constant 0 : index
    %c0_98 = arith.constant 0 : index
    %c0_99 = arith.constant 0 : index
    %211 = vector.load %arg19[%c0_97, %c0_98, %c0_99] : memref<1x1x1xf32, #tpu.memory_space<vmem>>, vector<1x1x1xf32>
    %212 = vector.shape_cast %211 : vector<1x1x1xf32> to vector<1x1xf32>
    %213 = vector.shape_cast %210 : vector<1x1xf32> to vector<1x1x1xf32>
    tpu.vector_store %arg19[%c0_97, %c0_98, %c0_99], %213 {strides = array<i32>} : memref<1x1x1xf32, #tpu.memory_space<vmem>>, vector<1x1x1xf32>,
    return
  }
  func.func @transform_0(%arg0: i32) -> (i32, i32, i32) {
    %c0_i32 = arith.constant 0 : i32
    %c0_i32_0 = arith.constant 0 : i32
    %c0_i32_1 = arith.constant 0 : i32
    return %arg0, %c0_i32, %c0_i32_0 : i32, i32, i32
  }
  func.func @transform_1(%arg0: i32) -> (i32, i32, i32) {
    %c0_i32 = arith.constant 0 : i32
    %c0_i32_0 = arith.constant 0 : i32
    %c0_i32_1 = arith.constant 0 : i32
    %c0_i32_2 = arith.constant 0 : i32
    return %c0_i32, %c0_i32_0, %c0_i32_1 : i32, i32, i32
  }
  func.func @transform_2(%arg0: i32) -> (i32, i32, i32) {
    %c0_i32 = arith.constant 0 : i32
    %c0_i32_0 = arith.constant 0 : i32
    %c0_i32_1 = arith.constant 0 : i32
    %c0_i32_2 = arith.constant 0 : i32
    return %c0_i32, %c0_i32_0, %c0_i32_1 : i32, i32, i32
  }
  func.func @transform_3(%arg0: i32) -> (i32, i32, i32) {
    %c0_i32 = arith.constant 0 : i32
    %c0_i32_0 = arith.constant 0 : i32
    %c0_i32_1 = arith.constant 0 : i32
    %c0_i32_2 = arith.constant 0 : i32
    return %c0_i32, %c0_i32_0, %c0_i32_1 : i32, i32, i32
  }
  func.func @transform_4(%arg0: i32) -> (i32, i32, i32) {
    %c0_i32 = arith.constant 0 : i32
    %c0_i32_0 = arith.constant 0 : i32
    %c0_i32_1 = arith.constant 0 : i32
    %c0_i32_2 = arith.constant 0 : i32
    return %c0_i32, %c0_i32_0, %c0_i32_1 : i32, i32, i32
  }
  func.func @transform_5(%arg0: i32) -> (i32, i32, i32) {
    %c0_i32 = arith.constant 0 : i32
    %c0_i32_0 = arith.constant 0 : i32
    %c0_i32_1 = arith.constant 0 : i32
    %c0_i32_2 = arith.constant 0 : i32
    return %c0_i32, %c0_i32_0, %c0_i32_1 : i32, i32, i32
  }
  func.func @transform_6(%arg0: i32) -> (i32, i32, i32) {
    %c0_i32 = arith.constant 0 : i32
    %c0_i32_0 = arith.constant 0 : i32
    %c0_i32_1 = arith.constant 0 : i32
    %c0_i32_2 = arith.constant 0 : i32
    return %c0_i32, %c0_i32_0, %c0_i32_1 : i32, i32, i32
  }
  func.func @transform_7(%arg0: i32) -> (i32, i32, i32) {
    %c0_i32 = arith.constant 0 : i32
    %c0_i32_0 = arith.constant 0 : i32
    %c0_i32_1 = arith.constant 0 : i32
    %c0_i32_2 = arith.constant 0 : i32
    return %c0_i32, %c0_i32_0, %c0_i32_1 : i32, i32, i32
  }
  func.func @transform_8(%arg0: i32) -> (i32, i32, i32) {
    %c0_i32 = arith.constant 0 : i32
    %c0_i32_0 = arith.constant 0 : i32
    %c0_i32_1 = arith.constant 0 : i32
    %c0_i32_2 = arith.constant 0 : i32
    return %c0_i32, %c0_i32_0, %c0_i32_1 : i32, i32, i32
  }
  func.func @transform_9(%arg0: i32) -> (i32, i32, i32) {
    %c0_i32 = arith.constant 0 : i32
    %c0_i32_0 = arith.constant 0 : i32
    %c0_i32_1 = arith.constant 0 : i32
    %c0_i32_2 = arith.constant 0 : i32
    return %c0_i32, %c0_i32_0, %c0_i32_1 : i32, i32, i32
  }
  func.func @transform_10(%arg0: i32) -> (i32, i32, i32) {
    %c0_i32 = arith.constant 0 : i32
    %c0_i32_0 = arith.constant 0 : i32
    %c0_i32_1 = arith.constant 0 : i32
    %c0_i32_2 = arith.constant 0 : i32
    return %c0_i32, %c0_i32_0, %c0_i32_1 : i32, i32, i32
  }
  func.func @transform_11(%arg0: i32) -> (i32, i32, i32) {
    %c0_i32 = arith.constant 0 : i32
    %c0_i32_0 = arith.constant 0 : i32
    %c0_i32_1 = arith.constant 0 : i32
    %c0_i32_2 = arith.constant 0 : i32
    return %c0_i32, %c0_i32_0, %c0_i32_1 : i32, i32, i32
  }
  func.func @transform_12(%arg0: i32) -> (i32, i32) {
    %c0_i32 = arith.constant 0 : i32
    %c0_i32_0 = arith.constant 0 : i32
    %c0_i32_1 = arith.constant 0 : i32
    return %c0_i32, %c0_i32_0 : i32, i32
  }
  func.func @transform_13(%arg0: i32) -> (i32, i32) {
    %c0_i32 = arith.constant 0 : i32
    %c0_i32_0 = arith.constant 0 : i32
    %c0_i32_1 = arith.constant 0 : i32
    return %c0_i32, %c0_i32_0 : i32, i32
  }
  func.func @transform_14(%arg0: i32) -> (i32, i32) {
    %c0_i32 = arith.constant 0 : i32
    %c0_i32_0 = arith.constant 0 : i32
    %c0_i32_1 = arith.constant 0 : i32
    return %c0_i32, %c0_i32_0 : i32, i32
  }
  func.func @transform_15(%arg0: i32) -> (i32, i32) {
    %c0_i32 = arith.constant 0 : i32
    %c0_i32_0 = arith.constant 0 : i32
    %c0_i32_1 = arith.constant 0 : i32
    return %c0_i32, %c0_i32_0 : i32, i32
  }
  func.func @transform_16(%arg0: i32) -> (i32, i32, i32) {
    %c0_i32 = arith.constant 0 : i32
    %c0_i32_0 = arith.constant 0 : i32
    %c0_i32_1 = arith.constant 0 : i32
    return %arg0, %c0_i32, %c0_i32_0 : i32, i32, i32
  }
  func.func @transform_17(%arg0: i32) -> (i32, i32, i32) {
    %c0_i32 = arith.constant 0 : i32
    %c0_i32_0 = arith.constant 0 : i32
    %c0_i32_1 = arith.constant 0 : i32
    return %arg0, %c0_i32, %c0_i32_0 : i32, i32, i32
  }
  func.func @transform_18(%arg0: i32) -> (i32, i32, i32) {
    %c0_i32 = arith.constant 0 : i32
    %c0_i32_0 = arith.constant 0 : i32
    %c0_i32_1 = arith.constant 0 : i32
    return %arg0, %c0_i32, %c0_i32_0 : i32, i32, i32
  }
}

</mosaic_0001>

<bundles_post_ra>
// kernel: mae_forward.3
= control target key start
LH: loop header
LB: loop body
LE: loop exit
PB: predicated region body
PF: predicated region fallthrough
CT: control target
= control target key end

     0   :  { %s3026_s27 = smov 0   ;;  %s3473_s0 = inlined_call_operand.vmem [shape: f32[2,16,48], index: 0, kind: input, shape index: {}]   ;;  %s3474_s1 = inlined_call_operand.vmem [shape: f32[1,1,48], index: 1, kind: input, shape index: {}, may-alias: {1,6}]   ;;  %s3475_s2 = inlined_call_operand.vmem [shape: f32[1,1,48], index: 2, kind: input, shape index: {}, may-alias: {2,5,7,11}]   ;;  %s3476_s3 = inlined_call_operand.vmem [shape: f32[1,48,192], index: 3, kind: input, shape index: {}]   ;;  %s3477_s4 = inlined_call_operand.vmem [shape: f32[1,64,48], index: 4, kind: input, shape index: {}]   ;;  %s3478_s5 = inlined_call_operand.vmem [shape: f32[1,1,48], index: 5, kind: input, shape index: {}, may-alias: {2,5,7,11}]   ;;  %s3479_s6 = inlined_call_operand.vmem [shape: f32[1,1,48], index: 6, kind: input, shape index: {}, may-alias: {1,6}]   ;;  %s3480_s7 = inlined_call_operand.vmem [shape: f32[1,1,48], index: 7, kind: input, shape index: {}, may-alias: {2,5,7,11}]   ;;  %s3481_s8 = inlined_call_operand.vmem [shape: f32[1,48,192], index: 8, kind: input, shape index: {}]   ;;  %s3482_s9 = inlined_call_operand.vmem [shape: f32[1,1,192], index: 9, kind: input, shape index: {}]   ;;  %s3483_s10 = inlined_call_operand.vmem [shape: f32[1,192,48], index: 10, kind: input, shape index: {}]   ;;  %s3484_s11 = inlined_call_operand.vmem [shape: f32[1,1,48], index: 11, kind: input, shape index: {}, may-alias: {2,5,7,11}]   ;;  %s3485_s12 = inlined_call_operand.vmem [shape: f32[1,48], index: 12, kind: input, shape index: {}]   ;;  %s3486_s13 = inlined_call_operand.vmem [shape: f32[1,48], index: 13, kind: input, shape index: {}]   ;;  %s3487_s14 = inlined_call_operand.vmem [shape: f32[48,192], index: 14, kind: input, shape index: {}]   ;;  %s3488_s15 = inlined_call_operand.vmem [shape: f32[1,192], index: 15, kind: input, shape index: {}]   ;;  %s3489_s16 = inlined_call_operand.vmem [shape: f32[2,12,192], index: 16, kind: input, shape index: {}]   ;;  %s3490_s17 = inlined_call_operand.vmem [shape: f32[2,12,192], index: 17, kind: output, shape index: {0}]   ;;  %s3491_s18 = inlined_call_operand.vmem [shape: f32[2,1,1], index: 18, kind: output, shape index: {1}]  }
   0x1   :  { %3492 = sst [smem:[#allocation2_spill]] %s3473_s0 }
   0x2   :  { %3493 = sst [smem:[#allocation3_spill]] %s3474_s1 }
   0x3   :  { %3494 = sst [smem:[#allocation4_spill]] %s3475_s2 }
   0x4 LB: > { %s2478_s28 = sadd.s32 4294967295, %s2920_s27   ;;  %p2482_p0 = scmp.ge.s32.totalorder %s2920_s27, 1  ;;  %s2920_s27 = sphi %s3026_s27, %s29_s27  }
   0x5   : > { %p525_p1 = scmp.lt.s32.totalorder %s2920_s27, 3 }
   0x7   : > { %p526_p2 = pnand %p2482_p0, %p525_p1 }
   0x8   : > { %p587_p3 = scmp.lt.s32.totalorder (!%p526_p2), %s2478_s28, 1  ;;  %vm609_vm0 = vcmask (!%p526_p2), 392192   ;;  %s3495_s19 = sld [smem:[#allocation2_spill]] (!%p526_p2)  ;;  %v654_v14 = vld [vmem:[%s3476_s3 + $0x8] sm:$0xff] (!%p526_p2)  ;;  %v656_v15 = vld [vmem:[%s3476_s3 + $0x18] sm:$0xff] (!%p526_p2)  ;;  %v653_v17 = vld [vmem:[%s3476_s3] sm:$0xff] (!%p526_p2) }
   0x9   : > { %529 = sbr.rel (%p526_p2) target bundleno = 4236 (0x108c), region = 88  ;;  %v2674_v16 = vpack.c.bf16 (!%p526_p2), %v656_v15, %v654_v14  ;;  %v655_v18 = vld [vmem:[%s3476_s3 + $0x10] sm:$0xff] (!%p526_p2)  ;;  %v658_v20 = vld [vmem:[%s3476_s3 + $0x28] sm:$0xff] (!%p526_p2)  ;;  %v660_v21 = vld [vmem:[%s3476_s3 + $0x38] sm:$0xff] (!%p526_p2)  ;;  %v2922_v27 = vmov (!%p526_p2), 0.0   ;;  %s3496_s20 = sld [smem:[#allocation3_spill]] (!%p526_p2) }
   0xa   : > { %v2676_v19 = vpack.c.bf16 (!%p526_p2), %v655_v18, %v653_v17  ;;  %v657_v22 = vld [vmem:[%s3476_s3 + $0x20] sm:$0xff] (!%p526_p2)  ;;  %v2678_v23 = vpack.c.bf16 (!%p526_p2), %v660_v21, %v658_v20  ;;  %v659_v24 = vld [vmem:[%s3476_s3 + $0x30] sm:$0xff] (!%p526_p2)  ;;  %v662_v25 = vld [vmem:[%s3476_s3 + $0x48] sm:$0xff] (!%p526_p2)  ;;  %735 = vmatprep.mubr.f32.mxu0 (!%p526_p2), %v2922_v27  ;;  %s3497_s2 = sld [smem:[#allocation4_spill]] (!%p526_p2)  ;;  %vm764_vm1 = vcmask (!%p526_p2), 130048   ;;  %s2923_s23 = smov (!%p526_p2), 64  }
   0xb   : > { %2675 = vmatprep.subr.bf16.mxu0 (!%p526_p2), %v2674_v16  ;;  %v664_v26 = vld [vmem:[%s3476_s3 + $0x58] sm:$0xff] (!%p526_p2)  ;;  %v2680_v28 = vpack.c.bf16 (!%p526_p2), %v659_v24, %v657_v22  ;;  %v661_v30 = vld [vmem:[%s3476_s3 + $0x40] sm:$0xff] (!%p526_p2)  ;;  %v663_v31 = vld [vmem:[%s3476_s3 + $0x50] sm:$0xff] (!%p526_p2)  ;;  %s2924_s24 = smov (!%p526_p2), 112   ;;  %s2925_s25 = smov (!%p526_p2), 32   ;;  %vm2105_vm3 = vcmask (!%p526_p2), 523264  }
   0xc   : > { %2677 = vmatpush1.bf16.msra.mxu0 (!%p526_p2), %v2676_v19  ;;  %v2682_v29 = vpack.c.bf16 (!%p526_p2), %v664_v26, %v662_v25  ;;  %v2684_v32 = vpack.c.bf16 (!%p526_p2), %v663_v31, %v661_v30  ;;  %s2926_s26 = smov (!%p526_p2), 96   ;;  %vm3118_vm2 = vmpackc.low (!%p526_p2), %vm764_vm1, %vm764_vm1  ;;  %s2928_s30 = smov (!%p526_p2), 80   ;;  %v750_v61 = vld [vmem:[%s3477_s4 + $0x10] sm:$0xff] (!%p526_p2)  ;;  %vm2203_vm4 = vcmask (!%p526_p2), 388096   ;;  %vm2353_vm5 = vcmask (!%p526_p2), 519168  }
   0xd   : > { %2679 = vmatprep.subr.bf16.mxu0 (!%p526_p2), %v2678_v23  ;;  %s2929_s0 = smov (!%p526_p2), 16   ;;  %vm2369_vm6 = vcmask (!%p526_p2), 1043456   ;;  %vm2384_vm7 = vcmask (!%p526_p2), 0  }
   0xf   : > { %v2489_v40 = vld [vmem:[%s3496_s20] ss:$0 sm:$0xff] (!%p526_p2) }
  0x10   : > { %s3501_s28 = smov (!%p587_p3, %s2478_s28), 1  ;;  %2681 = vmatpush1.bf16.msra.mxu0 %v2680_v28  ;;  %v2490_v42 = vld [vmem:[%s3497_s2] ss:$0 sm:$0xff] }
  0x11   : > { %s2539_s29 = sshll.u32 %s3501_s28, 4  ;;  %2683 = vmatprep.subr.bf16.mxu0 %v2682_v29 }
  0x12   : > { %s591_s1 = scalar_lea.vmem %s3495_s19, %s2539_s29  ;;  %s2927_s29 = smov 48  }
  0x13   : > { %v3040_v0 = vld [vmem:[%s591_s1] sm:$0xff]  ;;  %v3042_v1 = vld [vmem:[%s591_s1 + $0x8] sm:$0xff] }
  0x14   : > { %v610_v2 = vsel %vm609_vm0, %v3040_v0, 0.0  ;;  %v613_v3 = vsel %vm609_vm0, %v3042_v1, 0.0  ;;  %2685 = vmatpush1.bf16.msra.mxu0 %v2684_v32 }
  0x15   : > { %611 = vadd.xlane.f32.xlu0 %v610_v2 }
  0x19   : > { %614 = vadd.xlane.f32.xlu0 %v613_v3 }
  0xa2   : > { %v612_v4 = vpop.xlane.xlu0 %611 }
  0xa3   : > { %v617_v5 = vmul.f32 0.020833334, %v612_v4 }
  0xa5   : > { %v619_v6 = vsub.f32 %v3040_v0, %v617_v5 }
  0xa6   : > { %v615_v7 = vpop.xlane.xlu0 %614 }
  0xa7   : > { %v618_v8 = vmul.f32 0.020833334, %v615_v7  ;;  %v621_v9 = vmul.f32 %v619_v6, %v619_v6 }
  0xa9   : > { %v620_v10 = vsub.f32 %v3042_v1, %v618_v8  ;;  %v623_v11 = vsel %vm609_vm0, %v621_v9, 0.0 }
  0xaa   : > { %624 = vadd.xlane.f32.xlu1 %v623_v11 }
  0xab   : > { %v622_v12 = vmul.f32 %v620_v10, %v620_v10 }
  0xad   : > { %v626_v13 = vsel %vm609_vm0, %v622_v12, 0.0 }
  0xae   : > { %627 = vadd.xlane.f32.xlu1 %v626_v13 }
 0x137   : > { %v625_v33 = vpop.xlane.xlu1 %624 }
 0x138   : > { %v629_v34 = vmul.f32 0.020833334, %v625_v33 }
 0x13a   : > { %v631_v35 = vadd.f32 1e-05, %v629_v34 }
 0x13b   : > { %v628_v36 = vpop.xlane.xlu1 %627 }
 0x13c   : > { %2862 = vrsqrt.f32 %v631_v35  ;;  %v630_v37 = vmul.f32 0.020833334, %v628_v36 }
 0x13e   : > { %v632_v38 = vadd.f32 1e-05, %v630_v37 }
 0x140   : > { %2864 = vrsqrt.f32 %v632_v38 }
 0x146   : > { %v2863_v39 = vpop.eup %2862 }
 0x147   : > { %v635_v41 = vmul.f32 %v2863_v39, %v619_v6 }
 0x149   : > { %v643_v43 = vmul.f32 %v2489_v40, %v635_v41 }
 0x14a   : > { %v2865_v44 = vpop.eup %2864 }
 0x14b   : > { %v651_v45 = vadd.f32 %v2490_v42, %v643_v43  ;;  %v636_v46 = vmul.f32 %v2865_v44, %v620_v10 }
 0x14d   : > { %2491 = vmatmul.mubr.msk.f32.vlgmr.msra.gmra.mrb[0].mxu0 %vm609_vm0, %v651_v45  ;;  %v644_v47 = vmul.f32 %v2489_v40, %v636_v46 }
 0x14e   : > { %741 = vmatprep.mubr.f32.mxu0 %v2922_v27 }
 0x14f   : > { %v652_v48 = vadd.f32 %v2490_v42, %v644_v47 }
 0x151   : > { %2492 = vmatmul.mubr.msk.f32.gmra.mrb[2].mxu0 %vm609_vm0, %v652_v48 }
 0x220   : > { %v737_v49 = vpop.f32.mrb[0].mxu0 }
 0x221   : > { %v739_v50 = vpop.f32.mrb[1].mxu0  ;;  %v3098_v51 = vmul.f32 0.25, %v737_v49 }
 0x223   : > { %2594 = vmatprep.mubr.msk.f32.mxu0 %vm764_vm1, %v3098_v51 }
 0x224   : > { %v743_v52 = vpop.f32.mrb[2].mxu0 }
 0x225   : > { %v745_v53 = vpop.f32.mrb[3].mxu0  ;;  %v3102_v54 = vpack.i.bf16 %v743_v52, %v737_v49  ;;  %v3109_v57 = vmul.f32 0.25, %v743_v52 }
 0x226   : > { %v2692_v55 = vpack.c.bf16 %v745_v53, %v739_v50  ;;  %v3104_v56 = vpack.i.bf16 %v745_v53, %v739_v50 }
 0x227   : > { %2828 = vrot.lane.b32.xlu0 %v3102_v54, %s2923_s23 }
 0x22b   : > { %953 = vrot.lane.b32.xlu0 %v3098_v51, %s2924_s24 }
 0x22f   : > { %955 = vrot.lane.b32.xlu0 %v3109_v57, %s2924_s24 }
 0x233   : > { %2838 = vrot.lane.b32.xlu0 %v3102_v54, %s2925_s25 }
 0x237   : > { %1319 = vrot.lane.b32.xlu0 %v3109_v57, %s2926_s26 }
 0x299   : > { %v2829_v58 = vpop.permute.xlu0 %2828 }
 0x29a   : > { %v2831_v59 = vunpack.i.h.bf16 %v2829_v58  ;;  %v2830_v60 = vunpack.i.l.bf16 %v2829_v58 }
 0x29c   : > { %v2686_v62 = vpack.c.bf16 %v2831_v59, %v2830_v60 }
 0x29d   : > { %v954_v15 = vpop.permute.xlu0 %953 }
 0x29e   : > { %2688 = vmatprep.subr.msk.bf16.mxu0 %vm3118_vm2, %v2686_v62 }
 0x29f   : > { %2691 = vmatpush3.bf16.xpose.msk.msra.mxu0 %vm3118_vm2, %v2686_v62 }
 0x2a0   : > { %2693 = vmatprep.subr.bf16.mxu0 %v2692_v55 }
 0x2a1   : > { %v956_v18 = vpop.permute.xlu0 %955 }
 0x2a5   : > { %v2839_v23 = vpop.permute.xlu0 %2838 }
 0x2a6   : > { %2595 = vmatmul.mubr.msk.f32.vlgmr.msra.gmra.mrb[4].mxu0 %vm764_vm1, %v3109_v57  ;;  %v2841_v26 = vunpack.i.h.bf16 %v2839_v23  ;;  %v2840_v28 = vunpack.i.l.bf16 %v2839_v23 }
 0x2a7   : > { %2695 = vmatpush3.bf16.msra.mxu0 %v2692_v55 }
 0x2a8   : > { %v2714_v31 = vpack.c.bf16 %v2841_v26, %v2840_v28 }
 0x2a9   : > { %v1320_v33 = vpop.permute.xlu0 %1319 }
 0x379   : > { %v2596_v63 = vpop.f32.mrb[4].mxu0 }
 0x37a   : > { %v841_v2 = vpop.f32.mrb[5].mxu0  ;;  %v853_v4 = vsel %vm764_vm1, %v2596_v63, -inf }
 0x37b   : > { %v850_v3 = vsel %vm764_vm1, %v841_v2, -inf }
 0x37c   : > { %851 = vmax.xlane.f32.xlu1 %v850_v3 }
 0x380   : > { %854 = vmax.xlane.f32.xlu1 %v853_v4 }
 0x409   : > { %v852_v5 = vpop.xlane.xlu1 %851 }
 0x40a   : > { %v856_v6 = vsub.f32 %v841_v2, %v852_v5 }
 0x40c   : > { %v858_v9 = vmul.f32 1.442695, %v856_v6 }
 0x40d   : > { %v855_v7 = vpop.xlane.xlu1 %854 }
 0x40e   : > { %v857_v8 = vsub.f32 %v2596_v63, %v855_v7 }
 0x410   : > { %v860_v10 = vmul.f32 1.442695, %v857_v8 }
 0x412   : > { %2866 = vpow2.f32 %v860_v10 }
 0x413   : > { %2868 = vpow2.f32 %v858_v9 }
 0x41c   : > { %v2867_v11 = vpop.eup %2866 }
 0x41d   : > { %v865_v12 = vsel %vm764_vm1, %v2867_v11, 0.0  ;;  %v2869_v13 = vpop.eup %2868 }
 0x41e   : > { %866 = vadd.xlane.f32.xlu1 %v865_v12  ;;  %v862_v14 = vsel %vm764_vm1, %v2869_v13, 0.0 }
 0x422   : > { %863 = vadd.xlane.f32.xlu1 %v862_v14 }
 0x433   : > { %2833 = vrot.lane.b32.xlu1 %v3102_v54, %s2927_s29 }
 0x437   : > { %1317 = vrot.lane.b32.xlu1 %v3098_v51, %s2926_s26 }
 0x4ab   : > { %v867_v16 = vpop.xlane.xlu1 %866 }
 0x4ac   : > { %2870 = vrcp.f32 %v867_v16 }
 0x4af   : > { %v864_v17 = vpop.xlane.xlu1 %863 }
 0x4b0   : > { %2872 = vrcp.f32 %v864_v17 }
 0x4b3   : > { %v2834_v19 = vpop.permute.xlu1 %2833 }
 0x4b4   : > { %v2836_v20 = vunpack.i.h.bf16 %v2834_v19  ;;  %v2835_v21 = vunpack.i.l.bf16 %v2834_v19  ;;  %v751_v19 = vld [vmem:[%s3477_s4 + $0x18] sm:$0xff] }
 0x4b6   : > { %v2696_v22 = vpack.c.bf16 %v2836_v20, %v2835_v21  ;;  %v2871_v24 = vpop.eup %2870  ;;  %v2706_v20 = vpack.c.bf16 %v751_v19, %v750_v61  ;;  %v748_v21 = vld [vmem:[%s3477_s4] sm:$0xff] }
 0x4b7   : > { %v871_v30 = vmul.f32 %v2871_v24, %v2867_v11  ;;  %v1318_v32 = vpop.permute.xlu1 %1317 }
 0x4b8   : > { %2698 = vmatprep.subr.msk.bf16.mxu0 %vm3118_vm2, %v2696_v22 }
 0x4ba   : > { %v2873_v25 = vpop.eup %2872 }
 0x4bb   : > { %v869_v29 = vmul.f32 %v2873_v25, %v2869_v13 }
 0x4bd   : > { %2601 = vmatprep.mubr.msk.f32.mxu0 %vm764_vm1, %v869_v29 }
 0x4be   : > { %2602 = vmatmul.mubr.msk.f32.vlgmr.msra.gmra.mrb[6].mxu0 %vm764_vm1, %v871_v30 }
 0x4bf   : > { %2701 = vmatpush3.bf16.xpose.msk.msra.mxu0 %vm3118_vm2, %v2696_v22  ;;  %2608 = vmatprep.mubr.msk.f32.mxu0 %vm764_vm1, %v954_v15  ;;  %v749_v22 = vld [vmem:[%s3477_s4 + $0x8] sm:$0xff] }
 0x4c0   : > { %2716 = vmatprep.subr.msk.bf16.mxu0 %vm3118_vm2, %v2714_v31  ;;  %v2710_v23 = vpack.c.bf16 %v749_v22, %v748_v21 }
 0x4c6   : > { %2609 = vmatmul.mubr.msk.f32.vlgmr.msra.gmra.mrb[8].mxu0 %vm764_vm1, %v956_v18 }
 0x4c7   : > { %2719 = vmatpush3.bf16.xpose.msk.msra.mxu0 %vm3118_vm2, %v2714_v31  ;;  %2636 = vmatprep.mubr.msk.f32.mxu0 %vm764_vm1, %v1318_v32 }
 0x4ce   : > { %2637 = vmatmul.mubr.msk.f32.vlgmr.msra.gmra.mrb[10].mxu0 %vm764_vm1, %v1320_v33 }
 0x591   : > { %v3149_v34 = vpop.f32.mrb[6].mxu0 }
 0x592   : > { %v3151_v35 = vpop.f32.mrb[7].mxu0 }
 0x599   : > { %v2610_v36 = vpop.f32.mrb[8].mxu0 }
 0x59a   : > { %v1035_v37 = vpop.f32.mrb[9].mxu0  ;;  %v1047_v38 = vsel %vm764_vm1, %v2610_v36, -inf }
 0x59b   : > { %1048 = vmax.xlane.f32.xlu0 %v1047_v38  ;;  %v1044_v39 = vsel %vm764_vm1, %v1035_v37, -inf  ;;  %v752_v38 = vld [vmem:[%s3477_s4 + $0x20] sm:$0xff] }
 0x59c   : > { %1045 = vmax.xlane.f32.xlu1 %v1044_v39  ;;  %v753_v39 = vld [vmem:[%s3477_s4 + $0x28] sm:$0xff] }
 0x5a1   : > { %v3155_v40 = vpop.f32.mrb[10].mxu0 }
 0x5a2   : > { %v1399_v41 = vpop.f32.mrb[11].mxu0  ;;  %v1411_v2 = vsel %vm764_vm1, %v3155_v40, -inf }
 0x5a3   : > { %v1408_v42 = vsel %vm764_vm1, %v1399_v41, -inf }
 0x5ad   : > { %2843 = vrot.lane.b32.xlu1 %v3104_v56, %s2924_s24  ;;  %s604_s24 = scalar_lea.vmem %s3491_s18, %s3501_s28 }
 0x5b1   : > { %1600 = vrot.lane.b32.xlu1 %v3098_v51, %s2928_s30 }
 0x5b5   : > { %1602 = vrot.lane.b32.xlu1 %v3109_v57, %s2928_s30 }
 0x5d9   : > { %1409 = vmax.xlane.f32.xlu1 %v1408_v42 }
 0x5ea   : > { %2853 = vrot.lane.b32.xlu1 %v3104_v56, %s2926_s26  ;;  %s2540_s26 = sshll.u32 %s3501_s28, 5 }
 0x5eb   : > { %s596_s1 = scalar_lea.vmem %s3489_s16, %s2540_s26  ;;  %s601_s22 = scalar_lea.vmem %s3490_s17, %s2540_s26 }
 0x5ee   : > { %2858 = vrot.lane.b32.xlu1 %v3104_v56, %s2928_s30 }
 0x628   : > { %v1049_v43 = vpop.xlane.xlu0 %1048 }
 0x629   : > { %v1051_v44 = vsub.f32 %v2610_v36, %v1049_v43  ;;  %v1046_v45 = vpop.xlane.xlu1 %1045  ;;  %v2724_v43 = vpack.c.bf16 %v753_v39, %v752_v38  ;;  %v1942_v38 = vld [vmem:[%s3481_s8 + $0x20] sm:$0xff]  ;;  %v1944_v39 = vld [vmem:[%s3481_s8 + $0x30] sm:$0xff] }
 0x62a   : > { %v1050_v46 = vsub.f32 %v1035_v37, %v1046_v45 }
 0x62b   : > { %v1054_v47 = vmul.f32 1.442695, %v1051_v44 }
 0x62c   : > { %v1052_v48 = vmul.f32 1.442695, %v1050_v46 }
 0x62d   : > { %v2844_v49 = vpop.permute.xlu1 %2843 }
 0x62e   : > { %2874 = vpow2.f32 %v1052_v48  ;;  %v2846_v50 = vunpack.i.h.bf16 %v2844_v49  ;;  %v2845_v51 = vunpack.i.l.bf16 %v2844_v49 }
 0x62f   : > { %2876 = vpow2.f32 %v1054_v47 }
 0x630   : > { %v2702_v52 = vpack.c.bf16 %v2846_v50, %v2845_v51 }
 0x631   : > { %v1601_v53 = vpop.permute.xlu1 %1600 }
 0x632   : > { %2703 = vmatprep.subr.bf16.mxu1 %v2702_v52  ;;  %2657 = vmatprep.mubr.msk.f32.mxu0 %vm764_vm1, %v1601_v53 }
 0x633   : > { %2705 = vmatpush3.bf16.msra.mxu1 %v2702_v52 }
 0x634   : > { %2707 = vmatprep.subr.bf16.mxu1 %v2706_v20 }
 0x635   : > { %v1603_v59 = vpop.permute.xlu1 %1602 }
 0x638   : > { %v2875_v55 = vpop.eup %2874 }
 0x639   : > { %v1056_v56 = vsel %vm764_vm1, %v2875_v55, 0.0  ;;  %v2877_v57 = vpop.eup %2876 }
 0x63a   : > { %1057 = vadd.xlane.f32.xlu0 %v1056_v56  ;;  %v1059_v58 = vsel %vm764_vm1, %v2877_v57, 0.0 }
 0x63e   : > { %1060 = vadd.xlane.f32.xlu0 %v1059_v58 }
 0x654   : > { %2848 = vrot.lane.b32.xlu0 %v3102_v54, %s2929_s0 }
 0x666   : > { %v1410_v60 = vpop.xlane.xlu1 %1409 }
 0x667   : > { %v1414_v62 = vsub.f32 %v1399_v41, %v1410_v60  ;;  %v755_v60 = vld [vmem:[%s3477_s4 + $0x38] sm:$0xff] }
 0x669   : > { %v1416_v63 = vmul.f32 1.442695, %v1414_v62 }
 0x66a   : > { %v2854_v25 = vpop.permute.xlu1 %2853 }
 0x66b   : > { %2878 = vpow2.f32 %v1416_v63  ;;  %v2856_v28 = vunpack.i.h.bf16 %v2854_v25  ;;  %v2855_v29 = vunpack.i.l.bf16 %v2854_v25 }
 0x66d   : > { %v2720_v32 = vpack.c.bf16 %v2856_v28, %v2855_v29  ;;  %v1941_v28 = vld [vmem:[%s3481_s8 + $0x18] sm:$0xff] }
 0x66e   : > { %v2859_v41 = vpop.permute.xlu1 %2858 }
 0x66f   : > { %v2861_v45 = vunpack.i.h.bf16 %v2859_v41  ;;  %v2860_v46 = vunpack.i.l.bf16 %v2859_v41  ;;  %v1947_v41 = vld [vmem:[%s3481_s8 + $0x48] sm:$0xff] }
 0x671   : > { %v2734_v48 = vpack.c.bf16 %v2861_v45, %v2860_v46  ;;  %v2081_v46 = vld [vmem:[%s3483_s10] sm:$0xff] }
 0x673   : > { %1412 = vmax.xlane.f32.xlu0 %v1411_v2 }
 0x675   : > { %v3171_v3 = vpop.eup %2878 }
 0x676   : > { %v1420_v4 = vsel %vm764_vm1, %v3171_v3, 0.0 }
 0x677   : > { %1421 = vadd.xlane.f32.xlu0 %v1420_v4 }
 0x6c7   : > { %v1058_v5 = vpop.xlane.xlu0 %1057 }
 0x6c8   : > { %2880 = vrcp.f32 %v1058_v5 }
 0x6cb   : > { %v1061_v6 = vpop.xlane.xlu0 %1060 }
 0x6cc   : > { %2882 = vrcp.f32 %v1061_v6 }
 0x6cf   : > { %v2849_v54 = vpop.permute.xlu0 %2848 }
 0x6d0   : > { %v2851_v7 = vunpack.i.h.bf16 %v2849_v54  ;;  %v2850_v8 = vunpack.i.l.bf16 %v2849_v54 }
 0x6d2   : > { %v2881_v9 = vpop.eup %2880  ;;  %v2728_v10 = vpack.c.bf16 %v2851_v7, %v2850_v8 }
 0x6d3   : > { %v1063_v11 = vmul.f32 %v2881_v9, %v2875_v55 }
 0x6d4   : > { %2730 = vmatprep.subr.msk.bf16.mxu0 %vm3118_vm2, %v2728_v10 }
 0x6d5   : > { %2615 = vmatprep.mubr.msk.f32.mxu1 %vm764_vm1, %v1063_v11  ;;  %2733 = vmatpush3.bf16.xpose.msk.msra.mxu0 %vm3118_vm2, %v2728_v10  ;;  %v2525_v11 = vld [vmem:[%s3478_s5] ss:$0 sm:$0xff] }
 0x6d6   : > { %v2883_v12 = vpop.eup %2882 }
 0x6d7   : > { %v1065_v13 = vmul.f32 %v2883_v12, %v2877_v57 }
 0x6d9   : > { %2616 = vmatmul.mubr.msk.f32.vlgmr.msra.gmra.mrb[0].mxu1 %vm764_vm1, %v1065_v13 }
 0x6da   : > { %2709 = vmatpush3.bf16.msra.mxu1 %v2706_v20 }
 0x6db   : > { %2711 = vmatprep.subr.bf16.mxu1 %v2710_v23 }
 0x6dc   : > { %2658 = vmatmul.mubr.msk.f32.vlgmr.msra.gmra.mrb[12].mxu0 %vm764_vm1, %v1603_v59  ;;  %v754_v59 = vld [vmem:[%s3477_s4 + $0x30] sm:$0xff] }
 0x6dd   : > { %2032 = vmatprep.mubr.f32.mxu0 %v2922_v27  ;;  %v2738_v2 = vpack.c.bf16 %v755_v60, %v754_v59 }
 0x700   : > { %v1413_v14 = vpop.xlane.xlu0 %1412 }
 0x701   : > { %v1415_v15 = vsub.f32 %v3155_v40, %v1413_v14 }
 0x703   : > { %v1418_v16 = vmul.f32 1.442695, %v1415_v15 }
 0x704   : > { %v1422_v24 = vpop.xlane.xlu0 %1421 }
 0x705   : > { %2884 = vpow2.f32 %v1418_v16 }
 0x706   : > { %2886 = vrcp.f32 %v1422_v24 }
 0x70f   : > { %v2885_v17 = vpop.eup %2884 }
 0x710   : > { %v1423_v18 = vsel %vm764_vm1, %v2885_v17, 0.0  ;;  %v2887_v40 = vpop.eup %2886 }
 0x711   : > { %1424 = vadd.xlane.f32.xlu0 %v1423_v18 }
 0x79e   : > { %v1425_v26 = vpop.xlane.xlu0 %1424 }
 0x79f   : > { %2888 = vrcp.f32 %v1425_v26  ;;  %v1939_v26 = vld [vmem:[%s3481_s8 + $0x8] sm:$0xff] }
 0x7a0   : > { %v2742_v29 = vpack.c.bf16 %v1941_v28, %v1939_v26  ;;  %v2099_v28 = vld [vmem:[%s3483_s10 + $0x90] sm:$0xff] }
 0x7a2   : > { %2743 = vmatprep.subr.bf16.mxu0 %v2742_v29  ;;  %v2100_v29 = vld [vmem:[%s3483_s10 + $0x98] sm:$0xff] }
 0x7a9   : > { %v2889_v44 = vpop.eup %2888 }
 0x7aa   : > { %v1429_v47 = vmul.f32 %v2889_v44, %v2885_v17 }
 0x7ac   : > { %v2617_v30 = vpop.f32.mrb[0].mxu1 }
 0x7ad   : > { %v1146_v31 = vpop.f32.mrb[1].mxu1 }
 0x7ae   : > { %2622 = vmatprep.mubr.msk.f32.mxu1 %vm764_vm1, %v1146_v31  ;;  %v1940_v31 = vld [vmem:[%s3481_s8 + $0x10] sm:$0xff] }
 0x7af   : > { %2623 = vmatmul.mubr.msk.f32.vlgmr.msra.gmra.mrb[2].mxu1 %vm764_vm1, %v2617_v30  ;;  %v2659_v33 = vpop.f32.mrb[12].mxu0  ;;  %v1938_v30 = vld [vmem:[%s3481_s8] sm:$0xff] }
 0x7b0   : > { %2713 = vmatpush3.bf16.msra.mxu1 %v2710_v23  ;;  %2629 = vmatprep.mubr.msk.f32.mxu1 %vm764_vm1, %v3151_v35  ;;  %v1682_v36 = vpop.f32.mrb[13].mxu0  ;;  %v1694_v42 = vsel %vm764_vm1, %v2659_v33, -inf  ;;  %v1427_v35 = vmul.f32 %v2887_v40, %v3171_v3  ;;  %v2748_v40 = vpack.c.bf16 %v1944_v39, %v1942_v38  ;;  %v1952_v39 = vlaneseq }
 0x7b1   : > { %2721 = vmatprep.subr.bf16.mxu1 %v2720_v32  ;;  %v1691_v37 = vsel %vm764_vm1, %v1682_v36, -inf }
 0x7b2   : > { %1692 = vmax.xlane.f32.xlu0 %v1691_v37 }
 0x7b6   : > { %1695 = vmax.xlane.f32.xlu0 %v1694_v42  ;;  %v1949_v42 = vld [vmem:[%s3481_s8 + $0x58] sm:$0xff] }
 0x7b7   : > { %2630 = vmatmul.mubr.msk.f32.vlgmr.msra.gmra.mrb[2].mxu1 %vm764_vm1, %v3149_v34  ;;  %v2750_v44 = vpack.c.bf16 %v1949_v42, %v1947_v41  ;;  %v1950_v42 = vld [vmem:[%s3482_s9] sm:$0x3] }
 0x7b8   : > { %2723 = vmatpush3.bf16.msra.mxu1 %v2720_v32  ;;  %2643 = vmatprep.mubr.msk.f32.mxu1 %vm764_vm1, %v1427_v35  ;;  %v2744_v32 = vpack.c.bf16 %v1940_v31, %v1938_v30  ;;  %v1948_v35 = vld [vmem:[%s3481_s8 + $0x50] sm:$0xff]  ;;  %v2782_v30 = vpack.c.bf16 %v2100_v29, %v2099_v28  ;;  %v2101_v31 = vld [vmem:[%s3483_s10 + $0xa0] sm:$0xff] }
 0x7b9   : > { %2725 = vmatprep.subr.bf16.mxu1 %v2724_v43  ;;  %v2532_v28 = vld [vmem:[%s3484_s11] ss:$0 sm:$0xff] }
 0x7ba   : > { %2745 = vmatpush1.bf16.msra.mxu0 %v2744_v32  ;;  %v2102_v32 = vld [vmem:[%s3483_s10 + $0xa8] sm:$0xff] }
 0x7bb   : > { %2644 = vmatmul.mubr.msk.f32.vlgmr.msra.gmra.mrb[4].mxu1 %vm764_vm1, %v1429_v47  ;;  %v2082_v47 = vld [vmem:[%s3483_s10 + $0x8] sm:$0xff] }
 0x7bc   : > { %2727 = vmatpush3.bf16.msra.mxu1 %v2724_v43  ;;  %v1946_v43 = vld [vmem:[%s3481_s8 + $0x40] sm:$0xff] }
 0x7bd   : > { %2735 = vmatprep.subr.bf16.mxu1 %v2734_v48  ;;  %v2752_v45 = vpack.c.bf16 %v1948_v35, %v1946_v43 }
 0x83f   : > { %v1693_v49 = vpop.xlane.xlu0 %1692 }
 0x840   : > { %v1697_v50 = vsub.f32 %v1682_v36, %v1693_v49  ;;  %v1945_v36 = vld [vmem:[%s3481_s8 + $0x38] sm:$0xff]  ;;  %v2930_v49 = vmov 0.0|0.0  }
 0x842   : > { %v1699_v51 = vmul.f32 1.442695, %v1697_v50  ;;  %v2755_v50 = vpack.c.bf16 %v2082_v47, %v2081_v46 }
 0x843   : > { %v1696_v52 = vpop.xlane.xlu0 %1695 }
 0x844   : > { %2890 = vpow2.f32 %v1699_v51  ;;  %v1698_v53 = vsub.f32 %v2659_v33, %v1696_v52  ;;  %v1943_v33 = vld [vmem:[%s3481_s8 + $0x28] sm:$0xff]  ;;  %v2084_v51 = vld [vmem:[%s3483_s10 + $0x18] sm:$0xff] }
 0x845   : > { %v2746_v37 = vpack.c.bf16 %v1945_v36, %v1943_v33  ;;  %v2785_v33 = vpack.c.bf16 %v2102_v32, %v2101_v31  ;;  %v2103_v36 = vld [vmem:[%s3483_s10 + $0xb0] sm:$0xff] }
 0x846   : > { %v1701_v55 = vmul.f32 1.442695, %v1698_v53  ;;  %v2085_v53 = vld [vmem:[%s3483_s10 + $0x20] sm:$0xff] }
 0x847   : > { %2747 = vmatprep.subr.bf16.mxu0 %v2746_v37  ;;  %v2104_v37 = vld [vmem:[%s3483_s10 + $0xb8] sm:$0xff] }
 0x848   : > { %2892 = vpow2.f32 %v1701_v55  ;;  %2749 = vmatpush1.bf16.msra.mxu0 %v2748_v40  ;;  %v2086_v55 = vld [vmem:[%s3483_s10 + $0x28] sm:$0xff]  ;;  %v2788_v38 = vpack.c.bf16 %v2104_v37, %v2103_v36  ;;  %v3385_v40 = vshrl.u32 %v1952_v39, 7 }
 0x849   : > { %2751 = vmatprep.subr.bf16.mxu0 %v2750_v44 }
 0x84a   : > { %v1954_v41 = vsub.s32 0, %v3385_v40  ;;  %v1958_v43 = vsub.s32 1, %v3385_v40 }
 0x84c   : > { %2753 = vmatpush1.bf16.msra.mxu0 %v2752_v45  ;;  %v1955_v44 = vrot.slane %v1950_v42, %v1954_v41  ;;  %v1959_v35 = vrot.slane %v1950_v42, %v1958_v43 }
 0x84e   : > { %v2891_v56 = vpop.eup %2890 }
 0x84f   : > { %v1703_v34 = vsel %vm764_vm1, %v2891_v56, 0.0 }
 0x850   : > { %1704 = vadd.xlane.f32.xlu0 %v1703_v34  ;;  %v2087_v34 = vld [vmem:[%s3483_s10 + $0x30] sm:$0xff] }
 0x852   : > { %v2893_v57 = vpop.eup %2892 }
 0x853   : > { %v1706_v58 = vsel %vm764_vm1, %v2893_v57, 0.0 }
 0x854   : > { %1707 = vadd.xlane.f32.xlu0 %v1706_v58 }
 0x88e   : > { %v2645_v62 = vpop.f32.mrb[4].mxu1 }
 0x88f   : > { %v1508_v63 = vpop.f32.mrb[5].mxu1 }
 0x890   : > { %2650 = vmatprep.mubr.msk.f32.mxu1 %vm764_vm1, %v1508_v63 }
 0x891   : > { %2651 = vmatmul.mubr.msk.f32.vlgmr.msra.gmra.mrb[2].mxu1 %vm764_vm1, %v2645_v62 }
 0x892   : > { %2737 = vmatpush3.bf16.msra.mxu1 %v2734_v48  ;;  %v2083_v48 = vld [vmem:[%s3483_s10 + $0x10] sm:$0xff] }
 0x893   : > { %2739 = vmatprep.subr.bf16.mxu1 %v2738_v2  ;;  %v2758_v52 = vpack.c.bf16 %v2084_v51, %v2083_v48 }
 0x8dd   : > { %v1705_v3 = vpop.xlane.xlu0 %1704 }
 0x8de   : > { %2894 = vrcp.f32 %v1705_v3 }
 0x8e1   : > { %v1708_v4 = vpop.xlane.xlu0 %1707 }
 0x8e2   : > { %2896 = vrcp.f32 %v1708_v4 }
 0x8e8   : > { %v2895_v5 = vpop.eup %2894 }
 0x8e9   : > { %v1710_v6 = vmul.f32 %v2895_v5, %v2891_v56  ;;  %v2761_v56 = vpack.c.bf16 %v2086_v55, %v2085_v53  ;;  %v2526_v5 = vld [vmem:[%s3479_s6] ss:$0 sm:$0xff] }
 0x8eb   : > { %2664 = vmatprep.mubr.msk.f32.mxu1 %vm764_vm1, %v1710_v6 }
 0x8ec   : > { %v2897_v54 = vpop.eup %2896 }
 0x8ed   : > { %v1712_v7 = vmul.f32 %v2897_v54, %v2893_v57  ;;  %v2088_v57 = vld [vmem:[%s3483_s10 + $0x38] sm:$0xff]  ;;  %v2527_v54 = vld [vmem:[%s3480_s7] ss:$0 sm:$0xff] }
 0x8ee   : > { %v2764_v58 = vpack.c.bf16 %v2088_v57, %v2087_v34 }
 0x8ef   : > { %2665 = vmatmul.mubr.msk.f32.vlgmr.msra.gmra.mrb[6].mxu1 %vm764_vm1, %v1712_v7 }
 0x8f0   : > { %2741 = vmatpush3.bf16.msra.mxu1 %v2738_v2 }
 0x8f1   : > { %2754 = vmatprep.subr.bf16.mxu1 %v2930_v49 }
 0x9c2   : > { %v2666_v8 = vpop.f32.mrb[6].mxu1 }
 0x9c3   : > { %v1791_v9 = vpop.f32.mrb[7].mxu1 }
 0x9c4   : > { %2671 = vmatprep.mubr.msk.f32.mxu1 %vm764_vm1, %v1791_v9 }
 0x9c5   : > { %2672 = vmatmul.mubr.msk.f32.vlgmr.msra.gmra.mrb[2].mxu1 %vm764_vm1, %v2666_v8 }
 0x9c6   : > { %2756 = vmatpush1.bf16.msra.mxu1 %v2755_v50 }
 0x9c7   : > { %2757 = vmatprep.subr.bf16.mxu1 %v2930_v49 }
 0x9ca   : > { %2759 = vmatpush1.bf16.msra.mxu1 %v2758_v52 }
 0x9cb   : > { %2760 = vmatprep.subr.bf16.mxu1 %v2930_v49 }
 0x9ce   : > { %2762 = vmatpush1.bf16.msra.mxu1 %v2761_v56 }
 0x9cf   : > { %2763 = vmatprep.subr.bf16.mxu1 %v2930_v49 }
 0x9d2   : > { %2765 = vmatpush1.bf16.msra.mxu1 %v2764_v58 }
 0x9d3   : > { %2766 = vmatprep.subr.bf16.mxu1 %v2930_v49 }
 0xa98   : > { %v2673_v10 = vpop.f32.mrb[2].mxu1 }
 0xa99   : > { %v1884_v12 = vadd.f32 %v2673_v10, %v3042_v1  ;;  %v1872_v13 = vpop.f32.mrb[3].mxu1 }
 0xa9a   : > { %v1883_v14 = vadd.f32 %v1872_v13, %v3040_v0  ;;  %v2089_v13 = vld [vmem:[%s3483_s10 + $0x40] sm:$0xff] }
 0xa9b   : > { %v3233_v15 = vadd.f32 %v2525_v11, %v1884_v12 }
 0xa9c   : > { %v3235_v16 = vadd.f32 %v2525_v11, %v1883_v14  ;;  %v2090_v14 = vld [vmem:[%s3483_s10 + $0x48] sm:$0xff] }
 0xa9d   : > { %v1899_v17 = vsel %vm609_vm0, %v3233_v15, 0.0 }
 0xa9e   : > { %1900 = vadd.xlane.f32.xlu1 %v1899_v17  ;;  %v1896_v18 = vsel %vm609_vm0, %v3235_v16, 0.0  ;;  %v2767_v17 = vpack.c.bf16 %v2090_v14, %v2089_v13 }
 0xa9f   : > { %1897 = vadd.xlane.f32.xlu0 %v1896_v18  ;;  %v2091_v18 = vld [vmem:[%s3483_s10 + $0x50] sm:$0xff] }
 0xaa0   : > { %2768 = vmatpush1.bf16.msra.mxu1 %v2767_v17 }
 0xaa1   : > { %2769 = vmatprep.subr.bf16.mxu1 %v2930_v49 }
 0xb2b   : > { %v1901_v61 = vpop.xlane.xlu1 %1900 }
 0xb2c   : > { %v1903_v19 = vmul.f32 0.020833334, %v1901_v61  ;;  %v1898_v20 = vpop.xlane.xlu0 %1897  ;;  %v2092_v61 = vld [vmem:[%s3483_s10 + $0x58] sm:$0xff] }
 0xb2d   : > { %v1902_v21 = vmul.f32 0.020833334, %v1898_v20  ;;  %v2093_v20 = vld [vmem:[%s3483_s10 + $0x60] sm:$0xff] }
 0xb2e   : > { %v3242_v1 = vsub.f32 %v3233_v15, %v1903_v19  ;;  %v2770_v19 = vpack.c.bf16 %v2092_v61, %v2091_v18 }
 0xb2f   : > { %v3245_v0 = vsub.f32 %v3235_v16, %v1902_v21  ;;  %v2094_v21 = vld [vmem:[%s3483_s10 + $0x68] sm:$0xff] }
 0xb30   : > { %v1907_v24 = vmul.f32 %v3242_v1, %v3242_v1  ;;  %2771 = vmatpush1.bf16.msra.mxu1 %v2770_v19 }
 0xb31   : > { %v1906_v22 = vmul.f32 %v3245_v0, %v3245_v0  ;;  %2772 = vmatprep.subr.bf16.mxu1 %v2930_v49 }
 0xb32   : > { %v1911_v25 = vsel %vm609_vm0, %v1907_v24, 0.0  ;;  %v2097_v24 = vld [vmem:[%s3483_s10 + $0x80] sm:$0xff] }
 0xb33   : > { %v1908_v23 = vsel %vm609_vm0, %v1906_v22, 0.0  ;;  %v2096_v22 = vld [vmem:[%s3483_s10 + $0x78] sm:$0xff] }
 0xb34   : > { %1909 = vadd.xlane.f32.xlu0 %v1908_v23 }
 0xb38   : > { %1912 = vadd.xlane.f32.xlu0 %v1911_v25  ;;  %v2098_v25 = vld [vmem:[%s3483_s10 + $0x88] sm:$0xff] }
 0xb39   : > { %v2779_v26 = vpack.c.bf16 %v2098_v25, %v2097_v24 }
 0xbc1   : > { %v1910_v59 = vpop.xlane.xlu0 %1909 }
 0xbc2   : > { %v1914_v60 = vmul.f32 0.020833334, %v1910_v59 }
 0xbc4   : > { %v1916_v62 = vadd.f32 1e-05, %v1914_v60 }
 0xbc5   : > { %v1913_v63 = vpop.xlane.xlu0 %1912 }
 0xbc6   : > { %2898 = vrsqrt.f32 %v1916_v62  ;;  %v1915_v2 = vmul.f32 0.020833334, %v1913_v63 }
 0xbc8   : > { %v1917_v3 = vadd.f32 1e-05, %v1915_v2 }
 0xbca   : > { %2900 = vrsqrt.f32 %v1917_v3 }
 0xbd0   : > { %v2899_v4 = vpop.eup %2898 }
 0xbd1   : > { %v1920_v6 = vmul.f32 %v2899_v4, %v3245_v0  ;;  %v2095_v0 = vld [vmem:[%s3483_s10 + $0x70] sm:$0xff] }
 0xbd2   : > { %v2776_v23 = vpack.c.bf16 %v2096_v22, %v2095_v0 }
 0xbd3   : > { %v1928_v7 = vmul.f32 %v2526_v5, %v1920_v6 }
 0xbd4   : > { %v2901_v8 = vpop.eup %2900 }
 0xbd5   : > { %v1936_v9 = vadd.f32 %v2527_v54, %v1928_v7  ;;  %v1921_v10 = vmul.f32 %v2901_v8, %v3242_v1  ;;  %v2773_v1 = vpack.c.bf16 %v2094_v21, %v2093_v20 }
 0xbd7   : > { %2528 = vmatmul.mubr.msk.f32.vlgmr.msra.gmra.mrb[14].mxu0 %vm609_vm0, %v1936_v9  ;;  %v1929_v11 = vmul.f32 %v2526_v5, %v1921_v10  ;;  %2774 = vmatpush1.bf16.msra.mxu1 %v2773_v1 }
 0xbd8   : > { %2038 = vmatprep.mubr.f32.mxu0 %v2922_v27  ;;  %2775 = vmatprep.subr.bf16.mxu1 %v2930_v49 }
 0xbd9   : > { %v1937_v12 = vadd.f32 %v2527_v54, %v1929_v11 }
 0xbdb   : > { %2529 = vmatmul.mubr.msk.f32.gmra.mrb[16].mxu0 %vm609_vm0, %v1937_v12  ;;  %2777 = vmatpush1.bf16.msra.mxu1 %v2776_v23 }
 0xbdc   : > { %2337 = vmatprep.mubr.f32.mxu0 %v2922_v27  ;;  %2778 = vmatprep.subr.bf16.mxu1 %v2930_v49 }
 0xbdf   : > { %2780 = vmatpush1.bf16.msra.mxu1 %v2779_v26 }
 0xbe0   : > { %2781 = vmatprep.subr.bf16.mxu1 %v2930_v49 }
 0xbe3   : > { %2783 = vmatpush1.bf16.msra.mxu1 %v2782_v30 }
 0xbe4   : > { %2784 = vmatprep.subr.bf16.mxu1 %v2930_v49 }
 0xbe7   : > { %2786 = vmatpush1.bf16.msra.mxu1 %v2785_v33 }
 0xbe8   : > { %2787 = vmatprep.subr.bf16.mxu1 %v2930_v49 }
 0xbeb   : > { %2789 = vmatpush1.bf16.msra.mxu1 %v2788_v38 }
 0xcaa   : > { %v2034_v45 = vpop.f32.mrb[14].mxu0 }
 0xcab   : > { %v2035_v46 = vadd.f32 %v2034_v45, %v1955_v44  ;;  %v2036_v47 = vpop.f32.mrb[15].mxu0 }
 0xcac   : > { %v2037_v48 = vadd.f32 %v2036_v47, %v1959_v35 }
 0xcad   : > { %v2045_v49 = vmul.f32 %v2035_v46, %v2035_v46 }
 0xcae   : > { %v2046_v50 = vmul.f32 %v2037_v48, %v2037_v48  ;;  %v2040_v51 = vpop.f32.mrb[16].mxu0 }
 0xcaf   : > { %v2049_v52 = vmul.f32 %v2045_v49, %v2035_v46  ;;  %v2041_v53 = vadd.f32 %v2040_v51, %v1955_v44  ;;  %v2042_v55 = vpop.f32.mrb[17].mxu0  ;;  %v2246_v51 = vld [vmem:[%s3487_s14 + $0x18] sm:$0xff] }
 0xcb0   : > { %v2050_v56 = vmul.f32 %v2046_v50, %v2037_v48  ;;  %v2043_v34 = vadd.f32 %v2042_v55, %v1959_v35  ;;  %v2244_v50 = vld [vmem:[%s3487_s14 + $0x8] sm:$0xff]  ;;  %v2245_v55 = vld [vmem:[%s3487_s14 + $0x10] sm:$0xff] }
 0xcb1   : > { %v2053_v57 = vmul.f32 0.044715, %v2049_v52  ;;  %v2047_v58 = vmul.f32 %v2041_v53, %v2041_v53  ;;  %v2790_v52 = vpack.c.bf16 %v2246_v51, %v2244_v50 }
 0xcb2   : > { %v2054_v59 = vmul.f32 0.044715, %v2050_v56  ;;  %v2048_v60 = vmul.f32 %v2043_v34, %v2043_v34 }
 0xcb3   : > { %v2057_v62 = vadd.f32 %v2053_v57, %v2035_v46  ;;  %v2051_v63 = vmul.f32 %v2047_v58, %v2041_v53  ;;  %2791 = vmatprep.subr.bf16.mxu0 %v2790_v52  ;;  %v2250_v57 = vld [vmem:[%s3487_s14 + $0x38] sm:$0xff] }
 0xcb4   : > { %v2058_v2 = vadd.f32 %v2054_v59, %v2037_v48  ;;  %v2052_v3 = vmul.f32 %v2048_v60, %v2043_v34  ;;  %v2247_v59 = vld [vmem:[%s3487_s14 + $0x20] sm:$0xff]  ;;  %v2249_v60 = vld [vmem:[%s3487_s14 + $0x30] sm:$0xff] }
 0xcb5   : > { %v2061_v4 = vmul.f32 0.7978846, %v2057_v62  ;;  %v2055_v5 = vmul.f32 0.044715, %v2051_v63  ;;  %v2796_v62 = vpack.c.bf16 %v2249_v60, %v2247_v59  ;;  %v2252_v63 = vld [vmem:[%s3487_s14 + $0x48] sm:$0xff] }
 0xcb6   : > { %v2062_v6 = vmul.f32 0.7978846, %v2058_v2  ;;  %v2056_v54 = vmul.f32 0.044715, %v2052_v3  ;;  %v2254_v2 = vld [vmem:[%s3487_s14 + $0x58] sm:$0xff] }
 0xcb7   : > { %2902 = vtanh.f32 %v2061_v4  ;;  %v2059_v7 = vadd.f32 %v2055_v5, %v2041_v53  ;;  %v2798_v3 = vpack.c.bf16 %v2254_v2, %v2252_v63  ;;  %v2251_v4 = vld [vmem:[%s3487_s14 + $0x40] sm:$0xff]  ;;  %v2253_v5 = vld [vmem:[%s3487_s14 + $0x50] sm:$0xff] }
 0xcb8   : > { %2904 = vtanh.f32 %v2062_v6  ;;  %v2060_v8 = vadd.f32 %v2056_v54, %v2043_v34  ;;  %v2800_v6 = vpack.c.bf16 %v2253_v5, %v2251_v4 }
 0xcb9   : > { %v2063_v9 = vmul.f32 0.7978846, %v2059_v7 }
 0xcba   : > { %v2064_v10 = vmul.f32 0.7978846, %v2060_v8 }
 0xcbb   : > { %2906 = vtanh.f32 %v2063_v9 }
 0xcbc   : > { %2908 = vtanh.f32 %v2064_v10 }
 0xcc1   : > { %v2903_v11 = vpop.eup %2902 }
 0xcc2   : > { %v2905_v12 = vpop.eup %2904  ;;  %v2069_v13 = vadd.f32 1.0, %v2903_v11 }
 0xcc3   : > { %v2070_v14 = vadd.f32 1.0, %v2905_v12 }
 0xcc4   : > { %v2073_v17 = vmul.f32 0.5, %v2069_v13  ;;  %v2533_v13 = vld [vmem:[%s3485_s12] ss:$0 sm:$0xff] }
 0xcc5   : > { %v2907_v18 = vpop.eup %2906  ;;  %v2074_v61 = vmul.f32 0.5, %v2070_v14 }
 0xcc6   : > { %v2909_v19 = vpop.eup %2908  ;;  %v2071_v20 = vadd.f32 1.0, %v2907_v18  ;;  %v2077_v0 = vmul.f32 %v2073_v17, %v2035_v46  ;;  %v2534_v17 = vld [vmem:[%s3486_s13] ss:$0 sm:$0xff] }
 0xcc7   : > { %v2078_v21 = vmul.f32 %v2074_v61, %v2037_v48  ;;  %v2072_v1 = vadd.f32 1.0, %v2909_v19 }
 0xcc8   : > { %v2075_v22 = vmul.f32 0.5, %v2071_v20 }
 0xcc9   : > { %2530 = vmatprep.mubr.msk.f32.mxu1 %vm2105_vm3, %v2078_v21  ;;  %v2076_v23 = vmul.f32 0.5, %v2072_v1 }
 0xcca   : > { %2177 = vmatmul.mubr.f32.vlgmr.msra.gmra.mrb[8].mxu1 %v2077_v0  ;;  %v2079_v25 = vmul.f32 %v2075_v22, %v2041_v53  ;;  %v2243_v53 = vld [vmem:[%s3487_s14] sm:$0xff] }
 0xccb   : > { %v2080_v24 = vmul.f32 %v2076_v23, %v2043_v34  ;;  %v2792_v56 = vpack.c.bf16 %v2245_v55, %v2243_v53  ;;  %v2248_v34 = vld [vmem:[%s3487_s14 + $0x28] sm:$0xff]  ;;  %v2255_v0 = vld [vmem:[%s3488_s15] sm:$0x3] }
 0xccc   : > { %v2794_v58 = vpack.c.bf16 %v2250_v57, %v2248_v34  ;;  %v2260_v22 = vrot.slane %v2255_v0, %v1954_v41  ;;  %v2264_v23 = vrot.slane %v2255_v0, %v1958_v43  ;;  %v2357_v41 = vld [vmem:[%s596_s1 + $0x10] sm:$0xf]  ;;  %v2358_v43 = vld [vmem:[%s596_s1 + $0x18] sm:$0xf] }
 0xccd   : > { %2531 = vmatprep.mubr.msk.f32.mxu1 %vm2105_vm3, %v2080_v24  ;;  %2793 = vmatpush1.bf16.msra.mxu0 %v2792_v56  ;;  %v2355_v24 = vld [vmem:[%s596_s1] sm:$0xff] }
 0xcce   : > { %2182 = vmatmul.mubr.f32.gmra.mrb[10].mxu1 %v2079_v25  ;;  %2795 = vmatprep.subr.bf16.mxu0 %v2794_v58 }
 0xcd1   : > { %2797 = vmatpush1.bf16.msra.mxu0 %v2796_v62 }
 0xcd2   : > { %2799 = vmatprep.subr.bf16.mxu0 %v2798_v3 }
 0xcd5   : > { %2801 = vmatpush1.bf16.msra.mxu0 %v2800_v6 }
 0xd9d   : > { %v2178_v26 = vpop.f32.mrb[8].mxu1 }
 0xd9e   : > { %v2187_v29 = vadd.f32 %v2178_v26, %v3235_v16  ;;  %v2180_v30 = vpop.f32.mrb[9].mxu1 }
 0xda0   : > { %v2196_v31 = vadd.f32 %v2532_v28, %v2187_v29 }
 0xda1   : > { %v2183_v32 = vpop.f32.mrb[10].mxu1 }
 0xda2   : > { %v2188_v33 = vadd.f32 %v2183_v32, %v3233_v15  ;;  %v2185_v36 = vpop.f32.mrb[11].mxu1  ;;  %v2200_v37 = vsel %vm609_vm0, %v2196_v31, 0.0 }
 0xda3   : > { %2201 = vadd.xlane.f32.xlu0 %v2200_v37 }
 0xda4   : > { %v2197_v38 = vadd.f32 %v2532_v28, %v2188_v33  ;;  %v2356_v28 = vld [vmem:[%s596_s1 + $0x8] sm:$0xff] }
 0xda6   : > { %v2204_v39 = vsel %vm2203_vm4, %v2197_v38, 0.0 }
 0xda7   : > { %2205 = vadd.xlane.f32.xlu0 %v2204_v39 }
 0xe30   : > { %v2202_v42 = vpop.xlane.xlu0 %2201 }
 0xe31   : > { %v2207_v44 = vmul.f32 0.020833334, %v2202_v42 }
 0xe33   : > { %v2209_v35 = vsub.f32 %v2196_v31, %v2207_v44 }
 0xe34   : > { %v2206_v45 = vpop.xlane.xlu0 %2205 }
 0xe35   : > { %v2208_v46 = vmul.f32 0.020833334, %v2206_v45  ;;  %v2211_v47 = vmul.f32 %v2209_v35, %v2209_v35 }
 0xe37   : > { %v2210_v16 = vsub.f32 %v2197_v38, %v2208_v46  ;;  %v2213_v48 = vsel %vm609_vm0, %v2211_v47, 0.0 }
 0xe38   : > { %2214 = vadd.xlane.f32.xlu0 %v2213_v48 }
 0xe39   : > { %v2212_v49 = vmul.f32 %v2210_v16, %v2210_v16 }
 0xe3b   : > { %v2216_v15 = vsel %vm2203_vm4, %v2212_v49, 0.0 }
 0xe3c   : > { %2217 = vadd.xlane.f32.xlu0 %v2216_v15 }
 0xec5   : > { %v2215_v54 = vpop.xlane.xlu0 %2214 }
 0xec6   : > { %v2219_v7 = vmul.f32 0.020833334, %v2215_v54 }
 0xec8   : > { %v2221_v8 = vadd.f32 1e-05, %v2219_v7 }
 0xec9   : > { %v2218_v9 = vpop.xlane.xlu0 %2217 }
 0xeca   : > { %2910 = vrsqrt.f32 %v2221_v8  ;;  %v2220_v10 = vmul.f32 0.020833334, %v2218_v9 }
 0xecc   : > { %v2222_v11 = vadd.f32 1e-05, %v2220_v10 }
 0xece   : > { %2912 = vrsqrt.f32 %v2222_v11 }
 0xed4   : > { %v2911_v12 = vpop.eup %2910 }
 0xed5   : > { %v2225_v14 = vmul.f32 %v2911_v12, %v2209_v35 }
 0xed7   : > { %v2233_v18 = vmul.f32 %v2533_v13, %v2225_v14 }
 0xed8   : > { %v2913_v61 = vpop.eup %2912 }
 0xed9   : > { %v2241_v19 = vadd.f32 %v2534_v17, %v2233_v18  ;;  %v2226_v20 = vmul.f32 %v2913_v61, %v2210_v16 }
 0xedb   : > { %2535 = vmatmul.mubr.msk.f32.vlgmr.msra.gmra.mrb[18].mxu0 %vm609_vm0, %v2241_v19  ;;  %v2234_v21 = vmul.f32 %v2533_v13, %v2226_v20 }
 0xedc   : > { %2343 = vmatprep.mubr.f32.mxu0 %v2922_v27 }
 0xedd   : > { %v2242_v1 = vadd.f32 %v2534_v17, %v2234_v21 }
 0xedf   : > { %2536 = vmatmul.mubr.msk.f32.gmra.mrb[20].mxu0 %vm609_vm0, %v2242_v1 }
 0xfae   : > { %v2339_v27 = vpop.f32.mrb[18].mxu0 }
 0xfaf   : > { %v2340_v25 = vadd.f32 %v2339_v27, %v2260_v22  ;;  %v2341_v26 = vpop.f32.mrb[19].mxu0 }
 0xfb0   : > { %v2342_v29 = vadd.f32 %v2341_v26, %v2264_v23 }
 0xfb1   : > { %2350 = vst [vmem:[%s601_s22] sm:$0xff] %v2340_v25  ;;  %v2359_v30 = vsub.f32 %v2340_v25, %v2355_v24 }
 0xfb2   : > { %2351 = vst.msk [vmem:[%s601_s22 + $0x8] sm:$0xff] %vm2105_vm3, %v2342_v29  ;;  %v2360_v31 = vsub.f32 %v2342_v29, %v2356_v28  ;;  %v2345_v32 = vpop.f32.mrb[20].mxu0 }
 0xfb3   : > { %v2346_v33 = vadd.f32 %v2345_v32, %v2260_v22  ;;  %v2347_v40 = vpop.f32.mrb[21].mxu0  ;;  %v2363_v38 = vmul.f32 %v2359_v30, %v2359_v30 }
 0xfb4   : > { %v2364_v36 = vmul.f32 %v2360_v31, %v2360_v31  ;;  %v2348_v37 = vadd.f32 %v2347_v40, %v2264_v23 }
 0xfb5   : > { %2352 = vst [vmem:[%s601_s22 + $0x10] sm:$0xf] %v2346_v33  ;;  %v2361_v39 = vsub.f32 %v2346_v33, %v2357_v41 }
 0xfb6   : > { %v2367_v42 = vsel %vm2105_vm3, %v2364_v36, 0.0  ;;  %v2362_v44 = vsub.f32 %v2348_v37, %v2358_v43  ;;  %2354 = vst.msk [vmem:[%s601_s22 + $0x18] sm:$0xf] %vm2353_vm5, %v2348_v37 }
 0xfb7   : > { %v2365_v35 = vmul.f32 %v2361_v39, %v2361_v39  ;;  %v2368_v45 = vadd.f32 %v2367_v42, %v2363_v38 }
 0xfb8   : > { %v2366_v46 = vmul.f32 %v2362_v44, %v2362_v44 }
 0xfb9   : > { %v2370_v47 = vsel %vm2369_vm6, %v2365_v35, 0.0 }
 0xfba   : > { %v2371_v16 = vadd.f32 %v2370_v47, %v2368_v45  ;;  %v2372_v48 = vsel %vm2353_vm5, %v2366_v46, 0.0 }
 0xfbc   : > { %v2373_v49 = vadd.f32 %v2372_v48, %v2371_v16 }
 0xfbe   : > { %2374 = vadd.xlane.f32.xlu0 %v2373_v49 }
0x104b   : > { %v2375_v15 = vpop.xlane.xlu0 %2374 }
0x104c   : > { %v2376_v50 = vrot.slane %v2375_v15, 4 }
0x104e   : > { %v2377_v51 = vadd.f32 %v2376_v50, %v2375_v15 }
0x1050   : > { %v2378_v52 = vrot.slane %v2377_v51, 2 }
0x1052   : > { %v2379_v53 = vadd.f32 %v2378_v52, %v2377_v51 }
0x1054   : > { %v2380_v55 = vrot.slane %v2379_v53, 1 }
0x1056   : > { %v2381_v56 = vadd.f32 %v2380_v55, %v2379_v53 }
0x1058   : > { %2808 = vpush %v2381_v56 }
0x1089   : > { %s2809_s25 = spop %2808 }
0x108a   : > { %v2383_v34 = vstv %s2809_s25 }
0x108b   : > { %2385 = vst.msk [vmem:[%s604_s24] sm:$0x1] %vm2384_vm7, %v2383_v34 }
0x108c PF: > { %s29_s27 = sadd.s32 1, %s2920_s27  }
0x108d   : > { %p26_p4 = scmp.ge.s32.totalorder %s29_s27, 4  }
0x108f   :  { %28 = sbr.rel (!%p26_p4) target bundleno = 4 (0x4), region = 133 }

// kernel: mae_forward.2
= control target key start
LH: loop header
LB: loop body
LE: loop exit
PB: predicated region body
PF: predicated region fallthrough
CT: control target
= control target key end

     0   :  { %s5240_s0 = inlined_call_operand.vmem [shape: s32[2,4,1], index: 0, kind: input, shape index: {}]   ;;  %s5241_s1 = inlined_call_operand.vmem [shape: f32[2,16,192], index: 1, kind: input, shape index: {}]   ;;  %s5242_s2 = inlined_call_operand.vmem [shape: f32[16,32], index: 2, kind: input, shape index: {}]   ;;  %s5243_s3 = inlined_call_operand.vmem [shape: f32[192,32], index: 3, kind: input, shape index: {}]   ;;  %s5244_s4 = inlined_call_operand.vmem [shape: f32[1,32], index: 4, kind: input, shape index: {}, may-alias: {4,17}]   ;;  %s5245_s5 = inlined_call_operand.vmem [shape: f32[2,1,32], index: 5, kind: input, shape index: {}, may-alias: {5,10}]   ;;  %s5246_s6 = inlined_call_operand.vmem [shape: f32[2,1,32], index: 6, kind: input, shape index: {}, may-alias: {6,9,11,15}]   ;;  %s5247_s7 = inlined_call_operand.vmem [shape: f32[2,32,96], index: 7, kind: input, shape index: {}]   ;;  %s5248_s8 = inlined_call_operand.vmem [shape: f32[2,32,32], index: 8, kind: input, shape index: {}]   ;;  %s5249_s9 = inlined_call_operand.vmem [shape: f32[2,1,32], index: 9, kind: input, shape index: {}, may-alias: {6,9,11,15}]   ;;  %s5250_s10 = inlined_call_operand.vmem [shape: f32[2,1,32], index: 10, kind: input, shape index: {}, may-alias: {5,10}]   ;;  %s5251_s11 = inlined_call_operand.vmem [shape: f32[2,1,32], index: 11, kind: input, shape index: {}, may-alias: {6,9,11,15}]   ;;  %s5252_s12 = inlined_call_operand.vmem [shape: f32[2,32,64], index: 12, kind: input, shape index: {}]   ;;  %s5253_s13 = inlined_call_operand.vmem [shape: f32[2,1,64], index: 13, kind: input, shape index: {}]   ;;  %s5254_s14 = inlined_call_operand.vmem [shape: f32[2,64,32], index: 14, kind: input, shape index: {}]   ;;  %s5255_s15 = inlined_call_operand.vmem [shape: f32[2,1,32], index: 15, kind: input, shape index: {}, may-alias: {6,9,11,15}]   ;;  %s5256_s16 = inlined_call_operand.vmem [shape: f32[1,32], index: 16, kind: input, shape index: {}]   ;;  %s5257_s17 = inlined_call_operand.vmem [shape: f32[1,32], index: 17, kind: input, shape index: {}, may-alias: {4,17}]   ;;  %s5258_s18 = inlined_call_operand.vmem [shape: f32[32,48], index: 18, kind: input, shape index: {}]   ;;  %s5259_s19 = inlined_call_operand.vmem [shape: f32[1,48], index: 19, kind: input, shape index: {}]   ;;  %s5260_s20 = inlined_call_operand.vmem [shape: f32[2,4,48], index: 20, kind: output, shape index: {0}]   ;;  %s5261_s21 = inlined_call_operand.hbm [shape: f32[2,1,32], index: 21, kind: output, shape index: {1}]  }
   0x1   :  { %5284 = sst [smem:[#allocation10_spill]] %s5240_s0 }
   0x2   :  { %5285 = sst [smem:[#allocation11_spill]] %s5241_s1 }
   0x3   :  { %5286 = sst [smem:[#allocation12_spill]] %s5242_s2 }
   0x4   :  { %5287 = sst [smem:[#allocation13_spill]] %s5243_s3 }
   0x5   :  { %5288 = sst [smem:[#allocation14_spill]] %s5244_s4 }
   0x6   :  { %5289 = sst [smem:[#allocation15_spill]] %s5245_s5 }
   0x7   :  { %5290 = sst [smem:[#allocation16_spill]] %s5246_s6 }
   0x8   :  { %5291 = sst [smem:[#allocation17_spill]] %s5247_s7 }
   0x9   :  { %5292 = sst [smem:[#allocation18_spill]] %s5248_s8 }
   0xa   :  { %27 = vsyncpa [#allocation3], 0 }
   0xb   :  { %29 = vsyncpa [#allocation3 + $0x1], 0  ;;  %s4596_s2 = smov 0   ;;  %s4598_s25 = smov 0  }
   0xc   :  { %s4600_s26 = smov 0   ;;  %s4602_s27 = smov 0  }
   0xd LB: > { %5293 = sst [smem:[#allocation5_spill]] %s4456_s2  ;;  %s4617_s3 = sadd.s32 4294967295, %s4468_s27   ;;  %s4468_s27 = sphi %s4602_s27, %s5323_s27   ;;  %s4464_s26 = sphi %s4600_s26, %s5325_s26   ;;  %s4460_s25 = sphi %s4598_s25, %s5327_s25   ;;  %s4456_s2 = sphi %s4596_s2, %s5326_s2  }
   0xe   : > { %5294 = sst [smem:[#allocation6_spill]] %s4464_s26  ;;  %s3783_s28 = sadd.s32 4294967294, %s4468_s27  }
   0xf   : > { %s4621_s29 = sadd.s32 1, %s4468_s27   ;;  %s498_s0 = sadd.s32 1, %s4464_s26 }
  0x10   : > { %5295 = sst [smem:[#allocation7_spill]] %s4621_s29  ;;  %s495_s4 = ssub.s32 %s4468_s27, %s4621_s29 }
  0x11   : > { %p508_p0 = scmp.ne.s32.totalorder %s4464_s26, %s4460_s25  ;;  %p496_p1 = scmp.eq.s32.totalorder %s495_s4, 0 }
  0x12   : > { %p509_p2 = scmp.eq.s32.totalorder %s4617_s3, 1  ;;  %p514_p3 = scmp.ne.s32.totalorder %s4460_s25, %s4456_s2 }
  0x13   : > { %p515_p4 = scmp.eq.s32.totalorder %s3783_s28, 1  ;;  %p3786_p7 = scmp.ge.s32.totalorder %s4468_s27, 1 }
  0x14   : > { %s4632_s30 = scalar_select %p496_p1, %s4464_s26, %s498_s0  }
  0x15   : > { %p4634_p5 = por %p509_p2, %p508_p0  ;;  %p4638_p6 = por %p515_p4, %p514_p3 }
  0x16   : > { %5296 = sst [smem:[#allocation8_spill]] %s4632_s30  ;;  %p602_p8 = scmp.lt.s32.totalorder %s4468_s27, 3 }
  0x17   : > { %s5298_s22 = scalar_select %p4638_p6, 1, 0 }
  0x18   : > { %p603_p9 = pnand %p3786_p7, %p602_p8 }
  0x19   : > { %5299 = sst [smem:[#allocation9_spill]] %s5298_s22  ;;  %p669_p10 = scmp.lt.s32.totalorder (!%p603_p9), %s4617_s3, 1  ;;  %v4470_v2 = vmov (!%p603_p9), 0   ;;  %v4471_v3 = vmov (!%p603_p9), 0.0|0.0   ;;  %v4472_v5 = vmov (!%p603_p9), 0.0   ;;  %vm4473_vm0 = vmmov (!%p603_p9), 0  }
  0x1a   : > { %606 = sbr.rel (%p603_p9) target bundleno = 9161 (0x23c9), region = 100  ;;  %s5300_s24 = sld [smem:[#allocation12_spill]] (!%p603_p9)  ;;  %4359 = vset.pattern.permute.xlu0 (!%p603_p9), %v4470_v2  ;;  %4209 = vmatprep.subr.bf16.mxu1 (!%p603_p9), %v4471_v3  ;;  %v683_v13 = vlaneseq (!%p603_p9)  ;;  %vm695_vm1 = vcmask (!%p603_p9), 130048   ;;  %vm873_vm3 = vcmask (!%p603_p9), 523264   ;;  %vm950_vm4 = vcmask (!%p603_p9), 257024  }
  0x1b   : > { %763 = vmatprep.mubr.f32.mxu0 (!%p603_p9), %v4472_v5  ;;  %s5302_s22 = sld [smem:[#allocation11_spill]] (!%p603_p9)  ;;  %3989 = vmatprep.mubr.msk.f32.mxu1 (!%p603_p9), %vm4473_vm0, %v4472_v5  ;;  %s5303_s29 = sld [smem:[#allocation13_spill]] (!%p603_p9)  ;;  %vm983_vm5 = vcmask (!%p603_p9), 261120   ;;  %vm1065_vm6 = vcmask (!%p603_p9), 64512   ;;  %vm1159_vm7 = vcmask (!%p603_p9), 1043456   ;;  %vm1141_vm8 = vcmask (!%p603_p9), 27648  }
  0x1c   : > { %v684_v14 = vand.u32 (!%p603_p9), 127, %v683_v13  ;;  %s5305_s7 = sld [smem:[#allocation17_spill]] (!%p603_p9)  ;;  %s5307_s6 = sld [smem:[#allocation16_spill]] (!%p603_p9)  ;;  %vm1155_vm9 = vcmask (!%p603_p9), 31744   ;;  %vm3670_vm10 = vcmask (!%p603_p9), 253952  }
  0x1d   : > { %s5281_s26 = smov (!%p603_p9), 96   ;;  %s5273_s28 = smov (!%p603_p9), 112  }
  0x1e   : > { %s5279_s0 = smov (!%p603_p9), 80   ;;  %s5308_s8 = sld [smem:[#allocation18_spill]] (!%p603_p9) }
  0x20   : > { %v770_v0 = vld [vmem:[%s5300_s24] sm:$0xff] (!%p603_p9)  ;;  %v771_v1 = vld [vmem:[%s5300_s24 + $0x8] sm:$0xff] (!%p603_p9)  ;;  %s5301_s24 = sld [smem:[#allocation10_spill]] (!%p603_p9) }
  0x21   : > { %v4210_v4 = vpack.c.bf16 %v771_v1, %v770_v0  ;;  %s4653_s4 = scalar_select %p669_p10, %s4617_s3, 1  ;;  %v842_v15 = vld [vmem:[%s5303_s29] sm:$0xff]  ;;  %v843_v16 = vld [vmem:[%s5303_s29 + $0x8] sm:$0xff]  ;;  %v844_v19 = vld [vmem:[%s5303_s29 + $0x10] sm:$0xff] }
  0x22   : > { %v4213_v18 = vpack.c.bf16 %v843_v16, %v842_v15  ;;  %v845_v20 = vld [vmem:[%s5303_s29 + $0x18] sm:$0xff]  ;;  %v846_v23 = vld [vmem:[%s5303_s29 + $0x20] sm:$0xff]  ;;  %v847_v24 = vld [vmem:[%s5303_s29 + $0x28] sm:$0xff] }
  0x23   : > { %4211 = vmatpush3.bf16.msra.mxu1 %v4210_v4  ;;  %s5271_s23 = sshll.u32 %s4653_s4, 2  ;;  %s3890_s1 = sshll.u32 %s4653_s4, 5  ;;  %v4216_v22 = vpack.c.bf16 %v845_v20, %v844_v19  ;;  %v4219_v25 = vpack.c.bf16 %v847_v24, %v846_v23  ;;  %v848_v26 = vld [vmem:[%s5303_s29 + $0x30] sm:$0xff]  ;;  %v849_v27 = vld [vmem:[%s5303_s29 + $0x38] sm:$0xff]  ;;  %v850_v29 = vld [vmem:[%s5303_s29 + $0x40] sm:$0xff] }
  0x24   : > { %4212 = vmatprep.subr.bf16.mxu1 %v4471_v3  ;;  %s677_s2 = scalar_lea.vmem %s5302_s22, %s3890_s1  ;;  %v4222_v28 = vpack.c.bf16 %v849_v27, %v848_v26  ;;  %v851_v30 = vld [vmem:[%s5303_s29 + $0x48] sm:$0xff]  ;;  %v852_v32 = vld [vmem:[%s5303_s29 + $0x50] sm:$0xff]  ;;  %v853_v33 = vld [vmem:[%s5303_s29 + $0x58] sm:$0xff]  ;;  %s5304_s22 = sld [smem:[#allocation14_spill]] }
  0x25   : > { %v692_v7 = vld [vmem:[%s677_s2 + $0x8] sm:$0xff]  ;;  %v694_v8 = vld [vmem:[%s677_s2 + $0x18] sm:$0xff]  ;;  %v691_v9 = vld [vmem:[%s677_s2] sm:$0xff]  ;;  %v4225_v31 = vpack.c.bf16 %v851_v30, %v850_v29  ;;  %v4228_v34 = vpack.c.bf16 %v853_v33, %v852_v32  ;;  %s5306_s1 = sld [smem:[#allocation15_spill]] }
  0x26   : > { %s672_s30 = scalar_lea.vmem %s5301_s24, %s5271_s23  ;;  %v4205_v10 = vpack.c.bf16 %v694_v8, %v692_v7  ;;  %v693_v11 = vld [vmem:[%s677_s2 + $0x10] sm:$0xff]  ;;  %v854_v35 = vld [vmem:[%s5303_s29 + $0x60] sm:$0xff]  ;;  %v855_v36 = vld [vmem:[%s5303_s29 + $0x68] sm:$0xff]  ;;  %s5280_s24 = smov 120  }
  0x27   : > { %v682_v6 = vld [vmem:[%s672_s30] sm:$0xf]  ;;  %v4207_v12 = vpack.c.bf16 %v693_v11, %v691_v9  ;;  %v4231_v37 = vpack.c.bf16 %v855_v36, %v854_v35  ;;  %v856_v38 = vld [vmem:[%s5303_s29 + $0x70] sm:$0xff]  ;;  %v857_v39 = vld [vmem:[%s5303_s29 + $0x78] sm:$0xff]  ;;  %s5272_s30 = smov 64   ;;  %s5274_s2 = smov 56  }
  0x28   : > { %686 = vperm.xlu0 %4359, %v682_v6   ;;  %4206 = vmatprep.subr.bf16.mxu0 %v4205_v10  ;;  %v4234_v40 = vpack.c.bf16 %v857_v39, %v856_v38  ;;  %v858_v41 = vld [vmem:[%s5303_s29 + $0x80] sm:$0xff]  ;;  %v859_v42 = vld [vmem:[%s5303_s29 + $0x88] sm:$0xff]  ;;  %v860_v44 = vld [vmem:[%s5303_s29 + $0x90] sm:$0xff]  ;;  %s5278_s23 = smov 48  }
  0x29   : > { %4208 = vmatpush1.bf16.msra.mxu0 %v4207_v12  ;;  %v4237_v43 = vpack.c.bf16 %v859_v42, %v858_v41  ;;  %v861_v45 = vld [vmem:[%s5303_s29 + $0x98] sm:$0xff]  ;;  %v862_v47 = vld [vmem:[%s5303_s29 + $0xa0] sm:$0xff]  ;;  %v863_v48 = vld [vmem:[%s5303_s29 + $0xa8] sm:$0xff] }
  0x2a   : > { %4248 = vmatprep.subr.bf16.mxu0 %v4471_v3  ;;  %v4240_v46 = vpack.c.bf16 %v861_v45, %v860_v44  ;;  %v4243_v49 = vpack.c.bf16 %v863_v48, %v862_v47  ;;  %v864_v50 = vld [vmem:[%s5303_s29 + $0xb0] sm:$0xff]  ;;  %v865_v51 = vld [vmem:[%s5303_s29 + $0xb8] sm:$0xff]  ;;  %v3794_v55 = vld [vmem:[%s5304_s22] ss:$0 sm:$0xff]  ;;  %s5282_s22 = smov 88  }
  0x2b   : > { %v4246_v52 = vpack.c.bf16 %v865_v51, %v864_v50  ;;  %v979_v1 = vld [vmem:[%s5305_s7] sm:$0xff]  ;;  %v980_v2 = vld [vmem:[%s5305_s7 + $0x8] sm:$0xff]  ;;  %v981_v6 = vld [vmem:[%s5305_s7 + $0x10] sm:$0xff] }
  0x2c   : > { %v4249_v4 = vpack.c.bf16 %v980_v2, %v979_v1  ;;  %v982_v7 = vld [vmem:[%s5305_s7 + $0x18] sm:$0xff]  ;;  %v3796_v13 = vld [vmem:[%s5306_s1] ss:$0 sm:$0xff]  ;;  %v1058_v50 = vld [vmem:[%s5308_s8 + $0x8] sm:$0xff] }
  0x2d   : > { %v4252_v8 = vpack.c.bf16 %v982_v7, %v981_v6  ;;  %v3797_v15 = vld [vmem:[%s5307_s6] ss:$0 sm:$0xff] }
  0x2e   : > { %v1057_v51 = vld [vmem:[%s5308_s8] sm:$0xff] }
  0xa7   : > { %v687_v17 = vpop.permute.xlu0 %686 }
  0xa8   : > { %vm688_vm2 = vcmp.eq.s32.totalorder %v684_v14, %v687_v17 }
  0xa9   : > { %v3791_v21 = vsel %vm688_vm2, 1.0, %v4472_v5 }
  0xaa   : > { %3792 = vmatmul.mubr.msk.f32.vlgmr.msra.gmra.mrb[0].mxu0 %vm695_vm1, %v3791_v21  ;;  %3990 = vmatmul.mubr.msk.f32.vlgmr.msra.gmra.mrb[0].mxu1 %vm695_vm1, %v3791_v21 }
  0xab   : > { %4214 = vmatpush1.bf16.msra.mxu1 %v4213_v18  ;;  %4000 = vmatprep.mubr.msk.f32.mxu0 %vm4473_vm0, %v4472_v5 }
  0xac   : > { %4215 = vmatprep.subr.bf16.mxu1 %v4471_v3  ;;  %4250 = vmatpush3.bf16.msra.mxu0 %v4249_v4 }
  0xad   : > { %4251 = vmatprep.subr.bf16.mxu0 %v4471_v3 }
  0xaf   : > { %4217 = vmatpush1.bf16.msra.mxu1 %v4216_v22 }
  0xb0   : > { %4218 = vmatprep.subr.bf16.mxu1 %v4471_v3  ;;  %4253 = vmatpush3.bf16.msra.mxu0 %v4252_v8 }
  0xb1   : > { %4003 = vmatprep.subr.mxu0 %v4472_v5 }
  0xb3   : > { %4220 = vmatpush1.bf16.msra.mxu1 %v4219_v25 }
  0xb4   : > { %4221 = vmatprep.subr.bf16.mxu1 %v4471_v3 }
  0xb7   : > { %4223 = vmatpush1.bf16.msra.mxu1 %v4222_v28 }
  0xb8   : > { %4224 = vmatprep.subr.bf16.mxu1 %v4471_v3 }
  0xbb   : > { %4226 = vmatpush1.bf16.msra.mxu1 %v4225_v31 }
  0xbc   : > { %4227 = vmatprep.subr.bf16.mxu1 %v4471_v3 }
  0xbf   : > { %4229 = vmatpush1.bf16.msra.mxu1 %v4228_v34 }
  0xc0   : > { %4230 = vmatprep.subr.bf16.mxu1 %v4471_v3 }
  0xc3   : > { %4232 = vmatpush1.bf16.msra.mxu1 %v4231_v37 }
  0xc4   : > { %4233 = vmatprep.subr.bf16.mxu1 %v4471_v3 }
  0xc7   : > { %4235 = vmatpush1.bf16.msra.mxu1 %v4234_v40 }
  0xc8   : > { %4236 = vmatprep.subr.bf16.mxu1 %v4471_v3 }
  0xcb   : > { %4238 = vmatpush1.bf16.msra.mxu1 %v4237_v43 }
  0xcc   : > { %4239 = vmatprep.subr.bf16.mxu1 %v4471_v3 }
  0xcf   : > { %4241 = vmatpush1.bf16.msra.mxu1 %v4240_v46 }
  0xd0   : > { %4242 = vmatprep.subr.bf16.mxu1 %v4471_v3 }
  0xd3   : > { %4244 = vmatpush1.bf16.msra.mxu1 %v4243_v49 }
  0xd4   : > { %4245 = vmatprep.subr.bf16.mxu1 %v4471_v3 }
  0xd7   : > { %4247 = vmatpush1.bf16.msra.mxu1 %v4246_v52 }
  0xd8   : > { %4058 = vmatprep.subr.mxu1 %v4472_v5 }
 0x17d   : > { %v765_v53 = vpop.f32.mrb[0].mxu0 }
 0x17e   : > { %v767_v54 = vpop.f32.mrb[1].mxu0 }
 0x17f   : > { %3795 = vmatprep.mubr.msk.f32.mxu1 %vm873_vm3, %v767_v54 }
 0x180   : > { %942 = vmatmul.mubr.f32.vlgmr.msra.gmra.mrb[0].mxu1 %v765_v53 }
 0x181   : > { %4060 = vmatprep.mubr.msk.f32.mxu1 %vm4473_vm0, %v4472_v5 }
 0x253   : > { %v943_v56 = vpop.f32.mrb[0].mxu1 }
 0x254   : > { %v4763_v57 = vadd.f32 %v3794_v55, %v943_v56  ;;  %v945_v58 = vpop.f32.mrb[1].mxu1 }
 0x256   : > { %v951_v59 = vsel %vm950_vm4, %v4763_v57, 0.0 }
 0x257   : > { %952 = vadd.xlane.f32.xlu0 %v951_v59 }
 0x2e4   : > { %v953_v60 = vpop.xlane.xlu0 %952 }
 0x2e5   : > { %v955_v61 = vmul.f32 0.03125, %v953_v60 }
 0x2e7   : > { %v956_v62 = vsub.f32 %v4763_v57, %v955_v61 }
 0x2e9   : > { %v957_v63 = vmul.f32 %v956_v62, %v956_v62 }
 0x2eb   : > { %v958_v0 = vsel %vm950_vm4, %v957_v63, 0.0 }
 0x2ec   : > { %959 = vadd.xlane.f32.xlu1 %v958_v0 }
 0x379   : > { %v960_v9 = vpop.xlane.xlu1 %959 }
 0x37a   : > { %v961_v10 = vmul.f32 0.03125, %v960_v9 }
 0x37c   : > { %v962_v11 = vadd.f32 1e-05, %v961_v10 }
 0x37e   : > { %4360 = vrsqrt.f32 %v962_v11 }
 0x388   : > { %v4361_v12 = vpop.eup %4360 }
 0x389   : > { %v964_v14 = vmul.f32 %v4361_v12, %v956_v62  ;;  %v1059_v12 = vld [vmem:[%s5308_s8 + $0x10] sm:$0xff] }
 0x38b   : > { %v971_v16 = vmul.f32 %v3796_v13, %v964_v14 }
 0x38d   : > { %v978_v17 = vadd.f32 %v3797_v15, %v971_v16 }
 0x38f   : > { %4001 = vmatmul.mubr.msk.f32.vlgmr.msra.gmra.mrb[2].mxu0 %vm983_vm5, %v978_v17 }
 0x390   : > { %4005 = vmatprep.mubr.msk.f32.mxu0 %vm4473_vm0, %v4472_v5 }
 0x462   : > { %v4792_v18 = vpop.f32.mrb[2].mxu0 }
 0x463   : > { %1153 = vrot.lane.b32.xlu0 %v4792_v18, %s5272_s30  ;;  %1063 = vrot.lane.b32.xlu1 %v4792_v18, %s5281_s26  ;;  %v4002_v19 = vpop.f32.mrb[3].mxu0  ;;  %v4800_v21 = vmul.f32 0.35355338, %v4792_v18  ;;  %s5275_s30 = smov 104   ;;  %s5309_s26 = smov 88  }
 0x4d5   : > { %v1064_v20 = vpop.permute.xlu1 %1063  ;;  %v1154_v22 = vpop.permute.xlu0 %1153 }
 0x4d6   : > { %4004 = vmatpush3.xpose.msk.msra.mxu0 %vm1065_vm6, %v1064_v20 }
 0x4d7   : > { %4008 = vmatprep.subr.mxu0 %v4472_v5 }
 0x4d9   : > { %4006 = vmatmul.mubr.msk.f32.vlgmr.msra.gmra.mrb[4].mxu0 %vm1065_vm6, %v4800_v21 }
 0x4da   : > { %4009 = vmatpush3.msk.msra.mxu0 %vm1159_vm7, %v1154_v22  ;;  %4010 = vmatprep.mubr.msk.f32.mxu0 %vm4473_vm0, %v4472_v5 }
 0x4db   : > { %4013 = vmatprep.subr.mxu0 %v4472_v5 }
 0x5ac   : > { %v1137_v23 = vpop.f32.mrb[4].mxu0 }
 0x5ad   : > { %v4007_v24 = vpop.f32.mrb[5].mxu0  ;;  %v1142_v25 = vsel %vm1141_vm8, %v1137_v23, -inf }
 0x5ae   : > { %1143 = vmax.xlane.f32.xlu1 %v1142_v25 }
 0x5bf   : > { %1234 = vrot.lane.b32.xlu1 %v4792_v18, %s5282_s22  ;;  %s5310_s22 = smov 96  }
 0x63b   : > { %v1144_v26 = vpop.xlane.xlu1 %1143 }
 0x63c   : > { %v1145_v27 = vsub.f32 %v1137_v23, %v1144_v26 }
 0x63e   : > { %v1146_v28 = vmul.f32 1.442695, %v1145_v27 }
 0x63f   : > { %v1235_v34 = vpop.permute.xlu1 %1234 }
 0x640   : > { %4362 = vpow2.f32 %v1146_v28 }
 0x64a   : > { %v4363_v29 = vpop.eup %4362 }
 0x64b   : > { %v1148_v30 = vsel %vm1141_vm8, %v4363_v29, 0.0 }
 0x64c   : > { %1149 = vadd.xlane.f32.xlu0 %v1148_v30  ;;  %v1060_v30 = vld [vmem:[%s5308_s8 + $0x18] sm:$0xff] }
 0x64d   : > { %4059 = vmatpush3.msra.mxu1 %v1060_v30 }
 0x64e   : > { %4260 = vmatprep.subr.bf16.mxu1 %v4471_v3 }
 0x662   : > { %1232 = vrot.lane.b32.xlu0 %v4800_v21, %s5280_s24  ;;  %s5315_s24 = smov 80  }
 0x6d9   : > { %v1150_v31 = vpop.xlane.xlu0 %1149 }
 0x6da   : > { %4364 = vrcp.f32 %v1150_v31 }
 0x6dd   : > { %v1233_v35 = vpop.permute.xlu0 %1232 }
 0x6e4   : > { %v4365_v32 = vpop.eup %4364 }
 0x6e5   : > { %v1152_v33 = vmul.f32 %v4365_v32, %v4363_v29 }
 0x6e7   : > { %4011 = vmatmul.mubr.msk.f32.vlgmr.msra.gmra.mrb[6].mxu0 %vm1155_vm9, %v1152_v33 }
 0x6e8   : > { %4014 = vmatpush3.xpose.msk.msra.mxu0 %vm1065_vm6, %v1235_v34  ;;  %4015 = vmatprep.mubr.msk.f32.mxu0 %vm4473_vm0, %v4472_v5 }
 0x6e9   : > { %4018 = vmatprep.subr.mxu0 %v4472_v5 }
 0x6eb   : > { %4016 = vmatmul.mubr.msk.f32.vlgmr.msra.gmra.mrb[8].mxu0 %vm1065_vm6, %v1233_v35 }
 0x6ec   : > { %4020 = vmatprep.mubr.msk.f32.mxu0 %vm4473_vm0, %v4472_v5 }
 0x7ba   : > { %v1228_v36 = vpop.f32.mrb[6].mxu0 }
 0x7bb   : > { %v4012_v37 = vpop.f32.mrb[7].mxu0 }
 0x7be   : > { %v1306_v38 = vpop.f32.mrb[8].mxu0 }
 0x7bf   : > { %v4017_v39 = vpop.f32.mrb[9].mxu0  ;;  %v1310_v40 = vsel %vm1141_vm8, %v1306_v38, -inf }
 0x7c0   : > { %1311 = vmax.xlane.f32.xlu0 %v1310_v40 }
 0x7d6   : > { %1321 = vrot.lane.b32.xlu0 %v4792_v18, %s5274_s2  ;;  %s5276_s2 = smov 72  }
 0x7da   : > { %1544 = vrot.lane.b32.xlu0 %v4800_v21, %s5273_s28  ;;  %s5312_s28 = smov 56  }
 0x84d   : > { %v1312_v41 = vpop.xlane.xlu0 %1311 }
 0x84e   : > { %v1313_v42 = vsub.f32 %v1306_v38, %v1312_v41  ;;  %v3819_v38 = vld [vmem:[%s5249_s9] ss:$0 sm:$0xff] }
 0x850   : > { %v1314_v43 = vmul.f32 1.442695, %v1313_v42 }
 0x851   : > { %v1322_v44 = vpop.permute.xlu0 %1321 }
 0x852   : > { %4366 = vpow2.f32 %v1314_v43  ;;  %4019 = vmatpush3.msk.msra.mxu0 %vm1159_vm7, %v1322_v44 }
 0x853   : > { %4023 = vmatprep.subr.mxu0 %v4472_v5 }
 0x855   : > { %v1545_v55 = vpop.permute.xlu0 %1544 }
 0x85c   : > { %v4367_v45 = vpop.eup %4366 }
 0x85d   : > { %v1316_v46 = vsel %vm1141_vm8, %v4367_v45, 0.0 }
 0x85e   : > { %1317 = vadd.xlane.f32.xlu1 %v1316_v46 }
 0x86f   : > { %1546 = vrot.lane.b32.xlu1 %v4792_v18, %s5279_s0 }
 0x8eb   : > { %v1318_v47 = vpop.xlane.xlu1 %1317 }
 0x8ec   : > { %4368 = vrcp.f32 %v1318_v47  ;;  %v2062_v47 = vld [vmem:[%s5252_s12] sm:$0xff] }
 0x8ef   : > { %v1547_v54 = vpop.permute.xlu1 %1546 }
 0x8f6   : > { %v4369_v48 = vpop.eup %4368 }
 0x8f7   : > { %v1320_v49 = vmul.f32 %v4369_v48, %v4367_v45 }
 0x8f9   : > { %4021 = vmatmul.mubr.msk.f32.vlgmr.msra.gmra.mrb[10].mxu0 %vm1155_vm9, %v1320_v49  ;;  %v2064_v49 = vld [vmem:[%s5252_s12 + $0x10] sm:$0xff] }
 0x8fa   : > { %4024 = vmatpush3.msra.mxu0 %v1058_v50  ;;  %4025 = vmatprep.mubr.msk.f32.mxu0 %vm4473_vm0, %v4472_v5  ;;  %v2065_v50 = vld [vmem:[%s5252_s12 + $0x18] sm:$0xff] }
 0x8fb   : > { %4028 = vmatprep.subr.mxu0 %v4472_v5 }
 0x9cc   : > { %v1394_v52 = vpop.f32.mrb[10].mxu0 }
 0x9cd   : > { %v4022_v53 = vpop.f32.mrb[11].mxu0  ;;  %4026 = vmatmul.mubr.msk.f32.vlgmr.msra.gmra.mrb[12].mxu0 %vm1065_vm6, %v1394_v52 }
 0x9ce   : > { %4029 = vmatpush3.msra.mxu0 %v1057_v51  ;;  %4030 = vmatprep.mubr.msk.f32.mxu0 %vm4473_vm0, %v4472_v5  ;;  %v4258_v51 = vpack.c.bf16 %v2065_v50, %v2064_v49 }
 0x9cf   : > { %4033 = vmatprep.subr.mxu0 %v4472_v5 }
 0x9d1   : > { %4031 = vmatmul.mubr.msk.f32.vlgmr.msra.gmra.mrb[14].mxu0 %vm1065_vm6, %v1228_v36 }
 0x9d2   : > { %4035 = vmatprep.mubr.msk.f32.mxu0 %vm4473_vm0, %v4472_v5 }
 0x9d5   : > { %4034 = vmatpush3.xpose.msk.msra.mxu0 %vm1065_vm6, %v1547_v54 }
 0x9d6   : > { %4038 = vmatprep.subr.mxu0 %v4472_v5 }
 0x9d8   : > { %4036 = vmatmul.mubr.msk.f32.vlgmr.msra.gmra.mrb[16].mxu0 %vm1065_vm6, %v1545_v55 }
 0x9d9   : > { %4040 = vmatprep.mubr.msk.f32.mxu0 %vm4473_vm0, %v4472_v5 }
 0xaa0   : > { %v1467_v56 = vpop.f32.mrb[12].mxu0 }
 0xaa1   : > { %v4027_v58 = vpop.f32.mrb[13].mxu0 }
 0xaa4   : > { %v1540_v59 = vpop.f32.mrb[14].mxu0 }
 0xaa5   : > { %v1541_v60 = vadd.f32 %v1540_v59, %v1467_v56  ;;  %v4032_v61 = vpop.f32.mrb[15].mxu0  ;;  %v3820_v56 = vld [vmem:[%s5250_s10] ss:$0 sm:$0xff] }
 0xaa6   : > { %v3821_v59 = vld [vmem:[%s5251_s11] ss:$0 sm:$0xff] }
 0xaab   : > { %v1618_v62 = vpop.f32.mrb[16].mxu0 }
 0xaac   : > { %v4037_v63 = vpop.f32.mrb[17].mxu0  ;;  %v1622_v0 = vsel %vm1141_vm8, %v1618_v62, -inf }
 0xaad   : > { %1623 = vmax.xlane.f32.xlu0 %v1622_v0  ;;  %v2156_v63 = vld [vmem:[%s5254_s14 + $0x8] sm:$0xff] }
 0xac3   : > { %1633 = vrot.lane.b32.xlu0 %v4792_v18, %s5278_s23  ;;  %s5313_s23 = smov 112  }
 0xac7   : > { %1784 = vrot.lane.b32.xlu0 %v4800_v21, %s5275_s30  ;;  %s5277_s30 = smov 40  }
 0xb3a   : > { %v1624_v1 = vpop.xlane.xlu0 %1623 }
 0xb3b   : > { %v1625_v2 = vsub.f32 %v1618_v62, %v1624_v1  ;;  %v2155_v62 = vld [vmem:[%s5254_s14] sm:$0xff]  ;;  %v2157_v1 = vld [vmem:[%s5254_s14 + $0x10] sm:$0xff] }
 0xb3c   : > { %v4261_v0 = vpack.c.bf16 %v2156_v63, %v2155_v62 }
 0xb3d   : > { %v1626_v4 = vmul.f32 1.442695, %v1625_v2  ;;  %v2158_v2 = vld [vmem:[%s5254_s14 + $0x18] sm:$0xff] }
 0xb3e   : > { %v1634_v6 = vpop.permute.xlu0 %1633 }
 0xb3f   : > { %4370 = vpow2.f32 %v1626_v4  ;;  %4039 = vmatpush3.msk.msra.mxu0 %vm1159_vm7, %v1634_v6  ;;  %v4264_v4 = vpack.c.bf16 %v2158_v2, %v2157_v1  ;;  %v2159_v6 = vld [vmem:[%s5254_s14 + $0x20] sm:$0xff] }
 0xb40   : > { %4043 = vmatprep.subr.mxu0 %v4472_v5 }
 0xb42   : > { %v1785_v16 = vpop.permute.xlu0 %1784 }
 0xb49   : > { %v4371_v7 = vpop.eup %4370 }
 0xb4a   : > { %v1628_v8 = vsel %vm1141_vm8, %v4371_v7, 0.0 }
 0xb4b   : > { %1629 = vadd.xlane.f32.xlu1 %v1628_v8 }
 0xb5c   : > { %1786 = vrot.lane.b32.xlu1 %v4792_v18, %s5276_s2  ;;  %s5311_s2 = smov 120  }
 0xbd8   : > { %v1630_v9 = vpop.xlane.xlu1 %1629 }
 0xbd9   : > { %4372 = vrcp.f32 %v1630_v9  ;;  %v2161_v9 = vld [vmem:[%s5254_s14 + $0x30] sm:$0xff] }
 0xbdc   : > { %v1787_v14 = vpop.permute.xlu1 %1786 }
 0xbe3   : > { %v4373_v10 = vpop.eup %4372 }
 0xbe4   : > { %v1632_v11 = vmul.f32 %v4373_v10, %v4371_v7  ;;  %v2160_v7 = vld [vmem:[%s5254_s14 + $0x28] sm:$0xff]  ;;  %v2162_v10 = vld [vmem:[%s5254_s14 + $0x38] sm:$0xff] }
 0xbe5   : > { %v4267_v8 = vpack.c.bf16 %v2160_v7, %v2159_v6 }
 0xbe6   : > { %4041 = vmatmul.mubr.msk.f32.vlgmr.msra.gmra.mrb[18].mxu0 %vm1155_vm9, %v1632_v11  ;;  %v4270_v11 = vpack.c.bf16 %v2162_v10, %v2161_v9 }
 0xbe7   : > { %4044 = vmatpush3.msra.mxu0 %v1059_v12  ;;  %4045 = vmatprep.mubr.msk.f32.mxu0 %vm4473_vm0, %v4472_v5  ;;  %v3822_v12 = vld [vmem:[%s5253_s13] ss:$0 sm:$0xff] }
 0xbe8   : > { %4048 = vmatprep.subr.mxu0 %v4472_v5 }
 0xcb9   : > { %v1706_v13 = vpop.f32.mrb[18].mxu0 }
 0xcba   : > { %v4042_v15 = vpop.f32.mrb[19].mxu0  ;;  %4046 = vmatmul.mubr.msk.f32.vlgmr.msra.gmra.mrb[20].mxu0 %vm1065_vm6, %v1706_v13 }
 0xcbb   : > { %4049 = vmatpush3.xpose.msk.msra.mxu0 %vm1065_vm6, %v1787_v14  ;;  %4050 = vmatprep.mubr.msk.f32.mxu0 %vm4473_vm0, %v4472_v5 }
 0xcbc   : > { %4053 = vmatprep.subr.mxu0 %v4472_v5 }
 0xcbe   : > { %4051 = vmatmul.mubr.msk.f32.vlgmr.msra.gmra.mrb[22].mxu0 %vm1065_vm6, %v1785_v16 }
 0xcbf   : > { %4055 = vmatprep.mubr.msk.f32.mxu0 %vm4473_vm0, %v4472_v5 }
 0xd8d   : > { %v1779_v17 = vpop.f32.mrb[20].mxu0 }
 0xd8e   : > { %v1783_v19 = vadd.f32 %v1779_v17, %v1541_v60  ;;  %v4047_v20 = vpop.f32.mrb[21].mxu0 }
 0xd91   : > { %v1858_v21 = vpop.f32.mrb[22].mxu0 }
 0xd92   : > { %v4052_v22 = vpop.f32.mrb[23].mxu0  ;;  %v1862_v23 = vsel %vm1141_vm8, %v1858_v21, -inf }
 0xd93   : > { %1863 = vmax.xlane.f32.xlu0 %v1862_v23 }
 0xda9   : > { %1873 = vrot.lane.b32.xlu0 %v4792_v18, %s5277_s30  ;;  %s5314_s30 = smov 64  }
 0xe20   : > { %v1864_v24 = vpop.xlane.xlu0 %1863 }
 0xe21   : > { %v1865_v25 = vsub.f32 %v1858_v21, %v1864_v24 }
 0xe23   : > { %v1866_v26 = vmul.f32 1.442695, %v1865_v25 }
 0xe24   : > { %v1874_v27 = vpop.permute.xlu0 %1873 }
 0xe25   : > { %4374 = vpow2.f32 %v1866_v26  ;;  %4054 = vmatpush3.msk.msra.mxu0 %vm1159_vm7, %v1874_v27  ;;  %v3825_v27 = vld [vmem:[%s5255_s15] ss:$0 sm:$0xff] }
 0xe26   : > { %4254 = vmatprep.subr.bf16.mxu0 %v4471_v3 }
 0xe2f   : > { %v4375_v28 = vpop.eup %4374 }
 0xe30   : > { %v1868_v29 = vsel %vm1141_vm8, %v4375_v28, 0.0 }
 0xe31   : > { %1869 = vadd.xlane.f32.xlu1 %v1868_v29 }
 0xebe   : > { %v1870_v18 = vpop.xlane.xlu1 %1869 }
 0xebf   : > { %4376 = vrcp.f32 %v1870_v18 }
 0xec9   : > { %v4377_v31 = vpop.eup %4376 }
 0xeca   : > { %v1872_v32 = vmul.f32 %v4377_v31, %v4375_v28 }
 0xecc   : > { %4056 = vmatmul.mubr.msk.f32.vlgmr.msra.gmra.mrb[24].mxu0 %vm1155_vm9, %v1872_v32 }
 0xecd   : > { %4071 = vmatprep.mubr.msk.f32.mxu0 %vm4473_vm0, %v4472_v5 }
 0xf9f   : > { %v1946_v33 = vpop.f32.mrb[24].mxu0 }
 0xfa0   : > { %v4057_v34 = vpop.f32.mrb[25].mxu0  ;;  %4061 = vmatmul.mubr.msk.f32.vlgmr.msra.gmra.mrb[2].mxu1 %vm1065_vm6, %v1946_v33 }
 0xfa1   : > { %4090 = vmatprep.mubr.msk.f32.mxu1 %vm4473_vm0, %v4472_v5  ;;  %4262 = vmatpush3.bf16.msra.mxu1 %v4261_v0 }
 0xfa2   : > { %4263 = vmatprep.subr.bf16.mxu1 %v4471_v3 }
 0xfa5   : > { %4265 = vmatpush3.bf16.msra.mxu1 %v4264_v4 }
 0xfa6   : > { %4266 = vmatprep.subr.bf16.mxu1 %v4471_v3 }
 0xfa9   : > { %4268 = vmatpush3.bf16.msra.mxu1 %v4267_v8 }
 0xfaa   : > { %4269 = vmatprep.subr.bf16.mxu1 %v4471_v3 }
 0xfad   : > { %4271 = vmatpush3.bf16.msra.mxu1 %v4270_v11  ;;  %v3836_v11 = vld [vmem:[%s5308_s8 + $0x28] sm:$0xff] }
 0xfae   : > { %4109 = vmatprep.subr.mxu1 %v4472_v5 }
0x1073   : > { %v2019_v35 = vpop.f32.mrb[2].mxu1 }
0x1074   : > { %v2023_v36 = vadd.f32 %v2019_v35, %v1783_v19  ;;  %v4062_v37 = vpop.f32.mrb[3].mxu1 }
0x1075   : > { %v3831_v37 = vld [vmem:[%s5305_s7 + $0x28] sm:$0xff] }
0x1076   : > { %v2024_v39 = vadd.f32 %v2023_v36, %v4763_v57  ;;  %v2063_v57 = vld [vmem:[%s5252_s12 + $0x8] sm:$0xff]  ;;  %v3830_v36 = vld [vmem:[%s5305_s7 + $0x20] sm:$0xff] }
0x1077   : > { %v4255_v48 = vpack.c.bf16 %v2063_v57, %v2062_v47  ;;  %v3829_v57 = vld [vmem:[%s5307_s6 + $0x1] ss:$0 sm:$0xff]  ;;  %s4485_s6 = smov [#allocation2]  }
0x1078   : > { %v4900_v40 = vadd.f32 %v3819_v38, %v2024_v39  ;;  %v4273_v38 = vpack.c.bf16 %v3831_v37, %v3830_v36  ;;  %v3832_v39 = vld [vmem:[%s5305_s7 + $0x30] sm:$0xff] }
0x1079   : > { %4256 = vmatpush3.bf16.msra.mxu0 %v4255_v48 }
0x107a   : > { %v2035_v41 = vsel %vm950_vm4, %v4900_v40, 0.0  ;;  %4257 = vmatprep.subr.bf16.mxu0 %v4471_v3 }
0x107b   : > { %2036 = vadd.xlane.f32.xlu1 %v2035_v41 }
0x107d   : > { %4259 = vmatpush3.bf16.msra.mxu0 %v4258_v51 }
0x107e   : > { %4272 = vmatprep.subr.bf16.mxu0 %v4471_v3 }
0x1108   : > { %v2037_v42 = vpop.xlane.xlu1 %2036 }
0x1109   : > { %v2038_v43 = vmul.f32 0.03125, %v2037_v42 }
0x110b   : > { %v2039_v44 = vsub.f32 %v4900_v40, %v2038_v43 }
0x110d   : > { %v2040_v45 = vmul.f32 %v2039_v44, %v2039_v44 }
0x110f   : > { %v2041_v46 = vsel %vm950_vm4, %v2040_v45, 0.0 }
0x1110   : > { %2042 = vadd.xlane.f32.xlu1 %v2041_v46  ;;  %v3828_v46 = vld [vmem:[%s5306_s1 + $0x1] ss:$0 sm:$0xff] }
0x119d   : > { %v2043_v52 = vpop.xlane.xlu1 %2042 }
0x119e   : > { %v2044_v53 = vmul.f32 0.03125, %v2043_v52 }
0x11a0   : > { %v2045_v54 = vadd.f32 1e-05, %v2044_v53 }
0x11a2   : > { %4378 = vrsqrt.f32 %v2045_v54 }
0x11ac   : > { %v4379_v55 = vpop.eup %4378 }
0x11ad   : > { %v2047_v58 = vmul.f32 %v4379_v55, %v2039_v44 }
0x11af   : > { %v2054_v60 = vmul.f32 %v3820_v56, %v2047_v58 }
0x11b1   : > { %v2061_v61 = vadd.f32 %v3821_v59, %v2054_v60 }
0x11b3   : > { %4072 = vmatmul.mubr.msk.f32.vlgmr.msra.gmra.mrb[26].mxu0 %vm983_vm5, %v2061_v61 }
0x11b4   : > { %4101 = vmatprep.mubr.msk.f32.mxu0 %vm4473_vm0, %v4472_v5  ;;  %4274 = vmatpush3.bf16.msra.mxu0 %v4273_v38 }
0x11b5   : > { %4275 = vmatprep.subr.bf16.mxu0 %v4471_v3 }
0x1286   : > { %v2142_v13 = vpop.f32.mrb[26].mxu0 }
0x1287   : > { %v2143_v14 = vadd.f32 %v3822_v12, %v2142_v13  ;;  %v4073_v15 = vpop.f32.mrb[27].mxu0 }
0x1289   : > { %v2146_v16 = vmul.f32 %v2143_v14, %v2143_v14 }
0x128b   : > { %v2147_v17 = vmul.f32 %v2146_v16, %v2143_v14 }
0x128d   : > { %v2148_v19 = vmul.f32 0.044715, %v2147_v17 }
0x128f   : > { %v2149_v20 = vadd.f32 %v2148_v19, %v2143_v14 }
0x1291   : > { %v2150_v21 = vmul.f32 0.7978846, %v2149_v20 }
0x1293   : > { %4380 = vtanh.f32 %v2150_v21  ;;  %v3835_v21 = vld [vmem:[%s5308_s8 + $0x20] sm:$0xff] }
0x129d   : > { %v4381_v22 = vpop.eup %4380 }
0x129e   : > { %v2152_v23 = vadd.f32 1.0, %v4381_v22 }
0x12a0   : > { %v2153_v24 = vmul.f32 0.5, %v2152_v23 }
0x12a2   : > { %v2154_v25 = vmul.f32 %v2153_v24, %v2143_v14 }
0x12a4   : > { %4091 = vmatmul.mubr.msk.f32.vlgmr.msra.gmra.mrb[4].mxu1 %vm873_vm3, %v2154_v25 }
0x12a5   : > { %4111 = vmatprep.mubr.msk.f32.mxu1 %vm4473_vm0, %v4472_v5 }
0x1377   : > { %v2232_v26 = vpop.f32.mrb[4].mxu1 }
0x1378   : > { %v2236_v28 = vadd.f32 %v2232_v26, %v4900_v40  ;;  %v4092_v29 = vpop.f32.mrb[5].mxu1  ;;  %v3833_v40 = vld [vmem:[%s5305_s7 + $0x38] sm:$0xff]  ;;  %s4410_s7 = sshll.u32 %s4485_s6, 4  ;;  %s4411_s7 = int_to_ptr.vmem [resolvable:$false] %s4410_s7 }
0x1379   : > { %v4276_v41 = vpack.c.bf16 %v3833_v40, %v3832_v39 }
0x137a   : > { %v4967_v30 = vadd.f32 %v3825_v27, %v2236_v28 }
0x137b   : > { %4277 = vmatpush3.bf16.msra.mxu0 %v4276_v41 }
0x137c   : > { %v2249_v18 = vsel %vm950_vm4, %v4967_v30, 0.0  ;;  %4104 = vmatprep.subr.mxu0 %v4472_v5 }
0x137d   : > { %2250 = vadd.xlane.f32.xlu1 %v2249_v18 }
0x140a   : > { %v2251_v31 = vpop.xlane.xlu1 %2250 }
0x140b   : > { %v2252_v32 = vmul.f32 0.03125, %v2251_v31 }
0x140d   : > { %v2253_v33 = vsub.f32 %v4967_v30, %v2252_v32 }
0x140f   : > { %v2254_v34 = vmul.f32 %v2253_v33, %v2253_v33 }
0x1411   : > { %v2255_v35 = vsel %vm950_vm4, %v2254_v34, 0.0 }
0x1412   : > { %2256 = vadd.xlane.f32.xlu1 %v2255_v35 }
0x149f   : > { %v2257_v42 = vpop.xlane.xlu1 %2256 }
0x14a0   : > { %v2258_v43 = vmul.f32 0.03125, %v2257_v42 }
0x14a2   : > { %v2259_v44 = vadd.f32 1e-05, %v2258_v43 }
0x14a4   : > { %4382 = vrsqrt.f32 %v2259_v44 }
0x14ae   : > { %v4383_v45 = vpop.eup %4382 }
0x14af   : > { %v2261_v47 = vmul.f32 %v4383_v45, %v2253_v33 }
0x14b1   : > { %v2268_v48 = vmul.f32 %v3828_v46, %v2261_v47  ;;  %v3837_v47 = vld [vmem:[%s5308_s8 + $0x30] sm:$0xff] }
0x14b3   : > { %v2275_v49 = vadd.f32 %v3829_v57, %v2268_v48 }
0x14b5   : > { %4102 = vmatmul.mubr.msk.f32.vlgmr.msra.gmra.mrb[28].mxu0 %vm983_vm5, %v2275_v49 }
0x14b6   : > { %4106 = vmatprep.mubr.msk.f32.mxu0 %vm4473_vm0, %v4472_v5 }
0x1588   : > { %v4996_v50 = vpop.f32.mrb[28].mxu0 }
0x1589   : > { %2528 = vrot.lane.b32.xlu1 %v4996_v50, %s5309_s26  ;;  %2361 = vrot.lane.b32.xlu0 %v4996_v50, %s5310_s22  ;;  %v4103_v51 = vpop.f32.mrb[29].mxu0  ;;  %v5003_v52 = vmul.f32 0.35355338, %v4996_v50  ;;  %s5319_s26 = smov 40   ;;  %s667_s22 = sand.u32 1, %s4460_s25  }
0x158d   : > { %2526 = vrot.lane.b32.xlu0 %v5003_v52, %s5311_s2  ;;  %s668_s2 = scalar_lea.vmem [#allocation2], %s667_s22 }
0x15fb   : > { %v2362_v53 = vpop.permute.xlu0 %2361  ;;  %v2529_v54 = vpop.permute.xlu1 %2528 }
0x15fc   : > { %4105 = vmatpush3.xpose.msk.msra.mxu0 %vm1065_vm6, %v2362_v53 }
0x15fd   : > { %4114 = vmatprep.subr.mxu0 %v4472_v5 }
0x15ff   : > { %4107 = vmatmul.mubr.msk.f32.vlgmr.msra.gmra.mrb[30].mxu0 %vm1065_vm6, %v5003_v52  ;;  %v2527_v55 = vpop.permute.xlu0 %2526 }
0x1600   : > { %4115 = vmatpush3.xpose.msk.msra.mxu0 %vm1065_vm6, %v2529_v54  ;;  %4116 = vmatprep.mubr.msk.f32.mxu0 %vm4473_vm0, %v4472_v5 }
0x1601   : > { %4124 = vmatprep.subr.mxu0 %v4472_v5 }
0x1603   : > { %4117 = vmatmul.mubr.msk.f32.vlgmr.msra.gmra.mrb[32].mxu0 %vm1065_vm6, %v2527_v55 }
0x1604   : > { %4126 = vmatprep.mubr.msk.f32.mxu0 %vm4473_vm0, %v4472_v5  ;;  %4125 = vmatpush3.msra.mxu0 %v3836_v11 }
0x1605   : > { %4134 = vmatprep.subr.mxu0 %v4472_v5 }
0x16d2   : > { %v2434_v56 = vpop.f32.mrb[30].mxu0 }
0x16d3   : > { %v4108_v58 = vpop.f32.mrb[31].mxu0  ;;  %v2438_v59 = vsel %vm1141_vm8, %v2434_v56, -inf }
0x16d4   : > { %2439 = vmax.xlane.f32.xlu0 %v2438_v59  ;;  %v3838_v59 = vld [vmem:[%s5308_s8 + $0x38] sm:$0xff]  ;;  %s4412_s8 = scalar_lea.vmem %s4411_s7, 32 }
0x16d6   : > { %v2600_v60 = vpop.f32.mrb[32].mxu0 }
0x16d7   : > { %v4118_v61 = vpop.f32.mrb[33].mxu0  ;;  %v2604_v62 = vsel %vm1141_vm8, %v2600_v60, -inf }
0x16d8   : > { %2605 = vmax.xlane.f32.xlu1 %v2604_v62 }
0x16e9   : > { %2615 = vrot.lane.b32.xlu1 %v4996_v50, %s5312_s28  ;;  %s5316_s28 = smov 48  }
0x16ed   : > { %2838 = vrot.lane.b32.xlu1 %v5003_v52, %s5313_s23  ;;  %s5317_s23 = smov 104  }
0x1761   : > { %v2440_v63 = vpop.xlane.xlu0 %2439 }
0x1762   : > { %v2441_v0 = vsub.f32 %v2434_v56, %v2440_v63 }
0x1764   : > { %v2442_v1 = vmul.f32 1.442695, %v2441_v0 }
0x1765   : > { %v2606_v2 = vpop.xlane.xlu1 %2605 }
0x1766   : > { %4384 = vpow2.f32 %v2442_v1  ;;  %v2607_v4 = vsub.f32 %v2600_v60, %v2606_v2 }
0x1768   : > { %v2608_v6 = vmul.f32 1.442695, %v2607_v4 }
0x1769   : > { %v2616_v17 = vpop.permute.xlu1 %2615 }
0x176a   : > { %4386 = vpow2.f32 %v2608_v6 }
0x176d   : > { %v2839_v27 = vpop.permute.xlu1 %2838 }
0x1770   : > { %v4385_v7 = vpop.eup %4384 }
0x1771   : > { %v2444_v8 = vsel %vm1141_vm8, %v4385_v7, 0.0 }
0x1772   : > { %2445 = vadd.xlane.f32.xlu0 %v2444_v8 }
0x1774   : > { %v4387_v9 = vpop.eup %4386 }
0x1775   : > { %v2610_v10 = vsel %vm1141_vm8, %v4387_v9, 0.0 }
0x1776   : > { %2611 = vadd.xlane.f32.xlu0 %v2610_v10 }
0x178c   : > { %2449 = vrot.lane.b32.xlu0 %v4996_v50, %s5314_s30  ;;  %s5318_s30 = smov 72  }
0x1790   : > { %2840 = vrot.lane.b32.xlu0 %v4996_v50, %s5315_s24 }
0x17ff   : > { %v2446_v12 = vpop.xlane.xlu0 %2445 }
0x1800   : > { %4388 = vrcp.f32 %v2446_v12 }
0x1803   : > { %v2612_v13 = vpop.xlane.xlu0 %2611 }
0x1804   : > { %4390 = vrcp.f32 %v2612_v13 }
0x1807   : > { %v2450_v14 = vpop.permute.xlu0 %2449 }
0x1808   : > { %4110 = vmatpush3.msk.msra.mxu1 %vm1159_vm7, %v2450_v14 }
0x1809   : > { %4119 = vmatprep.subr.mxu1 %v4472_v5 }
0x180a   : > { %v4389_v15 = vpop.eup %4388 }
0x180b   : > { %v2448_v16 = vmul.f32 %v4389_v15, %v4385_v7  ;;  %v2841_v25 = vpop.permute.xlu0 %2840 }
0x180d   : > { %4112 = vmatmul.mubr.msk.f32.vlgmr.msra.gmra.mrb[6].mxu1 %vm1155_vm9, %v2448_v16 }
0x180e   : > { %v4391_v19 = vpop.eup %4390  ;;  %4120 = vmatpush3.msk.msra.mxu1 %vm1159_vm7, %v2616_v17  ;;  %4121 = vmatprep.mubr.msk.f32.mxu1 %vm4473_vm0, %v4472_v5 }
0x180f   : > { %v2614_v20 = vmul.f32 %v4391_v19, %v4387_v9  ;;  %4129 = vmatprep.subr.mxu1 %v4472_v5  ;;  %v3860_v9 = vld [vmem:[%s5249_s9 + $0x1] ss:$0 sm:$0xff] }
0x1810   : > { %v3865_v19 = vld [vmem:[%s5252_s12 + $0x20] sm:$0xff] }
0x1811   : > { %4122 = vmatmul.mubr.msk.f32.vlgmr.msra.gmra.mrb[8].mxu1 %vm1155_vm9, %v2614_v20 }
0x1812   : > { %4131 = vmatprep.mubr.msk.f32.mxu1 %vm4473_vm0, %v4472_v5  ;;  %4130 = vmatpush3.msra.mxu1 %v3835_v21  ;;  %v3867_v21 = vld [vmem:[%s5252_s12 + $0x30] sm:$0xff] }
0x1813   : > { %4139 = vmatprep.subr.mxu1 %v4472_v5 }
0x18e0   : > { %v2522_v22 = vpop.f32.mrb[6].mxu1 }
0x18e1   : > { %v4113_v23 = vpop.f32.mrb[7].mxu1  ;;  %4132 = vmatmul.mubr.msk.f32.vlgmr.msra.gmra.mrb[10].mxu1 %vm1065_vm6, %v2522_v22  ;;  %v3868_v22 = vld [vmem:[%s5252_s12 + $0x38] sm:$0xff] }
0x18e2   : > { %4141 = vmatprep.mubr.msk.f32.mxu1 %vm4473_vm0, %v4472_v5  ;;  %v4282_v23 = vpack.c.bf16 %v3868_v22, %v3867_v21 }
0x18e4   : > { %v2688_v24 = vpop.f32.mrb[8].mxu1 }
0x18e5   : > { %v4123_v26 = vpop.f32.mrb[9].mxu1  ;;  %4127 = vmatmul.mubr.msk.f32.vlgmr.msra.gmra.mrb[34].mxu0 %vm1065_vm6, %v2688_v24 }
0x18e6   : > { %4135 = vmatpush3.xpose.msk.msra.mxu0 %vm1065_vm6, %v2841_v25  ;;  %4136 = vmatprep.mubr.msk.f32.mxu0 %vm4473_vm0, %v4472_v5 }
0x18e7   : > { %4144 = vmatprep.subr.mxu0 %v4472_v5 }
0x18e9   : > { %4137 = vmatmul.mubr.msk.f32.vlgmr.msra.gmra.mrb[36].mxu0 %vm1065_vm6, %v2839_v27 }
0x18ea   : > { %4146 = vmatprep.mubr.msk.f32.mxu0 %vm4473_vm0, %v4472_v5  ;;  %4145 = vmatpush3.msra.mxu0 %v3837_v47 }
0x18eb   : > { %4154 = vmatprep.subr.mxu0 %v4472_v5 }
0x19b4   : > { %v2834_v28 = vpop.f32.mrb[10].mxu1 }
0x19b5   : > { %v4133_v29 = vpop.f32.mrb[11].mxu1 }
0x19b8   : > { %v2761_v18 = vpop.f32.mrb[34].mxu0 }
0x19b9   : > { %v2835_v31 = vadd.f32 %v2834_v28, %v2761_v18  ;;  %v4128_v32 = vpop.f32.mrb[35].mxu0  ;;  %v3863_v28 = vld [vmem:[%s5250_s10 + $0x1] ss:$0 sm:$0xff] }
0x19ba   : > { %v3864_v18 = vld [vmem:[%s5251_s11 + $0x1] ss:$0 sm:$0xff] }
0x19bc   : > { %v2912_v33 = vpop.f32.mrb[36].mxu0 }
0x19bd   : > { %v4138_v34 = vpop.f32.mrb[37].mxu0  ;;  %v2916_v35 = vsel %vm1141_vm8, %v2912_v33, -inf }
0x19be   : > { %2917 = vmax.xlane.f32.xlu0 %v2916_v35  ;;  %v3873_v34 = vld [vmem:[%s5254_s14 + $0x48] sm:$0xff] }
0x19d4   : > { %2927 = vrot.lane.b32.xlu0 %v4996_v50, %s5316_s28  ;;  %s3887_s28 = sshll.u32 %s4617_s3, 4 }
0x19d5   : > { %s5196_s0 = scalar_lea.hbm %s5261_s21, %s3887_s28 }
0x19d8   : > { %3078 = vrot.lane.b32.xlu0 %v5003_v52, %s5317_s23  ;;  %s3692_s23 = sshll.u32 %s668_s2, 4  ;;  %s3693_s23 = int_to_ptr.vmem [resolvable:$true] %s3692_s23 }
0x19d9   : > { %s4406_s1 = scalar_lea.vmem %s3693_s23, 16  ;;  %p4413_p0 = scmp.lt.s32.totalorder %s3693_s23, %s4411_s7 }
0x19da   : > { %p4407_p11 = scmp.ne.s32.totalorder %s3693_s23, %s4406_s1  ;;  %p4414_p1 = scmp.lt.s32.totalorder %s4412_s8, %s4406_s1 }
0x19dc   : > { %p4408_p12 = pnand %p4407_p11, %p4634_p5  ;;  %p4415_p2 = por %p4414_p1, %p4413_p0 }
0x19de   : > { %p4409_p13 = pneg %p4408_p12 }
0x19e0   : > { %p4416_p3 = pnand %p4415_p2, %p4409_p13 }
0x1a4b   : > { %v2918_v36 = vpop.xlane.xlu0 %2917 }
0x1a4c   : > { %v2919_v37 = vsub.f32 %v2912_v33, %v2918_v36  ;;  %v3872_v33 = vld [vmem:[%s5254_s14 + $0x40] sm:$0xff]  ;;  %v3874_v36 = vld [vmem:[%s5254_s14 + $0x50] sm:$0xff] }
0x1a4d   : > { %v4285_v35 = vpack.c.bf16 %v3873_v34, %v3872_v33 }
0x1a4e   : > { %v2920_v38 = vmul.f32 1.442695, %v2919_v37 }
0x1a4f   : > { %v2928_v39 = vpop.permute.xlu0 %2927 }
0x1a50   : > { %4392 = vpow2.f32 %v2920_v38  ;;  %4140 = vmatpush3.msk.msra.mxu1 %vm1159_vm7, %v2928_v39  ;;  %v3876_v38 = vld [vmem:[%s5254_s14 + $0x60] sm:$0xff]  ;;  %v3877_v39 = vld [vmem:[%s5254_s14 + $0x68] sm:$0xff] }
0x1a51   : > { %4149 = vmatprep.subr.mxu1 %v4472_v5 }
0x1a53   : > { %v3079_v46 = vpop.permute.xlu0 %3078 }
0x1a5a   : > { %v4393_v40 = vpop.eup %4392 }
0x1a5b   : > { %v2922_v41 = vsel %vm1141_vm8, %v4393_v40, 0.0 }
0x1a5c   : > { %2923 = vadd.xlane.f32.xlu1 %v2922_v41  ;;  %v3878_v41 = vld [vmem:[%s5254_s14 + $0x70] sm:$0xff] }
0x1a6d   : > { %3080 = vrot.lane.b32.xlu1 %v4996_v50, %s5318_s30 }
0x1ae9   : > { %v2924_v42 = vpop.xlane.xlu1 %2923 }
0x1aea   : > { %4394 = vrcp.f32 %v2924_v42  ;;  %v3879_v42 = vld [vmem:[%s5254_s14 + $0x78] sm:$0xff] }
0x1aed   : > { %v3081_v45 = vpop.permute.xlu1 %3080 }
0x1af4   : > { %v4395_v43 = vpop.eup %4394 }
0x1af5   : > { %v2926_v44 = vmul.f32 %v4395_v43, %v4393_v40  ;;  %v4291_v40 = vpack.c.bf16 %v3877_v39, %v3876_v38  ;;  %v4294_v43 = vpack.c.bf16 %v3879_v42, %v3878_v41 }
0x1af7   : > { %4142 = vmatmul.mubr.msk.f32.vlgmr.msra.gmra.mrb[12].mxu1 %vm1155_vm9, %v2926_v44  ;;  %v3870_v44 = vld [vmem:[%s5253_s13 + $0x1] ss:$0 sm:$0xff] }
0x1af8   : > { %4150 = vmatpush3.xpose.msk.msra.mxu1 %vm1065_vm6, %v3081_v45  ;;  %4151 = vmatprep.mubr.msk.f32.mxu1 %vm4473_vm0, %v4472_v5 }
0x1af9   : > { %4159 = vmatprep.subr.mxu1 %v4472_v5 }
0x1afb   : > { %4152 = vmatmul.mubr.msk.f32.vlgmr.msra.gmra.mrb[14].mxu1 %vm1065_vm6, %v3079_v46 }
0x1afc   : > { %4161 = vmatprep.mubr.msk.f32.mxu1 %vm4473_vm0, %v4472_v5  ;;  %4160 = vmatpush3.msra.mxu1 %v3838_v59  ;;  %v3882_v59 = vld [vmem:[%s5255_s15 + $0x1] ss:$0 sm:$0xff] }
0x1afd   : > { %4284 = vmatprep.subr.bf16.mxu1 %v4471_v3 }
0x1bca   : > { %v3000_v57 = vpop.f32.mrb[12].mxu1 }
0x1bcb   : > { %v4143_v48 = vpop.f32.mrb[13].mxu1  ;;  %4147 = vmatmul.mubr.msk.f32.vlgmr.msra.gmra.mrb[38].mxu0 %vm1065_vm6, %v3000_v57 }
0x1bcc   : > { %4156 = vmatprep.mubr.msk.f32.mxu0 %vm4473_vm0, %v4472_v5 }
0x1bce   : > { %v3152_v49 = vpop.f32.mrb[14].mxu1 }
0x1bcf   : > { %v4153_v51 = vpop.f32.mrb[15].mxu1  ;;  %v3156_v52 = vsel %vm1141_vm8, %v3152_v49, -inf }
0x1bd0   : > { %3157 = vmax.xlane.f32.xlu1 %v3156_v52 }
0x1c5d   : > { %v3158_v53 = vpop.xlane.xlu1 %3157 }
0x1c5e   : > { %v3159_v54 = vsub.f32 %v3152_v49, %v3158_v53 }
0x1c60   : > { %v3160_v55 = vmul.f32 1.442695, %v3159_v54 }
0x1c62   : > { %4396 = vpow2.f32 %v3160_v55 }
0x1c6c   : > { %v4397_v56 = vpop.eup %4396 }
0x1c6d   : > { %v3162_v58 = vsel %vm1141_vm8, %v4397_v56, 0.0 }
0x1c6e   : > { %3163 = vadd.xlane.f32.xlu0 %v3162_v58 }
0x1c84   : > { %3167 = vrot.lane.b32.xlu0 %v4996_v50, %s5319_s26  ;;  %s3677_s26 = scalar_lea.sflag [#allocation3], %s667_s22 }
0x1c9e   : > { %v3073_v60 = vpop.f32.mrb[38].mxu0 }
0x1c9f   : > { %v3077_v61 = vadd.f32 %v3073_v60, %v2835_v31  ;;  %v4148_v62 = vpop.f32.mrb[39].mxu0 }
0x1cfb   : > { %v3164_v63 = vpop.xlane.xlu0 %3163 }
0x1cfc   : > { %4398 = vrcp.f32 %v3164_v63 }
0x1cff   : > { %v3168_v0 = vpop.permute.xlu0 %3167 }
0x1d00   : > { %4155 = vmatpush3.msk.msra.mxu0 %vm1159_vm7, %v3168_v0 }
0x1d01   : > { %4278 = vmatprep.subr.bf16.mxu0 %v4471_v3 }
0x1d06   : > { %v4399_v1 = vpop.eup %4398 }
0x1d07   : > { %v3166_v2 = vmul.f32 %v4399_v1, %v4397_v56 }
0x1d09   : > { %4157 = vmatmul.mubr.msk.f32.vlgmr.msra.gmra.mrb[40].mxu0 %vm1155_vm9, %v3166_v2 }
0x1d0a   : > { %4172 = vmatprep.mubr.msk.f32.mxu0 %vm4473_vm0, %v4472_v5 }
0x1ddc   : > { %v3240_v50 = vpop.f32.mrb[40].mxu0 }
0x1ddd   : > { %v4158_v4 = vpop.f32.mrb[41].mxu0  ;;  %4162 = vmatmul.mubr.msk.f32.vlgmr.msra.gmra.mrb[16].mxu1 %vm1065_vm6, %v3240_v50 }
0x1dde   : > { %4191 = vmatprep.mubr.msk.f32.mxu1 %vm4473_vm0, %v4472_v5  ;;  %4286 = vmatpush3.bf16.msra.mxu1 %v4285_v35 }
0x1ddf   : > { %4287 = vmatprep.subr.bf16.mxu1 %v4471_v3 }
0x1eb0   : > { %v3313_v6 = vpop.f32.mrb[16].mxu1 }
0x1eb1   : > { %v3317_v7 = vadd.f32 %v3313_v6, %v3077_v61  ;;  %v4163_v8 = vpop.f32.mrb[17].mxu1  ;;  %v3575_v6 = vld [vmem:[%s5258_s18] sm:$0xff] }
0x1eb3   : > { %v3318_v10 = vadd.f32 %v3317_v7, %v4967_v30  ;;  %v3866_v30 = vld [vmem:[%s5252_s12 + $0x28] sm:$0xff] }
0x1eb4   : > { %v4279_v20 = vpack.c.bf16 %v3866_v30, %v3865_v19  ;;  %v3576_v7 = vld [vmem:[%s5258_s18 + $0x8] sm:$0xff] }
0x1eb5   : > { %v5104_v11 = vadd.f32 %v3860_v9, %v3318_v10  ;;  %v4297_v8 = vpack.c.bf16 %v3576_v7, %v3575_v6  ;;  %v3577_v9 = vld [vmem:[%s5258_s18 + $0x10] sm:$0xff]  ;;  %v3578_v10 = vld [vmem:[%s5258_s18 + $0x18] sm:$0xff] }
0x1eb6   : > { %4280 = vmatpush3.bf16.msra.mxu0 %v4279_v20 }
0x1eb7   : > { %v3332_v12 = vsel %vm950_vm4, %v5104_v11, 0.0  ;;  %4281 = vmatprep.subr.bf16.mxu0 %v4471_v3 }
0x1eb8   : > { %3333 = vadd.xlane.f32.xlu1 %v3332_v12 }
0x1eba   : > { %4283 = vmatpush3.bf16.msra.mxu0 %v4282_v23 }
0x1ebb   : > { %4296 = vmatprep.subr.bf16.mxu0 %v4471_v3 }
0x1f45   : > { %v3334_v13 = vpop.xlane.xlu1 %3333 }
0x1f46   : > { %v3335_v14 = vmul.f32 0.03125, %v3334_v13 }
0x1f48   : > { %v3336_v15 = vsub.f32 %v5104_v11, %v3335_v14 }
0x1f4a   : > { %v3337_v16 = vmul.f32 %v3336_v15, %v3336_v15 }
0x1f4c   : > { %v3338_v17 = vsel %vm950_vm4, %v3337_v16, 0.0 }
0x1f4d   : > { %3339 = vadd.xlane.f32.xlu1 %v3338_v17  ;;  %v3884_v17 = vld [vmem:[%s5257_s17] ss:$0 sm:$0xff] }
0x1fda   : > { %v3340_v24 = vpop.xlane.xlu1 %3339 }
0x1fdb   : > { %v3341_v25 = vmul.f32 0.03125, %v3340_v24 }
0x1fdd   : > { %v3342_v26 = vadd.f32 1e-05, %v3341_v25 }
0x1fdf   : > { %4400 = vrsqrt.f32 %v3342_v26 }
0x1fe9   : > { %v4401_v27 = vpop.eup %4400 }
0x1fea   : > { %v3344_v29 = vmul.f32 %v4401_v27, %v3336_v15 }
0x1fec   : > { %v3351_v31 = vmul.f32 %v3863_v28, %v3344_v29 }
0x1fee   : > { %v3358_v32 = vadd.f32 %v3864_v18, %v3351_v31 }
0x1ff0   : > { %4173 = vmatmul.mubr.msk.f32.vlgmr.msra.gmra.mrb[42].mxu0 %vm983_vm5, %v3358_v32 }
0x1ff1   : > { %4202 = vmatprep.mubr.msk.f32.mxu0 %vm4473_vm0, %v4472_v5  ;;  %v3875_v5 = vld [vmem:[%s5254_s14 + $0x58] sm:$0xff]  ;;  %4298 = vmatpush3.bf16.msra.mxu0 %v4297_v8 }
0x1ff2   : > { %v4288_v37 = vpack.c.bf16 %v3875_v5, %v3874_v36  ;;  %4299 = vmatprep.subr.bf16.mxu0 %v4471_v3 }
0x1ff4   : > { %4289 = vmatpush3.bf16.msra.mxu1 %v4288_v37 }
0x1ff5   : > { %4290 = vmatprep.subr.bf16.mxu1 %v4471_v3 }
0x1ff8   : > { %4292 = vmatpush3.bf16.msra.mxu1 %v4291_v40 }
0x1ff9   : > { %4293 = vmatprep.subr.bf16.mxu1 %v4471_v3  ;;  %v3883_v3 = vld [vmem:[%s5256_s16] ss:$0 sm:$0xff] }
0x1ffc   : > { %4295 = vmatpush3.bf16.msra.mxu1 %v4294_v43 }
0x20c3   : > { %v3441_v45 = vpop.f32.mrb[42].mxu0 }
0x20c4   : > { %v3442_v46 = vadd.f32 %v3870_v44, %v3441_v45  ;;  %v4174_v47 = vpop.f32.mrb[43].mxu0 }
0x20c6   : > { %v3445_v57 = vmul.f32 %v3442_v46, %v3442_v46 }
0x20c8   : > { %v3446_v48 = vmul.f32 %v3445_v57, %v3442_v46 }
0x20ca   : > { %v3447_v49 = vmul.f32 0.044715, %v3446_v48 }
0x20cc   : > { %v3448_v51 = vadd.f32 %v3447_v49, %v3442_v46 }
0x20ce   : > { %v3449_v52 = vmul.f32 0.7978846, %v3448_v51 }
0x20d0   : > { %4402 = vtanh.f32 %v3449_v52 }
0x20da   : > { %v4403_v53 = vpop.eup %4402 }
0x20db   : > { %v3451_v54 = vadd.f32 1.0, %v4403_v53 }
0x20dd   : > { %v3452_v55 = vmul.f32 0.5, %v3451_v54 }
0x20df   : > { %v3453_v56 = vmul.f32 %v3452_v55, %v3442_v46 }
0x20e1   : > { %4192 = vmatmul.mubr.msk.f32.vlgmr.msra.gmra.mrb[18].mxu1 %vm873_vm3, %v3453_v56 }
0x21b4   : > { %v3532_v58 = vpop.f32.mrb[18].mxu1 }
0x21b5   : > { %v3536_v60 = vadd.f32 %v3532_v58, %v5104_v11  ;;  %v4193_v61 = vpop.f32.mrb[19].mxu1  ;;  %v4300_v11 = vpack.c.bf16 %v3578_v10, %v3577_v9 }
0x21b7   : > { %v3545_v62 = vadd.f32 %v3882_v59, %v3536_v60  ;;  %4301 = vmatpush3.bf16.msra.mxu0 %v4300_v11 }
0x21b9   : > { %v3548_v63 = vsel %vm950_vm4, %v3545_v62, 0.0 }
0x21ba   : > { %3549 = vadd.xlane.f32.xlu1 %v3548_v63 }
0x2247   : > { %v3550_v0 = vpop.xlane.xlu1 %3549 }
0x2248   : > { %v3551_v1 = vmul.f32 0.03125, %v3550_v0 }
0x224a   : > { %v3552_v2 = vsub.f32 %v3545_v62, %v3551_v1 }
0x224c   : > { %v3553_v50 = vmul.f32 %v3552_v2, %v3552_v2 }
0x224e   : > { %v3554_v4 = vsel %vm950_vm4, %v3553_v50, 0.0 }
0x224f   : > { %3555 = vadd.xlane.f32.xlu1 %v3554_v4 }
0x22dc   : > { %v3556_v12 = vpop.xlane.xlu1 %3555 }
0x22dd   : > { %v3557_v13 = vmul.f32 0.03125, %v3556_v12 }
0x22df   : > { %v3558_v14 = vadd.f32 1e-05, %v3557_v13 }
0x22e1   : > { %4404 = vrsqrt.f32 %v3558_v14 }
0x22eb   : > { %v4405_v15 = vpop.eup %4404 }
0x22ec   : > { %v3560_v16 = vmul.f32 %v4405_v15, %v3552_v2 }
0x22ee   : > { %v3567_v19 = vmul.f32 %v3883_v3, %v3560_v16 }
0x22f0   : > { %v3574_v30 = vadd.f32 %v3884_v17, %v3567_v19 }
0x22f2   : > { %4203 = vmatmul.mubr.msk.f32.vlgmr.msra.gmra.mrb[44].mxu0 %vm983_vm5, %v3574_v30  ;;  %v3661_v20 = vsel %vm950_vm4, %v3574_v30, 0.0 }
0x22f3   : > { %v3662_v21 = vrot.slane %v3661_v20, 4 }
0x22f5   : > { %v3663_v22 = vadd.f32 %v3662_v21, %v3661_v20 }
0x22f7   : > { %v3664_v23 = vrot.slane %v3663_v22, 2 }
0x22f9   : > { %v3665_v24 = vadd.f32 %v3664_v23, %v3663_v22 }
0x22fb   : > { %v3666_v25 = vrot.slane %v3665_v24, 1 }
0x22fd   : > { %v3667_v26 = vadd.f32 %v3666_v25, %v3665_v24 }
0x22ff   : > { %v3669_v27 = vmul.f32 0.25, %v3667_v26 }
0x2301   : > { %3671 = vst.msk [vmem:[%s668_s2] sm:$0x1] %vm3670_vm10, %v3669_v27 }
0x2302   : > { %4419 = shalt.err (!%p4416_p3)
}
0x2303   : > { %s4420_s3 = scalar_lea.hbm %s5196_s0, 16  ;;  %s4424_s6 = scalar_lea.hbm %s5261_s21, 32 }
0x2304   : > { %p4421_p4 = scmp.ne.s32.totalorder %s5196_s0, %s4420_s3  ;;  %p4425_p9 = scmp.lt.u32.totalorder %s5196_s0, %s5261_s21 }
0x2305   : > { %p4426_p10 = scmp.lt.u32.totalorder %s4424_s6, %s4420_s3  ;;  %p4428_p12 = scmp.lt.u32.totalorder %s4420_s3, %s5196_s0 }
0x2306   : > { %p4422_p7 = pnand %p4421_p4, %p4634_p5 }
0x2307   : > { %p4427_p11 = por %p4426_p10, %p4425_p9 }
0x2308   : > { %p4423_p8 = pneg %p4422_p7 }
0x2309   : > { %p4429_p13 = por %p4428_p12, %p4427_p11 }
0x230b   : > { %p4430_p0 = pnand %p4429_p13, %p4423_p8 }
0x230d   : > { %4433 = shalt.err (!%p4430_p0)
}
0x230e   : > { %4305 = dma.vmem_to_hbm [thread:$0]  (%p4634_p5), %s3693_s23, 16, %s5196_s0, %s3677_s26   ;;  %v3885_v28 = vld [vmem:[%s5259_s19] ss:$0 sm:$0xff]  ;;  %vm3659_vm11 = vcmask 388096  }
0x230f   : > { %s5320_s30 = sshll.u32 %s4653_s4, 2 }
0x2310   : > { %s681_s2 = scalar_lea.vmem %s5260_s20, %s5320_s30 }
0x23c5   : > { %v3655_v29 = vpop.f32.mrb[44].mxu0 }
0x23c6   : > { %v3656_v18 = vadd.f32 %v3885_v28, %v3655_v29  ;;  %v4204_v31 = vpop.f32.mrb[45].mxu0 }
0x23c8   : > { %3660 = vst.msk [vmem:[%s681_s2] sm:$0xf] %vm3659_vm11, %v3656_v18 }
0x23c9 PF: > { %s5321_s5 = sld [smem:[#allocation5_spill]]  ;;  %p4311_p1 = scmp.ge.s32.totalorder %s4468_s27, 2 }
0x23cb   : > { %p4308_p5 = pnand %p4311_p1, %p4638_p6 }
0x23cf   : > { %s3711_s23 = sand.u32 1, %s5321_s5  }
0x23d0   : > { %s3712_s0 = scalar_lea.sflag [#allocation3], %s3711_s23 }
0x23d1   : > { %4451 = dma.done.wait (!%p4308_p5), %s3712_s0, 16  }
0x23d2   : > { %4453 = vsyncadd (!%p4308_p5), %s3712_s0, 4294967280  ;;  %s5323_s27 = sld [smem:[#allocation7_spill]]  ;;  %s5324_s4 = sld [smem:[#allocation6_spill]] }
0x23d3   : > { %s5325_s26 = sld [smem:[#allocation8_spill]]  ;;  %s5326_s2 = smov %s4460_s25 }
0x23d8   : > { %p32_p2 = scmp.ge.s32.totalorder %s5323_s27, 4   ;;  %s5327_s25 = smov %s5324_s4 }
0x23da   :  { %34 = sbr.rel (!%p32_p2) target bundleno = 13 (0xd), region = 161 }
0x23e1   :  { %3716 = vsyncpa [#allocation3], 1 }
0x23e2   :  { %3718 = vsyncpa [#allocation3 + $0x1], 1 }

</bundles_post_ra>
